<compile_context>
chip_gen: v7x
topology: tpu7x:2x2x1
jax: 0.10.0
libtpu: 0.0.40
codegen_flags: <defaults>
</compile_context>

<pallas_src>
import functools

import jax
import jax.numpy as jnp
from jax.experimental import pallas as pl
from jax.experimental.pallas import tpu as pltpu


def _round_up(x, m):
    return (x + m - 1) // m * m


def _gru_gates(gi, gh, h_prev, hidden):
    """GRU gate math.  gi/gh: (B, 3H) pre-activations; h_prev: (B, H)."""
    r = jax.nn.sigmoid(gi[:, :hidden] + gh[:, :hidden])
    z = jax.nn.sigmoid(gi[:, hidden:2 * hidden] + gh[:, hidden:2 * hidden])
    n = jnp.tanh(gi[:, 2 * hidden:] + r * gh[:, 2 * hidden:])
    return (1.0 - z) * n + z * h_prev


def _s2t_kernel(x_ref,
                wih0_ref, bih0_ref, whh0_ref, bhh0_ref,
                wih1_ref, bih1_ref, whh1_ref, bhh1_ref,
                wf1_ref, bf1_ref, wf2_ref, bf2_ref,
                y_ref,
                gi0_ref, h2_ref,
                *, seq_len, batch_pad, hidden_pad):
    Bp, Hp = batch_pad, hidden_pad

    # (1) Hoisted layer-0 input projection: one big MXU matmul over all T*Bp rows.
    gi0_ref[...] = (jnp.dot(x_ref[...], wih0_ref[...],
                            preferred_element_type=jnp.float32) + bih0_ref[...])

    # (2) Serial recurrence: h1/h2 are fori_loop carries (live in vregs).
    def step(t, carry):
        h1, h2 = carry
        row = pl.multiple_of(t * Bp, Bp)

        # GRU layer 0 (input projection already computed above).
        gi0 = gi0_ref[pl.ds(row, Bp), :]
        gh0 = (jnp.dot(h1, whh0_ref[...], preferred_element_type=jnp.float32)
               + bhh0_ref[...])
        h1 = _gru_gates(gi0, gh0, h1, Hp)

        # GRU layer 1 (its input projection depends on h1, so it stays in-loop).
        gi1 = (jnp.dot(h1, wih1_ref[...], preferred_element_type=jnp.float32)
               + bih1_ref[...])
        gh1 = (jnp.dot(h2, whh1_ref[...], preferred_element_type=jnp.float32)
               + bhh1_ref[...])
        h2 = _gru_gates(gi1, gh1, h2, Hp)

        h2_ref[pl.ds(row, Bp), :] = h2
        return (h1, h2)

    init = (jnp.zeros((Bp, Hp), jnp.float32), jnp.zeros((Bp, Hp), jnp.float32))
    jax.lax.fori_loop(0, seq_len, step, init, unroll=True)

    # (3) fc2(relu(fc1(.))) over the whole (T*Bp, Hp) slab; lane-dense output.
    h2_all = h2_ref[...]
    f1 = jnp.maximum(
        jnp.dot(h2_all, wf1_ref[...], preferred_element_type=jnp.float32)
        + bf1_ref[...], 0.0)
    y = jnp.dot(f1, wf2_ref[...], preferred_element_type=jnp.float32) + bf2_ref[...]
    y_ref[...] = y.astype(y_ref.dtype)


def speech_to_text_forward(x, params):
    """x: (B, T, input_size) float32 -> (B, T, output_size) float32 (eval mode)."""
    B, T, D = x.shape
    H = params["w_hh0"].shape[0]          # (H, 3H)
    I = params["w_fc1"].shape[1]          # (H, I)
    O = params["w_fc2"].shape[1]          # (I, O)

    Bp = _round_up(B, 8)                  # sublane occupancy
    Dp = _round_up(D, 128)                # lane alignment
    Hp = _round_up(H, 128)
    Ip = _round_up(I, 128)
    Op = _round_up(O, 128)

    f32 = jnp.float32

    # time-major, pad batch & feature dims, flatten to a lane/sublane-dense slab.
    x_tm = jnp.transpose(x.astype(f32), (1, 0, 2))            # (T, B, D)
    x_tm = jnp.pad(x_tm, ((0, 0), (0, Bp - B), (0, Dp - D)))
    x_flat = x_tm.reshape(T * Bp, Dp)

    def pad_gru_w(w, rows_p):
        # (rows, 3H) -> (rows_p, 3*Hp), padded PER GATE so the r/z/n column
        # slices inside the kernel stay aligned to Hp-lane boundaries.
        gates = jnp.split(w.astype(f32), 3, axis=1)
        gates = [jnp.pad(g, ((0, rows_p - w.shape[0]), (0, Hp - H))) for g in gates]
        return jnp.concatenate(gates, axis=1)

    def pad_gru_b(b):
        gates = jnp.split(b.astype(f32), 3, axis=1)
        gates = [jnp.pad(g, ((0, 0), (0, Hp - H))) for g in gates]
        return jnp.concatenate(gates, axis=1)

    def pad2(a, rows_p, cols_p):
        a = a.astype(f32)
        return jnp.pad(a, ((0, rows_p - a.shape[0]), (0, cols_p - a.shape[1])))

    operands = (
        x_flat,
        pad_gru_w(params["w_ih0"], Dp), pad_gru_b(params["b_ih0"]),
        pad_gru_w(params["w_hh0"], Hp), pad_gru_b(params["b_hh0"]),
        pad_gru_w(params["w_ih1"], Hp), pad_gru_b(params["b_ih1"]),
        pad_gru_w(params["w_hh1"], Hp), pad_gru_b(params["b_hh1"]),
        pad2(params["w_fc1"], Hp, Ip), pad2(params["b_fc1"], 1, Ip),
        pad2(params["w_fc2"], Ip, Op), pad2(params["b_fc2"], 1, Op),
    )

    # Whole-array blocks; single grid step (the time loop lives inside the kernel).
    in_specs = [pl.BlockSpec(a.shape, lambda i, n=a.ndim: (0,) * n)
                for a in operands]
    out_specs = pl.BlockSpec((T * Bp, Op), lambda i: (0, 0))

    y_flat = pl.pallas_call(
        functools.partial(_s2t_kernel, seq_len=T, batch_pad=Bp, hidden_pad=Hp),
        out_shape=jax.ShapeDtypeStruct((T * Bp, Op), f32),
        grid_spec=pltpu.PrefetchScalarGridSpec(
            num_scalar_prefetch=0,
            grid=(1,),
            in_specs=in_specs,
            out_specs=out_specs,
            scratch_shapes=[pltpu.VMEM((T * Bp, 3 * Hp), f32),   # gi0 slab
                            pltpu.VMEM((T * Bp, Hp), f32)],      # h2 slab
        ),
        compiler_params=pltpu.CompilerParams(
            dimension_semantics=("arbitrary",)),
    )(*operands)

    y = y_flat.reshape(T, Bp, Op)[:, :B, :O]       # drop batch/output padding
    return jnp.transpose(y, (1, 0, 2))             # back to batch_first (B, T, O)


def init_params(key, input_size, hidden_size, intermediate_size, output_size):
    """Deterministic init mimicking PyTorch's U(-1/sqrt(H), 1/sqrt(H)).

    Weights are stored pre-transposed for right-multiplication (x @ W)."""
    ks = jax.random.split(key, 16)
    s = 1.0 / jnp.sqrt(hidden_size)
    u = lambda k, shape: jax.random.uniform(k, shape, jnp.float32, -s, s)
    return {
        # GRU layer 0:  torch weight_ih_l0 (3H, D_in) -> stored (D_in, 3H)
        "w_ih0": u(ks[0], (input_size, 3 * hidden_size)),
        "w_hh0": u(ks[1], (hidden_size, 3 * hidden_size)),
        "b_ih0": u(ks[2], (1, 3 * hidden_size)),
        "b_hh0": u(ks[3], (1, 3 * hidden_size)),
        # GRU layer 1
        "w_ih1": u(ks[4], (hidden_size, 3 * hidden_size)),
        "w_hh1": u(ks[5], (hidden_size, 3 * hidden_size)),
        "b_ih1": u(ks[6], (1, 3 * hidden_size)),
        "b_hh1": u(ks[7], (1, 3 * hidden_size)),
        # fc1: (H -> I), fc2: (I -> O), stored (in, out)
        "w_fc1": u(ks[8], (hidden_size, intermediate_size)),
        "b_fc1": u(ks[9], (1, intermediate_size)),
        "w_fc2": u(ks[10], (intermediate_size, output_size)),
        "b_fc2": u(ks[11], (1, output_size)),
    }


def reference_forward(x, params):
    """Pure-JAX reference matching torch.nn.GRU + fc stack (eval mode)."""
    B, T, _ = x.shape
    H = params["w_hh0"].shape[0]

    def cell(xt, h, wih, whh, bih, bhh):
        gi = xt @ wih + bih
        gh = h @ whh + bhh
        r = jax.nn.sigmoid(gi[:, :H] + gh[:, :H])
        z = jax.nn.sigmoid(gi[:, H:2 * H] + gh[:, H:2 * H])
        n = jnp.tanh(gi[:, 2 * H:] + r * gh[:, 2 * H:])
        return (1.0 - z) * n + z * h

    h1 = jnp.zeros((B, H), jnp.float32)
    h2 = jnp.zeros((B, H), jnp.float32)
    outs = []
    for t in range(T):
        h1 = cell(x[:, t, :], h1, params["w_ih0"], params["w_hh0"],
                  params["b_ih0"], params["b_hh0"])
        h2 = cell(h1, h2, params["w_ih1"], params["w_hh1"],
                  params["b_ih1"], params["b_hh1"])
        outs.append(h2)
    gru_out = jnp.stack(outs, axis=1)                       # (B, T, H)
    f1 = jnp.maximum(gru_out @ params["w_fc1"] + params["b_fc1"], 0.0)
    return f1 @ params["w_fc2"] + params["b_fc2"]


if __name__ == "__main__":
    # Small shapes consistent with the module's constructor signature.
    INPUT_SIZE, HIDDEN, INTER, OUTPUT = 26, 32, 32, 40
    BATCH, SEQ = 2, 8

    key = jax.random.PRNGKey(0)
    k_x, k_p = jax.random.split(key)
    x = jax.random.normal(k_x, (BATCH, SEQ, INPUT_SIZE), jnp.float32)
    params = init_params(k_p, INPUT_SIZE, HIDDEN, INTER, OUTPUT)

    out = jax.block_until_ready(speech_to_text_forward(x, params))
    ref = reference_forward(x, params)

    assert out.shape == (BATCH, SEQ, OUTPUT), out.shape
    max_err = float(jnp.max(jnp.abs(out - ref)))
    assert jnp.allclose(out, ref, rtol=1e-3, atol=1e-3), f"mismatch, max_err={max_err}"

    print("KERNEL_OK")
</pallas_src>

<mosaic_0001>
module attributes {stable_mosaic.version = 11 : i64} {
  func.func @_s2t_kernel(%arg0: i32, %arg1: memref<64x128xf32, #tpu.memory_space<vmem>>, %arg2: memref<128x384xf32, #tpu.memory_space<vmem>>, %arg3: memref<1x384xf32, #tpu.memory_space<vmem>>, %arg4: memref<128x384xf32, #tpu.memory_space<vmem>>, %arg5: memref<1x384xf32, #tpu.memory_space<vmem>>, %arg6: memref<128x384xf32, #tpu.memory_space<vmem>>, %arg7: memref<1x384xf32, #tpu.memory_space<vmem>>, %arg8: memref<128x384xf32, #tpu.memory_space<vmem>>, %arg9: memref<1x384xf32, #tpu.memory_space<vmem>>, %arg10: memref<128x128xf32, #tpu.memory_space<vmem>>, %arg11: memref<1x128xf32, #tpu.memory_space<vmem>>, %arg12: memref<128x128xf32, #tpu.memory_space<vmem>>, %arg13: memref<1x128xf32, #tpu.memory_space<vmem>>, %arg14: memref<64x128xf32, #tpu.memory_space<vmem>>, %arg15: memref<64x384xf32, #tpu.memory_space<vmem>>, %arg16: memref<64x128xf32, #tpu.memory_space<vmem>>) attributes {dimension_semantics = [#tpu.dimension_semantics<arbitrary>], iteration_bounds = array<i64: 1>, scalar_prefetch = 0 : i64, scratch_operands = 2 : i64, tpu.core_type = #tpu.core_type<tc>, window_params = [{pipeline_mode = #tpu.pipeline_mode<synchronous>, transform_indices = @transform_0, window_bounds = array<i64: 64, 128>}, {pipeline_mode = #tpu.pipeline_mode<synchronous>, transform_indices = @transform_1, window_bounds = array<i64: 128, 384>}, {pipeline_mode = #tpu.pipeline_mode<synchronous>, transform_indices = @transform_2, window_bounds = array<i64: 1, 384>}, {pipeline_mode = #tpu.pipeline_mode<synchronous>, transform_indices = @transform_3, window_bounds = array<i64: 128, 384>}, {pipeline_mode = #tpu.pipeline_mode<synchronous>, transform_indices = @transform_4, window_bounds = array<i64: 1, 384>}, {pipeline_mode = #tpu.pipeline_mode<synchronous>, transform_indices = @transform_5, window_bounds = array<i64: 128, 384>}, {pipeline_mode = #tpu.pipeline_mode<synchronous>, transform_indices = @transform_6, window_bounds = array<i64: 1, 384>}, {pipeline_mode = #tpu.pipeline_mode<synchronous>, transform_indices = @transform_7, window_bounds = array<i64: 128, 384>}, {pipeline_mode = #tpu.pipeline_mode<synchronous>, transform_indices = @transform_8, window_bounds = array<i64: 1, 384>}, {pipeline_mode = #tpu.pipeline_mode<synchronous>, transform_indices = @transform_9, window_bounds = array<i64: 128, 128>}, {pipeline_mode = #tpu.pipeline_mode<synchronous>, transform_indices = @transform_10, window_bounds = array<i64: 1, 128>}, {pipeline_mode = #tpu.pipeline_mode<synchronous>, transform_indices = @transform_11, window_bounds = array<i64: 128, 128>}, {pipeline_mode = #tpu.pipeline_mode<synchronous>, transform_indices = @transform_12, window_bounds = array<i64: 1, 128>}, {pipeline_mode = #tpu.pipeline_mode<synchronous>, transform_indices = @transform_13, window_bounds = array<i64: 64, 128>}]} {
    %c0 = arith.constant 0 : index
    %c0_0 = arith.constant 0 : index
    %0 = vector.load %arg1[%c0, %c0_0] : memref<64x128xf32, #tpu.memory_space<vmem>>, vector<64x128xf32>
    %c0_1 = arith.constant 0 : index
    %c0_2 = arith.constant 0 : index
    %1 = vector.load %arg2[%c0_1, %c0_2] : memref<128x384xf32, #tpu.memory_space<vmem>>, vector<128x384xf32>
    %cst = arith.constant dense<0.000000e+00> : vector<64x384xf32>
    %2 = tpu.matmul %0, %1, %cst {dimension_numbers = #tpu.dot_dimension_numbers<[1], [0], [0], [1], [0, 0, 1, 1], [], []>} : vector<64x128xf32>, vector<128x384xf32>, vector<64x384xf32> -> vector<64x384xf32>
    %c0_3 = arith.constant 0 : index
    %c0_4 = arith.constant 0 : index
    %3 = vector.load %arg3[%c0_3, %c0_4] : memref<1x384xf32, #tpu.memory_space<vmem>>, vector<1x384xf32>
    %4 = vector.broadcast %3 : vector<1x384xf32> to vector<64x384xf32>
    %5 = arith.addf %2, %4 : vector<64x384xf32>
    %c0_5 = arith.constant 0 : index
    %c0_6 = arith.constant 0 : index
    %6 = vector.load %arg15[%c0_5, %c0_6] : memref<64x384xf32, #tpu.memory_space<vmem>>, vector<64x384xf32>
    tpu.vector_store %arg15[%c0_5, %c0_6], %5 {strides = array<i32>} : memref<64x384xf32, #tpu.memory_space<vmem>>, vector<64x384xf32>,
    %cst_7 = arith.constant 0.000000e+00 : f32
    %7 = vector.broadcast %cst_7 : f32 to vector<8x128xf32>
    %cst_8 = arith.constant 0.000000e+00 : f32
    %8 = vector.broadcast %cst_8 : f32 to vector<8x128xf32>
    %c0_i32 = arith.constant 0 : i32
    %c8_i32 = arith.constant 8 : i32
    %9 = arith.muli %c0_i32, %c8_i32 : i32
    %10 = tpu.assume_multiple %9, 8 : i32
    %11 = arith.index_cast %10 : i32 to index
    %c0_9 = arith.constant 0 : index
    %12 = vector.load %arg15[%11, %c0_9] : memref<64x384xf32, #tpu.memory_space<vmem>>, vector<8x384xf32>
    %c0_10 = arith.constant 0 : index
    %c0_11 = arith.constant 0 : index
    %13 = vector.load %arg4[%c0_10, %c0_11] : memref<128x384xf32, #tpu.memory_space<vmem>>, vector<128x384xf32>
    %cst_12 = arith.constant dense<0.000000e+00> : vector<8x384xf32>
    %14 = tpu.matmul %7, %13, %cst_12 {dimension_numbers = #tpu.dot_dimension_numbers<[1], [0], [0], [1], [0, 0, 1, 1], [], []>} : vector<8x128xf32>, vector<128x384xf32>, vector<8x384xf32> -> vector<8x384xf32>
    %c0_13 = arith.constant 0 : index
    %c0_14 = arith.constant 0 : index
    %15 = vector.load %arg5[%c0_13, %c0_14] : memref<1x384xf32, #tpu.memory_space<vmem>>, vector<1x384xf32>
    %16 = vector.broadcast %15 : vector<1x384xf32> to vector<8x384xf32>
    %17 = arith.addf %14, %16 : vector<8x384xf32>
    %18 = vector.extract_strided_slice %12 {offsets = [0, 0], sizes = [8, 128], strides = [1, 1]} : vector<8x384xf32> to vector<8x128xf32>
    %19 = vector.extract_strided_slice %17 {offsets = [0, 0], sizes = [8, 128], strides = [1, 1]} : vector<8x384xf32> to vector<8x128xf32>
    %20 = arith.addf %18, %19 : vector<8x128xf32>
    %21 = arith.negf %20 : vector<8x128xf32>
    %22 = math.exp %21 : vector<8x128xf32>
    %cst_15 = arith.constant 1.000000e+00 : f32
    %23 = vector.broadcast %cst_15 : f32 to vector<8x128xf32>
    %24 = arith.addf %23, %22 : vector<8x128xf32>
    %25 = arith.divf %23, %24 : vector<8x128xf32>
    %26 = vector.extract_strided_slice %12 {offsets = [0, 128], sizes = [8, 128], strides = [1, 1]} : vector<8x384xf32> to vector<8x128xf32>
    %27 = vector.extract_strided_slice %17 {offsets = [0, 128], sizes = [8, 128], strides = [1, 1]} : vector<8x384xf32> to vector<8x128xf32>
    %28 = arith.addf %26, %27 : vector<8x128xf32>
    %29 = arith.negf %28 : vector<8x128xf32>
    %30 = math.exp %29 : vector<8x128xf32>
    %cst_16 = arith.constant 1.000000e+00 : f32
    %31 = vector.broadcast %cst_16 : f32 to vector<8x128xf32>
    %32 = arith.addf %31, %30 : vector<8x128xf32>
    %33 = arith.divf %31, %32 : vector<8x128xf32>
    %34 = vector.extract_strided_slice %12 {offsets = [0, 256], sizes = [8, 128], strides = [1, 1]} : vector<8x384xf32> to vector<8x128xf32>
    %35 = vector.extract_strided_slice %17 {offsets = [0, 256], sizes = [8, 128], strides = [1, 1]} : vector<8x384xf32> to vector<8x128xf32>
    %36 = arith.mulf %25, %35 : vector<8x128xf32>
    %37 = arith.addf %34, %36 : vector<8x128xf32>
    %38 = math.tanh %37 : vector<8x128xf32>
    %cst_17 = arith.constant 1.000000e+00 : f32
    %39 = vector.broadcast %cst_17 : f32 to vector<8x128xf32>
    %40 = arith.subf %39, %33 : vector<8x128xf32>
    %41 = arith.mulf %40, %38 : vector<8x128xf32>
    %42 = arith.mulf %33, %7 : vector<8x128xf32>
    %43 = arith.addf %41, %42 : vector<8x128xf32>
    %c0_18 = arith.constant 0 : index
    %c0_19 = arith.constant 0 : index
    %44 = vector.load %arg6[%c0_18, %c0_19] : memref<128x384xf32, #tpu.memory_space<vmem>>, vector<128x384xf32>
    %cst_20 = arith.constant dense<0.000000e+00> : vector<8x384xf32>
    %45 = tpu.matmul %43, %44, %cst_20 {dimension_numbers = #tpu.dot_dimension_numbers<[1], [0], [0], [1], [0, 0, 1, 1], [], []>} : vector<8x128xf32>, vector<128x384xf32>, vector<8x384xf32> -> vector<8x384xf32>
    %c0_21 = arith.constant 0 : index
    %c0_22 = arith.constant 0 : index
    %46 = vector.load %arg7[%c0_21, %c0_22] : memref<1x384xf32, #tpu.memory_space<vmem>>, vector<1x384xf32>
    %47 = vector.broadcast %46 : vector<1x384xf32> to vector<8x384xf32>
    %48 = arith.addf %45, %47 : vector<8x384xf32>
    %c0_23 = arith.constant 0 : index
    %c0_24 = arith.constant 0 : index
    %49 = vector.load %arg8[%c0_23, %c0_24] : memref<128x384xf32, #tpu.memory_space<vmem>>, vector<128x384xf32>
    %cst_25 = arith.constant dense<0.000000e+00> : vector<8x384xf32>
    %50 = tpu.matmul %8, %49, %cst_25 {dimension_numbers = #tpu.dot_dimension_numbers<[1], [0], [0], [1], [0, 0, 1, 1], [], []>} : vector<8x128xf32>, vector<128x384xf32>, vector<8x384xf32> -> vector<8x384xf32>
    %c0_26 = arith.constant 0 : index
    %c0_27 = arith.constant 0 : index
    %51 = vector.load %arg9[%c0_26, %c0_27] : memref<1x384xf32, #tpu.memory_space<vmem>>, vector<1x384xf32>
    %52 = vector.broadcast %51 : vector<1x384xf32> to vector<8x384xf32>
    %53 = arith.addf %50, %52 : vector<8x384xf32>
    %54 = vector.extract_strided_slice %48 {offsets = [0, 0], sizes = [8, 128], strides = [1, 1]} : vector<8x384xf32> to vector<8x128xf32>
    %55 = vector.extract_strided_slice %53 {offsets = [0, 0], sizes = [8, 128], strides = [1, 1]} : vector<8x384xf32> to vector<8x128xf32>
    %56 = arith.addf %54, %55 : vector<8x128xf32>
    %57 = arith.negf %56 : vector<8x128xf32>
    %58 = math.exp %57 : vector<8x128xf32>
    %cst_28 = arith.constant 1.000000e+00 : f32
    %59 = vector.broadcast %cst_28 : f32 to vector<8x128xf32>
    %60 = arith.addf %59, %58 : vector<8x128xf32>
    %61 = arith.divf %59, %60 : vector<8x128xf32>
    %62 = vector.extract_strided_slice %48 {offsets = [0, 128], sizes = [8, 128], strides = [1, 1]} : vector<8x384xf32> to vector<8x128xf32>
    %63 = vector.extract_strided_slice %53 {offsets = [0, 128], sizes = [8, 128], strides = [1, 1]} : vector<8x384xf32> to vector<8x128xf32>
    %64 = arith.addf %62, %63 : vector<8x128xf32>
    %65 = arith.negf %64 : vector<8x128xf32>
    %66 = math.exp %65 : vector<8x128xf32>
    %cst_29 = arith.constant 1.000000e+00 : f32
    %67 = vector.broadcast %cst_29 : f32 to vector<8x128xf32>
    %68 = arith.addf %67, %66 : vector<8x128xf32>
    %69 = arith.divf %67, %68 : vector<8x128xf32>
    %70 = vector.extract_strided_slice %48 {offsets = [0, 256], sizes = [8, 128], strides = [1, 1]} : vector<8x384xf32> to vector<8x128xf32>
    %71 = vector.extract_strided_slice %53 {offsets = [0, 256], sizes = [8, 128], strides = [1, 1]} : vector<8x384xf32> to vector<8x128xf32>
    %72 = arith.mulf %61, %71 : vector<8x128xf32>
    %73 = arith.addf %70, %72 : vector<8x128xf32>
    %74 = math.tanh %73 : vector<8x128xf32>
    %cst_30 = arith.constant 1.000000e+00 : f32
    %75 = vector.broadcast %cst_30 : f32 to vector<8x128xf32>
    %76 = arith.subf %75, %69 : vector<8x128xf32>
    %77 = arith.mulf %76, %74 : vector<8x128xf32>
    %78 = arith.mulf %69, %8 : vector<8x128xf32>
    %79 = arith.addf %77, %78 : vector<8x128xf32>
    %80 = arith.index_cast %10 : i32 to index
    %c0_31 = arith.constant 0 : index
    %81 = vector.load %arg16[%80, %c0_31] : memref<64x128xf32, #tpu.memory_space<vmem>>, vector<8x128xf32>
    tpu.vector_store %arg16[%80, %c0_31], %79 {strides = array<i32>} : memref<64x128xf32, #tpu.memory_space<vmem>>, vector<8x128xf32>,
    %c1_i32 = arith.constant 1 : i32
    %c8_i32_32 = arith.constant 8 : i32
    %82 = arith.muli %c1_i32, %c8_i32_32 : i32
    %83 = tpu.assume_multiple %82, 8 : i32
    %84 = arith.index_cast %83 : i32 to index
    %c0_33 = arith.constant 0 : index
    %85 = vector.load %arg15[%84, %c0_33] : memref<64x384xf32, #tpu.memory_space<vmem>>, vector<8x384xf32>
    %c0_34 = arith.constant 0 : index
    %c0_35 = arith.constant 0 : index
    %86 = vector.load %arg4[%c0_34, %c0_35] : memref<128x384xf32, #tpu.memory_space<vmem>>, vector<128x384xf32>
    %cst_36 = arith.constant dense<0.000000e+00> : vector<8x384xf32>
    %87 = tpu.matmul %43, %86, %cst_36 {dimension_numbers = #tpu.dot_dimension_numbers<[1], [0], [0], [1], [0, 0, 1, 1], [], []>} : vector<8x128xf32>, vector<128x384xf32>, vector<8x384xf32> -> vector<8x384xf32>
    %c0_37 = arith.constant 0 : index
    %c0_38 = arith.constant 0 : index
    %88 = vector.load %arg5[%c0_37, %c0_38] : memref<1x384xf32, #tpu.memory_space<vmem>>, vector<1x384xf32>
    %89 = vector.broadcast %88 : vector<1x384xf32> to vector<8x384xf32>
    %90 = arith.addf %87, %89 : vector<8x384xf32>
    %91 = vector.extract_strided_slice %85 {offsets = [0, 0], sizes = [8, 128], strides = [1, 1]} : vector<8x384xf32> to vector<8x128xf32>
    %92 = vector.extract_strided_slice %90 {offsets = [0, 0], sizes = [8, 128], strides = [1, 1]} : vector<8x384xf32> to vector<8x128xf32>
    %93 = arith.addf %91, %92 : vector<8x128xf32>
    %94 = arith.negf %93 : vector<8x128xf32>
    %95 = math.exp %94 : vector<8x128xf32>
    %cst_39 = arith.constant 1.000000e+00 : f32
    %96 = vector.broadcast %cst_39 : f32 to vector<8x128xf32>
    %97 = arith.addf %96, %95 : vector<8x128xf32>
    %98 = arith.divf %96, %97 : vector<8x128xf32>
    %99 = vector.extract_strided_slice %85 {offsets = [0, 128], sizes = [8, 128], strides = [1, 1]} : vector<8x384xf32> to vector<8x128xf32>
    %100 = vector.extract_strided_slice %90 {offsets = [0, 128], sizes = [8, 128], strides = [1, 1]} : vector<8x384xf32> to vector<8x128xf32>
    %101 = arith.addf %99, %100 : vector<8x128xf32>
    %102 = arith.negf %101 : vector<8x128xf32>
    %103 = math.exp %102 : vector<8x128xf32>
    %cst_40 = arith.constant 1.000000e+00 : f32
    %104 = vector.broadcast %cst_40 : f32 to vector<8x128xf32>
    %105 = arith.addf %104, %103 : vector<8x128xf32>
    %106 = arith.divf %104, %105 : vector<8x128xf32>
    %107 = vector.extract_strided_slice %85 {offsets = [0, 256], sizes = [8, 128], strides = [1, 1]} : vector<8x384xf32> to vector<8x128xf32>
    %108 = vector.extract_strided_slice %90 {offsets = [0, 256], sizes = [8, 128], strides = [1, 1]} : vector<8x384xf32> to vector<8x128xf32>
    %109 = arith.mulf %98, %108 : vector<8x128xf32>
    %110 = arith.addf %107, %109 : vector<8x128xf32>
    %111 = math.tanh %110 : vector<8x128xf32>
    %cst_41 = arith.constant 1.000000e+00 : f32
    %112 = vector.broadcast %cst_41 : f32 to vector<8x128xf32>
    %113 = arith.subf %112, %106 : vector<8x128xf32>
    %114 = arith.mulf %113, %111 : vector<8x128xf32>
    %115 = arith.mulf %106, %43 : vector<8x128xf32>
    %116 = arith.addf %114, %115 : vector<8x128xf32>
    %c0_42 = arith.constant 0 : index
    %c0_43 = arith.constant 0 : index
    %117 = vector.load %arg6[%c0_42, %c0_43] : memref<128x384xf32, #tpu.memory_space<vmem>>, vector<128x384xf32>
    %cst_44 = arith.constant dense<0.000000e+00> : vector<8x384xf32>
    %118 = tpu.matmul %116, %117, %cst_44 {dimension_numbers = #tpu.dot_dimension_numbers<[1], [0], [0], [1], [0, 0, 1, 1], [], []>} : vector<8x128xf32>, vector<128x384xf32>, vector<8x384xf32> -> vector<8x384xf32>
    %c0_45 = arith.constant 0 : index
    %c0_46 = arith.constant 0 : index
    %119 = vector.load %arg7[%c0_45, %c0_46] : memref<1x384xf32, #tpu.memory_space<vmem>>, vector<1x384xf32>
    %120 = vector.broadcast %119 : vector<1x384xf32> to vector<8x384xf32>
    %121 = arith.addf %118, %120 : vector<8x384xf32>
    %c0_47 = arith.constant 0 : index
    %c0_48 = arith.constant 0 : index
    %122 = vector.load %arg8[%c0_47, %c0_48] : memref<128x384xf32, #tpu.memory_space<vmem>>, vector<128x384xf32>
    %cst_49 = arith.constant dense<0.000000e+00> : vector<8x384xf32>
    %123 = tpu.matmul %79, %122, %cst_49 {dimension_numbers = #tpu.dot_dimension_numbers<[1], [0], [0], [1], [0, 0, 1, 1], [], []>} : vector<8x128xf32>, vector<128x384xf32>, vector<8x384xf32> -> vector<8x384xf32>
    %c0_50 = arith.constant 0 : index
    %c0_51 = arith.constant 0 : index
    %124 = vector.load %arg9[%c0_50, %c0_51] : memref<1x384xf32, #tpu.memory_space<vmem>>, vector<1x384xf32>
    %125 = vector.broadcast %124 : vector<1x384xf32> to vector<8x384xf32>
    %126 = arith.addf %123, %125 : vector<8x384xf32>
    %127 = vector.extract_strided_slice %121 {offsets = [0, 0], sizes = [8, 128], strides = [1, 1]} : vector<8x384xf32> to vector<8x128xf32>
    %128 = vector.extract_strided_slice %126 {offsets = [0, 0], sizes = [8, 128], strides = [1, 1]} : vector<8x384xf32> to vector<8x128xf32>
    %129 = arith.addf %127, %128 : vector<8x128xf32>
    %130 = arith.negf %129 : vector<8x128xf32>
    %131 = math.exp %130 : vector<8x128xf32>
    %cst_52 = arith.constant 1.000000e+00 : f32
    %132 = vector.broadcast %cst_52 : f32 to vector<8x128xf32>
    %133 = arith.addf %132, %131 : vector<8x128xf32>
    %134 = arith.divf %132, %133 : vector<8x128xf32>
    %135 = vector.extract_strided_slice %121 {offsets = [0, 128], sizes = [8, 128], strides = [1, 1]} : vector<8x384xf32> to vector<8x128xf32>
    %136 = vector.extract_strided_slice %126 {offsets = [0, 128], sizes = [8, 128], strides = [1, 1]} : vector<8x384xf32> to vector<8x128xf32>
    %137 = arith.addf %135, %136 : vector<8x128xf32>
    %138 = arith.negf %137 : vector<8x128xf32>
    %139 = math.exp %138 : vector<8x128xf32>
    %cst_53 = arith.constant 1.000000e+00 : f32
    %140 = vector.broadcast %cst_53 : f32 to vector<8x128xf32>
    %141 = arith.addf %140, %139 : vector<8x128xf32>
    %142 = arith.divf %140, %141 : vector<8x128xf32>
    %143 = vector.extract_strided_slice %121 {offsets = [0, 256], sizes = [8, 128], strides = [1, 1]} : vector<8x384xf32> to vector<8x128xf32>
    %144 = vector.extract_strided_slice %126 {offsets = [0, 256], sizes = [8, 128], strides = [1, 1]} : vector<8x384xf32> to vector<8x128xf32>
    %145 = arith.mulf %134, %144 : vector<8x128xf32>
    %146 = arith.addf %143, %145 : vector<8x128xf32>
    %147 = math.tanh %146 : vector<8x128xf32>
    %cst_54 = arith.constant 1.000000e+00 : f32
    %148 = vector.broadcast %cst_54 : f32 to vector<8x128xf32>
    %149 = arith.subf %148, %142 : vector<8x128xf32>
    %150 = arith.mulf %149, %147 : vector<8x128xf32>
    %151 = arith.mulf %142, %79 : vector<8x128xf32>
    %152 = arith.addf %150, %151 : vector<8x128xf32>
    %153 = arith.index_cast %83 : i32 to index
    %c0_55 = arith.constant 0 : index
    %154 = vector.load %arg16[%153, %c0_55] : memref<64x128xf32, #tpu.memory_space<vmem>>, vector<8x128xf32>
    tpu.vector_store %arg16[%153, %c0_55], %152 {strides = array<i32>} : memref<64x128xf32, #tpu.memory_space<vmem>>, vector<8x128xf32>,
    %c2_i32 = arith.constant 2 : i32
    %c8_i32_56 = arith.constant 8 : i32
    %155 = arith.muli %c2_i32, %c8_i32_56 : i32
    %156 = tpu.assume_multiple %155, 8 : i32
    %157 = arith.index_cast %156 : i32 to index
    %c0_57 = arith.constant 0 : index
    %158 = vector.load %arg15[%157, %c0_57] : memref<64x384xf32, #tpu.memory_space<vmem>>, vector<8x384xf32>
    %c0_58 = arith.constant 0 : index
    %c0_59 = arith.constant 0 : index
    %159 = vector.load %arg4[%c0_58, %c0_59] : memref<128x384xf32, #tpu.memory_space<vmem>>, vector<128x384xf32>
    %cst_60 = arith.constant dense<0.000000e+00> : vector<8x384xf32>
    %160 = tpu.matmul %116, %159, %cst_60 {dimension_numbers = #tpu.dot_dimension_numbers<[1], [0], [0], [1], [0, 0, 1, 1], [], []>} : vector<8x128xf32>, vector<128x384xf32>, vector<8x384xf32> -> vector<8x384xf32>
    %c0_61 = arith.constant 0 : index
    %c0_62 = arith.constant 0 : index
    %161 = vector.load %arg5[%c0_61, %c0_62] : memref<1x384xf32, #tpu.memory_space<vmem>>, vector<1x384xf32>
    %162 = vector.broadcast %161 : vector<1x384xf32> to vector<8x384xf32>
    %163 = arith.addf %160, %162 : vector<8x384xf32>
    %164 = vector.extract_strided_slice %158 {offsets = [0, 0], sizes = [8, 128], strides = [1, 1]} : vector<8x384xf32> to vector<8x128xf32>
    %165 = vector.extract_strided_slice %163 {offsets = [0, 0], sizes = [8, 128], strides = [1, 1]} : vector<8x384xf32> to vector<8x128xf32>
    %166 = arith.addf %164, %165 : vector<8x128xf32>
    %167 = arith.negf %166 : vector<8x128xf32>
    %168 = math.exp %167 : vector<8x128xf32>
    %cst_63 = arith.constant 1.000000e+00 : f32
    %169 = vector.broadcast %cst_63 : f32 to vector<8x128xf32>
    %170 = arith.addf %169, %168 : vector<8x128xf32>
    %171 = arith.divf %169, %170 : vector<8x128xf32>
    %172 = vector.extract_strided_slice %158 {offsets = [0, 128], sizes = [8, 128], strides = [1, 1]} : vector<8x384xf32> to vector<8x128xf32>
    %173 = vector.extract_strided_slice %163 {offsets = [0, 128], sizes = [8, 128], strides = [1, 1]} : vector<8x384xf32> to vector<8x128xf32>
    %174 = arith.addf %172, %173 : vector<8x128xf32>
    %175 = arith.negf %174 : vector<8x128xf32>
    %176 = math.exp %175 : vector<8x128xf32>
    %cst_64 = arith.constant 1.000000e+00 : f32
    %177 = vector.broadcast %cst_64 : f32 to vector<8x128xf32>
    %178 = arith.addf %177, %176 : vector<8x128xf32>
    %179 = arith.divf %177, %178 : vector<8x128xf32>
    %180 = vector.extract_strided_slice %158 {offsets = [0, 256], sizes = [8, 128], strides = [1, 1]} : vector<8x384xf32> to vector<8x128xf32>
    %181 = vector.extract_strided_slice %163 {offsets = [0, 256], sizes = [8, 128], strides = [1, 1]} : vector<8x384xf32> to vector<8x128xf32>
    %182 = arith.mulf %171, %181 : vector<8x128xf32>
    %183 = arith.addf %180, %182 : vector<8x128xf32>
    %184 = math.tanh %183 : vector<8x128xf32>
    %cst_65 = arith.constant 1.000000e+00 : f32
    %185 = vector.broadcast %cst_65 : f32 to vector<8x128xf32>
    %186 = arith.subf %185, %179 : vector<8x128xf32>
    %187 = arith.mulf %186, %184 : vector<8x128xf32>
    %188 = arith.mulf %179, %116 : vector<8x128xf32>
    %189 = arith.addf %187, %188 : vector<8x128xf32>
    %c0_66 = arith.constant 0 : index
    %c0_67 = arith.constant 0 : index
    %190 = vector.load %arg6[%c0_66, %c0_67] : memref<128x384xf32, #tpu.memory_space<vmem>>, vector<128x384xf32>
    %cst_68 = arith.constant dense<0.000000e+00> : vector<8x384xf32>
    %191 = tpu.matmul %189, %190, %cst_68 {dimension_numbers = #tpu.dot_dimension_numbers<[1], [0], [0], [1], [0, 0, 1, 1], [], []>} : vector<8x128xf32>, vector<128x384xf32>, vector<8x384xf32> -> vector<8x384xf32>
    %c0_69 = arith.constant 0 : index
    %c0_70 = arith.constant 0 : index
    %192 = vector.load %arg7[%c0_69, %c0_70] : memref<1x384xf32, #tpu.memory_space<vmem>>, vector<1x384xf32>
    %193 = vector.broadcast %192 : vector<1x384xf32> to vector<8x384xf32>
    %194 = arith.addf %191, %193 : vector<8x384xf32>
    %c0_71 = arith.constant 0 : index
    %c0_72 = arith.constant 0 : index
    %195 = vector.load %arg8[%c0_71, %c0_72] : memref<128x384xf32, #tpu.memory_space<vmem>>, vector<128x384xf32>
    %cst_73 = arith.constant dense<0.000000e+00> : vector<8x384xf32>
    %196 = tpu.matmul %152, %195, %cst_73 {dimension_numbers = #tpu.dot_dimension_numbers<[1], [0], [0], [1], [0, 0, 1, 1], [], []>} : vector<8x128xf32>, vector<128x384xf32>, vector<8x384xf32> -> vector<8x384xf32>
    %c0_74 = arith.constant 0 : index
    %c0_75 = arith.constant 0 : index
    %197 = vector.load %arg9[%c0_74, %c0_75] : memref<1x384xf32, #tpu.memory_space<vmem>>, vector<1x384xf32>
    %198 = vector.broadcast %197 : vector<1x384xf32> to vector<8x384xf32>
    %199 = arith.addf %196, %198 : vector<8x384xf32>
    %200 = vector.extract_strided_slice %194 {offsets = [0, 0], sizes = [8, 128], strides = [1, 1]} : vector<8x384xf32> to vector<8x128xf32>
    %201 = vector.extract_strided_slice %199 {offsets = [0, 0], sizes = [8, 128], strides = [1, 1]} : vector<8x384xf32> to vector<8x128xf32>
    %202 = arith.addf %200, %201 : vector<8x128xf32>
    %203 = arith.negf %202 : vector<8x128xf32>
    %204 = math.exp %203 : vector<8x128xf32>
    %cst_76 = arith.constant 1.000000e+00 : f32
    %205 = vector.broadcast %cst_76 : f32 to vector<8x128xf32>
    %206 = arith.addf %205, %204 : vector<8x128xf32>
    %207 = arith.divf %205, %206 : vector<8x128xf32>
    %208 = vector.extract_strided_slice %194 {offsets = [0, 128], sizes = [8, 128], strides = [1, 1]} : vector<8x384xf32> to vector<8x128xf32>
    %209 = vector.extract_strided_slice %199 {offsets = [0, 128], sizes = [8, 128], strides = [1, 1]} : vector<8x384xf32> to vector<8x128xf32>
    %210 = arith.addf %208, %209 : vector<8x128xf32>
    %211 = arith.negf %210 : vector<8x128xf32>
    %212 = math.exp %211 : vector<8x128xf32>
    %cst_77 = arith.constant 1.000000e+00 : f32
    %213 = vector.broadcast %cst_77 : f32 to vector<8x128xf32>
    %214 = arith.addf %213, %212 : vector<8x128xf32>
    %215 = arith.divf %213, %214 : vector<8x128xf32>
    %216 = vector.extract_strided_slice %194 {offsets = [0, 256], sizes = [8, 128], strides = [1, 1]} : vector<8x384xf32> to vector<8x128xf32>
    %217 = vector.extract_strided_slice %199 {offsets = [0, 256], sizes = [8, 128], strides = [1, 1]} : vector<8x384xf32> to vector<8x128xf32>
    %218 = arith.mulf %207, %217 : vector<8x128xf32>
    %219 = arith.addf %216, %218 : vector<8x128xf32>
    %220 = math.tanh %219 : vector<8x128xf32>
    %cst_78 = arith.constant 1.000000e+00 : f32
    %221 = vector.broadcast %cst_78 : f32 to vector<8x128xf32>
    %222 = arith.subf %221, %215 : vector<8x128xf32>
    %223 = arith.mulf %222, %220 : vector<8x128xf32>
    %224 = arith.mulf %215, %152 : vector<8x128xf32>
    %225 = arith.addf %223, %224 : vector<8x128xf32>
    %226 = arith.index_cast %156 : i32 to index
    %c0_79 = arith.constant 0 : index
    %227 = vector.load %arg16[%226, %c0_79] : memref<64x128xf32, #tpu.memory_space<vmem>>, vector<8x128xf32>
    tpu.vector_store %arg16[%226, %c0_79], %225 {strides = array<i32>} : memref<64x128xf32, #tpu.memory_space<vmem>>, vector<8x128xf32>,
    %c3_i32 = arith.constant 3 : i32
    %c8_i32_80 = arith.constant 8 : i32
    %228 = arith.muli %c3_i32, %c8_i32_80 : i32
    %229 = tpu.assume_multiple %228, 8 : i32
    %230 = arith.index_cast %229 : i32 to index
    %c0_81 = arith.constant 0 : index
    %231 = vector.load %arg15[%230, %c0_81] : memref<64x384xf32, #tpu.memory_space<vmem>>, vector<8x384xf32>
    %c0_82 = arith.constant 0 : index
    %c0_83 = arith.constant 0 : index
    %232 = vector.load %arg4[%c0_82, %c0_83] : memref<128x384xf32, #tpu.memory_space<vmem>>, vector<128x384xf32>
    %cst_84 = arith.constant dense<0.000000e+00> : vector<8x384xf32>
    %233 = tpu.matmul %189, %232, %cst_84 {dimension_numbers = #tpu.dot_dimension_numbers<[1], [0], [0], [1], [0, 0, 1, 1], [], []>} : vector<8x128xf32>, vector<128x384xf32>, vector<8x384xf32> -> vector<8x384xf32>
    %c0_85 = arith.constant 0 : index
    %c0_86 = arith.constant 0 : index
    %234 = vector.load %arg5[%c0_85, %c0_86] : memref<1x384xf32, #tpu.memory_space<vmem>>, vector<1x384xf32>
    %235 = vector.broadcast %234 : vector<1x384xf32> to vector<8x384xf32>
    %236 = arith.addf %233, %235 : vector<8x384xf32>
    %237 = vector.extract_strided_slice %231 {offsets = [0, 0], sizes = [8, 128], strides = [1, 1]} : vector<8x384xf32> to vector<8x128xf32>
    %238 = vector.extract_strided_slice %236 {offsets = [0, 0], sizes = [8, 128], strides = [1, 1]} : vector<8x384xf32> to vector<8x128xf32>
    %239 = arith.addf %237, %238 : vector<8x128xf32>
    %240 = arith.negf %239 : vector<8x128xf32>
    %241 = math.exp %240 : vector<8x128xf32>
    %cst_87 = arith.constant 1.000000e+00 : f32
    %242 = vector.broadcast %cst_87 : f32 to vector<8x128xf32>
    %243 = arith.addf %242, %241 : vector<8x128xf32>
    %244 = arith.divf %242, %243 : vector<8x128xf32>
    %245 = vector.extract_strided_slice %231 {offsets = [0, 128], sizes = [8, 128], strides = [1, 1]} : vector<8x384xf32> to vector<8x128xf32>
    %246 = vector.extract_strided_slice %236 {offsets = [0, 128], sizes = [8, 128], strides = [1, 1]} : vector<8x384xf32> to vector<8x128xf32>
    %247 = arith.addf %245, %246 : vector<8x128xf32>
    %248 = arith.negf %247 : vector<8x128xf32>
    %249 = math.exp %248 : vector<8x128xf32>
    %cst_88 = arith.constant 1.000000e+00 : f32
    %250 = vector.broadcast %cst_88 : f32 to vector<8x128xf32>
    %251 = arith.addf %250, %249 : vector<8x128xf32>
    %252 = arith.divf %250, %251 : vector<8x128xf32>
    %253 = vector.extract_strided_slice %231 {offsets = [0, 256], sizes = [8, 128], strides = [1, 1]} : vector<8x384xf32> to vector<8x128xf32>
    %254 = vector.extract_strided_slice %236 {offsets = [0, 256], sizes = [8, 128], strides = [1, 1]} : vector<8x384xf32> to vector<8x128xf32>
    %255 = arith.mulf %244, %254 : vector<8x128xf32>
    %256 = arith.addf %253, %255 : vector<8x128xf32>
    %257 = math.tanh %256 : vector<8x128xf32>
    %cst_89 = arith.constant 1.000000e+00 : f32
    %258 = vector.broadcast %cst_89 : f32 to vector<8x128xf32>
    %259 = arith.subf %258, %252 : vector<8x128xf32>
    %260 = arith.mulf %259, %257 : vector<8x128xf32>
    %261 = arith.mulf %252, %189 : vector<8x128xf32>
    %262 = arith.addf %260, %261 : vector<8x128xf32>
    %c0_90 = arith.constant 0 : index
    %c0_91 = arith.constant 0 : index
    %263 = vector.load %arg6[%c0_90, %c0_91] : memref<128x384xf32, #tpu.memory_space<vmem>>, vector<128x384xf32>
    %cst_92 = arith.constant dense<0.000000e+00> : vector<8x384xf32>
    %264 = tpu.matmul %262, %263, %cst_92 {dimension_numbers = #tpu.dot_dimension_numbers<[1], [0], [0], [1], [0, 0, 1, 1], [], []>} : vector<8x128xf32>, vector<128x384xf32>, vector<8x384xf32> -> vector<8x384xf32>
    %c0_93 = arith.constant 0 : index
    %c0_94 = arith.constant 0 : index
    %265 = vector.load %arg7[%c0_93, %c0_94] : memref<1x384xf32, #tpu.memory_space<vmem>>, vector<1x384xf32>
    %266 = vector.broadcast %265 : vector<1x384xf32> to vector<8x384xf32>
    %267 = arith.addf %264, %266 : vector<8x384xf32>
    %c0_95 = arith.constant 0 : index
    %c0_96 = arith.constant 0 : index
    %268 = vector.load %arg8[%c0_95, %c0_96] : memref<128x384xf32, #tpu.memory_space<vmem>>, vector<128x384xf32>
    %cst_97 = arith.constant dense<0.000000e+00> : vector<8x384xf32>
    %269 = tpu.matmul %225, %268, %cst_97 {dimension_numbers = #tpu.dot_dimension_numbers<[1], [0], [0], [1], [0, 0, 1, 1], [], []>} : vector<8x128xf32>, vector<128x384xf32>, vector<8x384xf32> -> vector<8x384xf32>
    %c0_98 = arith.constant 0 : index
    %c0_99 = arith.constant 0 : index
    %270 = vector.load %arg9[%c0_98, %c0_99] : memref<1x384xf32, #tpu.memory_space<vmem>>, vector<1x384xf32>
    %271 = vector.broadcast %270 : vector<1x384xf32> to vector<8x384xf32>
    %272 = arith.addf %269, %271 : vector<8x384xf32>
    %273 = vector.extract_strided_slice %267 {offsets = [0, 0], sizes = [8, 128], strides = [1, 1]} : vector<8x384xf32> to vector<8x128xf32>
    %274 = vector.extract_strided_slice %272 {offsets = [0, 0], sizes = [8, 128], strides = [1, 1]} : vector<8x384xf32> to vector<8x128xf32>
    %275 = arith.addf %273, %274 : vector<8x128xf32>
    %276 = arith.negf %275 : vector<8x128xf32>
    %277 = math.exp %276 : vector<8x128xf32>
    %cst_100 = arith.constant 1.000000e+00 : f32
    %278 = vector.broadcast %cst_100 : f32 to vector<8x128xf32>
    %279 = arith.addf %278, %277 : vector<8x128xf32>
    %280 = arith.divf %278, %279 : vector<8x128xf32>
    %281 = vector.extract_strided_slice %267 {offsets = [0, 128], sizes = [8, 128], strides = [1, 1]} : vector<8x384xf32> to vector<8x128xf32>
    %282 = vector.extract_strided_slice %272 {offsets = [0, 128], sizes = [8, 128], strides = [1, 1]} : vector<8x384xf32> to vector<8x128xf32>
    %283 = arith.addf %281, %282 : vector<8x128xf32>
    %284 = arith.negf %283 : vector<8x128xf32>
    %285 = math.exp %284 : vector<8x128xf32>
    %cst_101 = arith.constant 1.000000e+00 : f32
    %286 = vector.broadcast %cst_101 : f32 to vector<8x128xf32>
    %287 = arith.addf %286, %285 : vector<8x128xf32>
    %288 = arith.divf %286, %287 : vector<8x128xf32>
    %289 = vector.extract_strided_slice %267 {offsets = [0, 256], sizes = [8, 128], strides = [1, 1]} : vector<8x384xf32> to vector<8x128xf32>
    %290 = vector.extract_strided_slice %272 {offsets = [0, 256], sizes = [8, 128], strides = [1, 1]} : vector<8x384xf32> to vector<8x128xf32>
    %291 = arith.mulf %280, %290 : vector<8x128xf32>
    %292 = arith.addf %289, %291 : vector<8x128xf32>
    %293 = math.tanh %292 : vector<8x128xf32>
    %cst_102 = arith.constant 1.000000e+00 : f32
    %294 = vector.broadcast %cst_102 : f32 to vector<8x128xf32>
    %295 = arith.subf %294, %288 : vector<8x128xf32>
    %296 = arith.mulf %295, %293 : vector<8x128xf32>
    %297 = arith.mulf %288, %225 : vector<8x128xf32>
    %298 = arith.addf %296, %297 : vector<8x128xf32>
    %299 = arith.index_cast %229 : i32 to index
    %c0_103 = arith.constant 0 : index
    %300 = vector.load %arg16[%299, %c0_103] : memref<64x128xf32, #tpu.memory_space<vmem>>, vector<8x128xf32>
    tpu.vector_store %arg16[%299, %c0_103], %298 {strides = array<i32>} : memref<64x128xf32, #tpu.memory_space<vmem>>, vector<8x128xf32>,
    %c4_i32 = arith.constant 4 : i32
    %c8_i32_104 = arith.constant 8 : i32
    %301 = arith.muli %c4_i32, %c8_i32_104 : i32
    %302 = tpu.assume_multiple %301, 8 : i32
    %303 = arith.index_cast %302 : i32 to index
    %c0_105 = arith.constant 0 : index
    %304 = vector.load %arg15[%303, %c0_105] : memref<64x384xf32, #tpu.memory_space<vmem>>, vector<8x384xf32>
    %c0_106 = arith.constant 0 : index
    %c0_107 = arith.constant 0 : index
    %305 = vector.load %arg4[%c0_106, %c0_107] : memref<128x384xf32, #tpu.memory_space<vmem>>, vector<128x384xf32>
    %cst_108 = arith.constant dense<0.000000e+00> : vector<8x384xf32>
    %306 = tpu.matmul %262, %305, %cst_108 {dimension_numbers = #tpu.dot_dimension_numbers<[1], [0], [0], [1], [0, 0, 1, 1], [], []>} : vector<8x128xf32>, vector<128x384xf32>, vector<8x384xf32> -> vector<8x384xf32>
    %c0_109 = arith.constant 0 : index
    %c0_110 = arith.constant 0 : index
    %307 = vector.load %arg5[%c0_109, %c0_110] : memref<1x384xf32, #tpu.memory_space<vmem>>, vector<1x384xf32>
    %308 = vector.broadcast %307 : vector<1x384xf32> to vector<8x384xf32>
    %309 = arith.addf %306, %308 : vector<8x384xf32>
    %310 = vector.extract_strided_slice %304 {offsets = [0, 0], sizes = [8, 128], strides = [1, 1]} : vector<8x384xf32> to vector<8x128xf32>
    %311 = vector.extract_strided_slice %309 {offsets = [0, 0], sizes = [8, 128], strides = [1, 1]} : vector<8x384xf32> to vector<8x128xf32>
    %312 = arith.addf %310, %311 : vector<8x128xf32>
    %313 = arith.negf %312 : vector<8x128xf32>
    %314 = math.exp %313 : vector<8x128xf32>
    %cst_111 = arith.constant 1.000000e+00 : f32
    %315 = vector.broadcast %cst_111 : f32 to vector<8x128xf32>
    %316 = arith.addf %315, %314 : vector<8x128xf32>
    %317 = arith.divf %315, %316 : vector<8x128xf32>
    %318 = vector.extract_strided_slice %304 {offsets = [0, 128], sizes = [8, 128], strides = [1, 1]} : vector<8x384xf32> to vector<8x128xf32>
    %319 = vector.extract_strided_slice %309 {offsets = [0, 128], sizes = [8, 128], strides = [1, 1]} : vector<8x384xf32> to vector<8x128xf32>
    %320 = arith.addf %318, %319 : vector<8x128xf32>
    %321 = arith.negf %320 : vector<8x128xf32>
    %322 = math.exp %321 : vector<8x128xf32>
    %cst_112 = arith.constant 1.000000e+00 : f32
    %323 = vector.broadcast %cst_112 : f32 to vector<8x128xf32>
    %324 = arith.addf %323, %322 : vector<8x128xf32>
    %325 = arith.divf %323, %324 : vector<8x128xf32>
    %326 = vector.extract_strided_slice %304 {offsets = [0, 256], sizes = [8, 128], strides = [1, 1]} : vector<8x384xf32> to vector<8x128xf32>
    %327 = vector.extract_strided_slice %309 {offsets = [0, 256], sizes = [8, 128], strides = [1, 1]} : vector<8x384xf32> to vector<8x128xf32>
    %328 = arith.mulf %317, %327 : vector<8x128xf32>
    %329 = arith.addf %326, %328 : vector<8x128xf32>
    %330 = math.tanh %329 : vector<8x128xf32>
    %cst_113 = arith.constant 1.000000e+00 : f32
    %331 = vector.broadcast %cst_113 : f32 to vector<8x128xf32>
    %332 = arith.subf %331, %325 : vector<8x128xf32>
    %333 = arith.mulf %332, %330 : vector<8x128xf32>
    %334 = arith.mulf %325, %262 : vector<8x128xf32>
    %335 = arith.addf %333, %334 : vector<8x128xf32>
    %c0_114 = arith.constant 0 : index
    %c0_115 = arith.constant 0 : index
    %336 = vector.load %arg6[%c0_114, %c0_115] : memref<128x384xf32, #tpu.memory_space<vmem>>, vector<128x384xf32>
    %cst_116 = arith.constant dense<0.000000e+00> : vector<8x384xf32>
    %337 = tpu.matmul %335, %336, %cst_116 {dimension_numbers = #tpu.dot_dimension_numbers<[1], [0], [0], [1], [0, 0, 1, 1], [], []>} : vector<8x128xf32>, vector<128x384xf32>, vector<8x384xf32> -> vector<8x384xf32>
    %c0_117 = arith.constant 0 : index
    %c0_118 = arith.constant 0 : index
    %338 = vector.load %arg7[%c0_117, %c0_118] : memref<1x384xf32, #tpu.memory_space<vmem>>, vector<1x384xf32>
    %339 = vector.broadcast %338 : vector<1x384xf32> to vector<8x384xf32>
    %340 = arith.addf %337, %339 : vector<8x384xf32>
    %c0_119 = arith.constant 0 : index
    %c0_120 = arith.constant 0 : index
    %341 = vector.load %arg8[%c0_119, %c0_120] : memref<128x384xf32, #tpu.memory_space<vmem>>, vector<128x384xf32>
    %cst_121 = arith.constant dense<0.000000e+00> : vector<8x384xf32>
    %342 = tpu.matmul %298, %341, %cst_121 {dimension_numbers = #tpu.dot_dimension_numbers<[1], [0], [0], [1], [0, 0, 1, 1], [], []>} : vector<8x128xf32>, vector<128x384xf32>, vector<8x384xf32> -> vector<8x384xf32>
    %c0_122 = arith.constant 0 : index
    %c0_123 = arith.constant 0 : index
    %343 = vector.load %arg9[%c0_122, %c0_123] : memref<1x384xf32, #tpu.memory_space<vmem>>, vector<1x384xf32>
    %344 = vector.broadcast %343 : vector<1x384xf32> to vector<8x384xf32>
    %345 = arith.addf %342, %344 : vector<8x384xf32>
    %346 = vector.extract_strided_slice %340 {offsets = [0, 0], sizes = [8, 128], strides = [1, 1]} : vector<8x384xf32> to vector<8x128xf32>
    %347 = vector.extract_strided_slice %345 {offsets = [0, 0], sizes = [8, 128], strides = [1, 1]} : vector<8x384xf32> to vector<8x128xf32>
    %348 = arith.addf %346, %347 : vector<8x128xf32>
    %349 = arith.negf %348 : vector<8x128xf32>
    %350 = math.exp %349 : vector<8x128xf32>
    %cst_124 = arith.constant 1.000000e+00 : f32
    %351 = vector.broadcast %cst_124 : f32 to vector<8x128xf32>
    %352 = arith.addf %351, %350 : vector<8x128xf32>
    %353 = arith.divf %351, %352 : vector<8x128xf32>
    %354 = vector.extract_strided_slice %340 {offsets = [0, 128], sizes = [8, 128], strides = [1, 1]} : vector<8x384xf32> to vector<8x128xf32>
    %355 = vector.extract_strided_slice %345 {offsets = [0, 128], sizes = [8, 128], strides = [1, 1]} : vector<8x384xf32> to vector<8x128xf32>
    %356 = arith.addf %354, %355 : vector<8x128xf32>
    %357 = arith.negf %356 : vector<8x128xf32>
    %358 = math.exp %357 : vector<8x128xf32>
    %cst_125 = arith.constant 1.000000e+00 : f32
    %359 = vector.broadcast %cst_125 : f32 to vector<8x128xf32>
    %360 = arith.addf %359, %358 : vector<8x128xf32>
    %361 = arith.divf %359, %360 : vector<8x128xf32>
    %362 = vector.extract_strided_slice %340 {offsets = [0, 256], sizes = [8, 128], strides = [1, 1]} : vector<8x384xf32> to vector<8x128xf32>
    %363 = vector.extract_strided_slice %345 {offsets = [0, 256], sizes = [8, 128], strides = [1, 1]} : vector<8x384xf32> to vector<8x128xf32>
    %364 = arith.mulf %353, %363 : vector<8x128xf32>
    %365 = arith.addf %362, %364 : vector<8x128xf32>
    %366 = math.tanh %365 : vector<8x128xf32>
    %cst_126 = arith.constant 1.000000e+00 : f32
    %367 = vector.broadcast %cst_126 : f32 to vector<8x128xf32>
    %368 = arith.subf %367, %361 : vector<8x128xf32>
    %369 = arith.mulf %368, %366 : vector<8x128xf32>
    %370 = arith.mulf %361, %298 : vector<8x128xf32>
    %371 = arith.addf %369, %370 : vector<8x128xf32>
    %372 = arith.index_cast %302 : i32 to index
    %c0_127 = arith.constant 0 : index
    %373 = vector.load %arg16[%372, %c0_127] : memref<64x128xf32, #tpu.memory_space<vmem>>, vector<8x128xf32>
    tpu.vector_store %arg16[%372, %c0_127], %371 {strides = array<i32>} : memref<64x128xf32, #tpu.memory_space<vmem>>, vector<8x128xf32>,
    %c5_i32 = arith.constant 5 : i32
    %c8_i32_128 = arith.constant 8 : i32
    %374 = arith.muli %c5_i32, %c8_i32_128 : i32
    %375 = tpu.assume_multiple %374, 8 : i32
    %376 = arith.index_cast %375 : i32 to index
    %c0_129 = arith.constant 0 : index
    %377 = vector.load %arg15[%376, %c0_129] : memref<64x384xf32, #tpu.memory_space<vmem>>, vector<8x384xf32>
    %c0_130 = arith.constant 0 : index
    %c0_131 = arith.constant 0 : index
    %378 = vector.load %arg4[%c0_130, %c0_131] : memref<128x384xf32, #tpu.memory_space<vmem>>, vector<128x384xf32>
    %cst_132 = arith.constant dense<0.000000e+00> : vector<8x384xf32>
    %379 = tpu.matmul %335, %378, %cst_132 {dimension_numbers = #tpu.dot_dimension_numbers<[1], [0], [0], [1], [0, 0, 1, 1], [], []>} : vector<8x128xf32>, vector<128x384xf32>, vector<8x384xf32> -> vector<8x384xf32>
    %c0_133 = arith.constant 0 : index
    %c0_134 = arith.constant 0 : index
    %380 = vector.load %arg5[%c0_133, %c0_134] : memref<1x384xf32, #tpu.memory_space<vmem>>, vector<1x384xf32>
    %381 = vector.broadcast %380 : vector<1x384xf32> to vector<8x384xf32>
    %382 = arith.addf %379, %381 : vector<8x384xf32>
    %383 = vector.extract_strided_slice %377 {offsets = [0, 0], sizes = [8, 128], strides = [1, 1]} : vector<8x384xf32> to vector<8x128xf32>
    %384 = vector.extract_strided_slice %382 {offsets = [0, 0], sizes = [8, 128], strides = [1, 1]} : vector<8x384xf32> to vector<8x128xf32>
    %385 = arith.addf %383, %384 : vector<8x128xf32>
    %386 = arith.negf %385 : vector<8x128xf32>
    %387 = math.exp %386 : vector<8x128xf32>
    %cst_135 = arith.constant 1.000000e+00 : f32
    %388 = vector.broadcast %cst_135 : f32 to vector<8x128xf32>
    %389 = arith.addf %388, %387 : vector<8x128xf32>
    %390 = arith.divf %388, %389 : vector<8x128xf32>
    %391 = vector.extract_strided_slice %377 {offsets = [0, 128], sizes = [8, 128], strides = [1, 1]} : vector<8x384xf32> to vector<8x128xf32>
    %392 = vector.extract_strided_slice %382 {offsets = [0, 128], sizes = [8, 128], strides = [1, 1]} : vector<8x384xf32> to vector<8x128xf32>
    %393 = arith.addf %391, %392 : vector<8x128xf32>
    %394 = arith.negf %393 : vector<8x128xf32>
    %395 = math.exp %394 : vector<8x128xf32>
    %cst_136 = arith.constant 1.000000e+00 : f32
    %396 = vector.broadcast %cst_136 : f32 to vector<8x128xf32>
    %397 = arith.addf %396, %395 : vector<8x128xf32>
    %398 = arith.divf %396, %397 : vector<8x128xf32>
    %399 = vector.extract_strided_slice %377 {offsets = [0, 256], sizes = [8, 128], strides = [1, 1]} : vector<8x384xf32> to vector<8x128xf32>
    %400 = vector.extract_strided_slice %382 {offsets = [0, 256], sizes = [8, 128], strides = [1, 1]} : vector<8x384xf32> to vector<8x128xf32>
    %401 = arith.mulf %390, %400 : vector<8x128xf32>
    %402 = arith.addf %399, %401 : vector<8x128xf32>
    %403 = math.tanh %402 : vector<8x128xf32>
    %cst_137 = arith.constant 1.000000e+00 : f32
    %404 = vector.broadcast %cst_137 : f32 to vector<8x128xf32>
    %405 = arith.subf %404, %398 : vector<8x128xf32>
    %406 = arith.mulf %405, %403 : vector<8x128xf32>
    %407 = arith.mulf %398, %335 : vector<8x128xf32>
    %408 = arith.addf %406, %407 : vector<8x128xf32>
    %c0_138 = arith.constant 0 : index
    %c0_139 = arith.constant 0 : index
    %409 = vector.load %arg6[%c0_138, %c0_139] : memref<128x384xf32, #tpu.memory_space<vmem>>, vector<128x384xf32>
    %cst_140 = arith.constant dense<0.000000e+00> : vector<8x384xf32>
    %410 = tpu.matmul %408, %409, %cst_140 {dimension_numbers = #tpu.dot_dimension_numbers<[1], [0], [0], [1], [0, 0, 1, 1], [], []>} : vector<8x128xf32>, vector<128x384xf32>, vector<8x384xf32> -> vector<8x384xf32>
    %c0_141 = arith.constant 0 : index
    %c0_142 = arith.constant 0 : index
    %411 = vector.load %arg7[%c0_141, %c0_142] : memref<1x384xf32, #tpu.memory_space<vmem>>, vector<1x384xf32>
    %412 = vector.broadcast %411 : vector<1x384xf32> to vector<8x384xf32>
    %413 = arith.addf %410, %412 : vector<8x384xf32>
    %c0_143 = arith.constant 0 : index
    %c0_144 = arith.constant 0 : index
    %414 = vector.load %arg8[%c0_143, %c0_144] : memref<128x384xf32, #tpu.memory_space<vmem>>, vector<128x384xf32>
    %cst_145 = arith.constant dense<0.000000e+00> : vector<8x384xf32>
    %415 = tpu.matmul %371, %414, %cst_145 {dimension_numbers = #tpu.dot_dimension_numbers<[1], [0], [0], [1], [0, 0, 1, 1], [], []>} : vector<8x128xf32>, vector<128x384xf32>, vector<8x384xf32> -> vector<8x384xf32>
    %c0_146 = arith.constant 0 : index
    %c0_147 = arith.constant 0 : index
    %416 = vector.load %arg9[%c0_146, %c0_147] : memref<1x384xf32, #tpu.memory_space<vmem>>, vector<1x384xf32>
    %417 = vector.broadcast %416 : vector<1x384xf32> to vector<8x384xf32>
    %418 = arith.addf %415, %417 : vector<8x384xf32>
    %419 = vector.extract_strided_slice %413 {offsets = [0, 0], sizes = [8, 128], strides = [1, 1]} : vector<8x384xf32> to vector<8x128xf32>
    %420 = vector.extract_strided_slice %418 {offsets = [0, 0], sizes = [8, 128], strides = [1, 1]} : vector<8x384xf32> to vector<8x128xf32>
    %421 = arith.addf %419, %420 : vector<8x128xf32>
    %422 = arith.negf %421 : vector<8x128xf32>
    %423 = math.exp %422 : vector<8x128xf32>
    %cst_148 = arith.constant 1.000000e+00 : f32
    %424 = vector.broadcast %cst_148 : f32 to vector<8x128xf32>
    %425 = arith.addf %424, %423 : vector<8x128xf32>
    %426 = arith.divf %424, %425 : vector<8x128xf32>
    %427 = vector.extract_strided_slice %413 {offsets = [0, 128], sizes = [8, 128], strides = [1, 1]} : vector<8x384xf32> to vector<8x128xf32>
    %428 = vector.extract_strided_slice %418 {offsets = [0, 128], sizes = [8, 128], strides = [1, 1]} : vector<8x384xf32> to vector<8x128xf32>
    %429 = arith.addf %427, %428 : vector<8x128xf32>
    %430 = arith.negf %429 : vector<8x128xf32>
    %431 = math.exp %430 : vector<8x128xf32>
    %cst_149 = arith.constant 1.000000e+00 : f32
    %432 = vector.broadcast %cst_149 : f32 to vector<8x128xf32>
    %433 = arith.addf %432, %431 : vector<8x128xf32>
    %434 = arith.divf %432, %433 : vector<8x128xf32>
    %435 = vector.extract_strided_slice %413 {offsets = [0, 256], sizes = [8, 128], strides = [1, 1]} : vector<8x384xf32> to vector<8x128xf32>
    %436 = vector.extract_strided_slice %418 {offsets = [0, 256], sizes = [8, 128], strides = [1, 1]} : vector<8x384xf32> to vector<8x128xf32>
    %437 = arith.mulf %426, %436 : vector<8x128xf32>
    %438 = arith.addf %435, %437 : vector<8x128xf32>
    %439 = math.tanh %438 : vector<8x128xf32>
    %cst_150 = arith.constant 1.000000e+00 : f32
    %440 = vector.broadcast %cst_150 : f32 to vector<8x128xf32>
    %441 = arith.subf %440, %434 : vector<8x128xf32>
    %442 = arith.mulf %441, %439 : vector<8x128xf32>
    %443 = arith.mulf %434, %371 : vector<8x128xf32>
    %444 = arith.addf %442, %443 : vector<8x128xf32>
    %445 = arith.index_cast %375 : i32 to index
    %c0_151 = arith.constant 0 : index
    %446 = vector.load %arg16[%445, %c0_151] : memref<64x128xf32, #tpu.memory_space<vmem>>, vector<8x128xf32>
    tpu.vector_store %arg16[%445, %c0_151], %444 {strides = array<i32>} : memref<64x128xf32, #tpu.memory_space<vmem>>, vector<8x128xf32>,
    %c6_i32 = arith.constant 6 : i32
    %c8_i32_152 = arith.constant 8 : i32
    %447 = arith.muli %c6_i32, %c8_i32_152 : i32
    %448 = tpu.assume_multiple %447, 8 : i32
    %449 = arith.index_cast %448 : i32 to index
    %c0_153 = arith.constant 0 : index
    %450 = vector.load %arg15[%449, %c0_153] : memref<64x384xf32, #tpu.memory_space<vmem>>, vector<8x384xf32>
    %c0_154 = arith.constant 0 : index
    %c0_155 = arith.constant 0 : index
    %451 = vector.load %arg4[%c0_154, %c0_155] : memref<128x384xf32, #tpu.memory_space<vmem>>, vector<128x384xf32>
    %cst_156 = arith.constant dense<0.000000e+00> : vector<8x384xf32>
    %452 = tpu.matmul %408, %451, %cst_156 {dimension_numbers = #tpu.dot_dimension_numbers<[1], [0], [0], [1], [0, 0, 1, 1], [], []>} : vector<8x128xf32>, vector<128x384xf32>, vector<8x384xf32> -> vector<8x384xf32>
    %c0_157 = arith.constant 0 : index
    %c0_158 = arith.constant 0 : index
    %453 = vector.load %arg5[%c0_157, %c0_158] : memref<1x384xf32, #tpu.memory_space<vmem>>, vector<1x384xf32>
    %454 = vector.broadcast %453 : vector<1x384xf32> to vector<8x384xf32>
    %455 = arith.addf %452, %454 : vector<8x384xf32>
    %456 = vector.extract_strided_slice %450 {offsets = [0, 0], sizes = [8, 128], strides = [1, 1]} : vector<8x384xf32> to vector<8x128xf32>
    %457 = vector.extract_strided_slice %455 {offsets = [0, 0], sizes = [8, 128], strides = [1, 1]} : vector<8x384xf32> to vector<8x128xf32>
    %458 = arith.addf %456, %457 : vector<8x128xf32>
    %459 = arith.negf %458 : vector<8x128xf32>
    %460 = math.exp %459 : vector<8x128xf32>
    %cst_159 = arith.constant 1.000000e+00 : f32
    %461 = vector.broadcast %cst_159 : f32 to vector<8x128xf32>
    %462 = arith.addf %461, %460 : vector<8x128xf32>
    %463 = arith.divf %461, %462 : vector<8x128xf32>
    %464 = vector.extract_strided_slice %450 {offsets = [0, 128], sizes = [8, 128], strides = [1, 1]} : vector<8x384xf32> to vector<8x128xf32>
    %465 = vector.extract_strided_slice %455 {offsets = [0, 128], sizes = [8, 128], strides = [1, 1]} : vector<8x384xf32> to vector<8x128xf32>
    %466 = arith.addf %464, %465 : vector<8x128xf32>
    %467 = arith.negf %466 : vector<8x128xf32>
    %468 = math.exp %467 : vector<8x128xf32>
    %cst_160 = arith.constant 1.000000e+00 : f32
    %469 = vector.broadcast %cst_160 : f32 to vector<8x128xf32>
    %470 = arith.addf %469, %468 : vector<8x128xf32>
    %471 = arith.divf %469, %470 : vector<8x128xf32>
    %472 = vector.extract_strided_slice %450 {offsets = [0, 256], sizes = [8, 128], strides = [1, 1]} : vector<8x384xf32> to vector<8x128xf32>
    %473 = vector.extract_strided_slice %455 {offsets = [0, 256], sizes = [8, 128], strides = [1, 1]} : vector<8x384xf32> to vector<8x128xf32>
    %474 = arith.mulf %463, %473 : vector<8x128xf32>
    %475 = arith.addf %472, %474 : vector<8x128xf32>
    %476 = math.tanh %475 : vector<8x128xf32>
    %cst_161 = arith.constant 1.000000e+00 : f32
    %477 = vector.broadcast %cst_161 : f32 to vector<8x128xf32>
    %478 = arith.subf %477, %471 : vector<8x128xf32>
    %479 = arith.mulf %478, %476 : vector<8x128xf32>
    %480 = arith.mulf %471, %408 : vector<8x128xf32>
    %481 = arith.addf %479, %480 : vector<8x128xf32>
    %c0_162 = arith.constant 0 : index
    %c0_163 = arith.constant 0 : index
    %482 = vector.load %arg6[%c0_162, %c0_163] : memref<128x384xf32, #tpu.memory_space<vmem>>, vector<128x384xf32>
    %cst_164 = arith.constant dense<0.000000e+00> : vector<8x384xf32>
    %483 = tpu.matmul %481, %482, %cst_164 {dimension_numbers = #tpu.dot_dimension_numbers<[1], [0], [0], [1], [0, 0, 1, 1], [], []>} : vector<8x128xf32>, vector<128x384xf32>, vector<8x384xf32> -> vector<8x384xf32>
    %c0_165 = arith.constant 0 : index
    %c0_166 = arith.constant 0 : index
    %484 = vector.load %arg7[%c0_165, %c0_166] : memref<1x384xf32, #tpu.memory_space<vmem>>, vector<1x384xf32>
    %485 = vector.broadcast %484 : vector<1x384xf32> to vector<8x384xf32>
    %486 = arith.addf %483, %485 : vector<8x384xf32>
    %c0_167 = arith.constant 0 : index
    %c0_168 = arith.constant 0 : index
    %487 = vector.load %arg8[%c0_167, %c0_168] : memref<128x384xf32, #tpu.memory_space<vmem>>, vector<128x384xf32>
    %cst_169 = arith.constant dense<0.000000e+00> : vector<8x384xf32>
    %488 = tpu.matmul %444, %487, %cst_169 {dimension_numbers = #tpu.dot_dimension_numbers<[1], [0], [0], [1], [0, 0, 1, 1], [], []>} : vector<8x128xf32>, vector<128x384xf32>, vector<8x384xf32> -> vector<8x384xf32>
    %c0_170 = arith.constant 0 : index
    %c0_171 = arith.constant 0 : index
    %489 = vector.load %arg9[%c0_170, %c0_171] : memref<1x384xf32, #tpu.memory_space<vmem>>, vector<1x384xf32>
    %490 = vector.broadcast %489 : vector<1x384xf32> to vector<8x384xf32>
    %491 = arith.addf %488, %490 : vector<8x384xf32>
    %492 = vector.extract_strided_slice %486 {offsets = [0, 0], sizes = [8, 128], strides = [1, 1]} : vector<8x384xf32> to vector<8x128xf32>
    %493 = vector.extract_strided_slice %491 {offsets = [0, 0], sizes = [8, 128], strides = [1, 1]} : vector<8x384xf32> to vector<8x128xf32>
    %494 = arith.addf %492, %493 : vector<8x128xf32>
    %495 = arith.negf %494 : vector<8x128xf32>
    %496 = math.exp %495 : vector<8x128xf32>
    %cst_172 = arith.constant 1.000000e+00 : f32
    %497 = vector.broadcast %cst_172 : f32 to vector<8x128xf32>
    %498 = arith.addf %497, %496 : vector<8x128xf32>
    %499 = arith.divf %497, %498 : vector<8x128xf32>
    %500 = vector.extract_strided_slice %486 {offsets = [0, 128], sizes = [8, 128], strides = [1, 1]} : vector<8x384xf32> to vector<8x128xf32>
    %501 = vector.extract_strided_slice %491 {offsets = [0, 128], sizes = [8, 128], strides = [1, 1]} : vector<8x384xf32> to vector<8x128xf32>
    %502 = arith.addf %500, %501 : vector<8x128xf32>
    %503 = arith.negf %502 : vector<8x128xf32>
    %504 = math.exp %503 : vector<8x128xf32>
    %cst_173 = arith.constant 1.000000e+00 : f32
    %505 = vector.broadcast %cst_173 : f32 to vector<8x128xf32>
    %506 = arith.addf %505, %504 : vector<8x128xf32>
    %507 = arith.divf %505, %506 : vector<8x128xf32>
    %508 = vector.extract_strided_slice %486 {offsets = [0, 256], sizes = [8, 128], strides = [1, 1]} : vector<8x384xf32> to vector<8x128xf32>
    %509 = vector.extract_strided_slice %491 {offsets = [0, 256], sizes = [8, 128], strides = [1, 1]} : vector<8x384xf32> to vector<8x128xf32>
    %510 = arith.mulf %499, %509 : vector<8x128xf32>
    %511 = arith.addf %508, %510 : vector<8x128xf32>
    %512 = math.tanh %511 : vector<8x128xf32>
    %cst_174 = arith.constant 1.000000e+00 : f32
    %513 = vector.broadcast %cst_174 : f32 to vector<8x128xf32>
    %514 = arith.subf %513, %507 : vector<8x128xf32>
    %515 = arith.mulf %514, %512 : vector<8x128xf32>
    %516 = arith.mulf %507, %444 : vector<8x128xf32>
    %517 = arith.addf %515, %516 : vector<8x128xf32>
    %518 = arith.index_cast %448 : i32 to index
    %c0_175 = arith.constant 0 : index
    %519 = vector.load %arg16[%518, %c0_175] : memref<64x128xf32, #tpu.memory_space<vmem>>, vector<8x128xf32>
    tpu.vector_store %arg16[%518, %c0_175], %517 {strides = array<i32>} : memref<64x128xf32, #tpu.memory_space<vmem>>, vector<8x128xf32>,
    %c7_i32 = arith.constant 7 : i32
    %c8_i32_176 = arith.constant 8 : i32
    %520 = arith.muli %c7_i32, %c8_i32_176 : i32
    %521 = tpu.assume_multiple %520, 8 : i32
    %522 = arith.index_cast %521 : i32 to index
    %c0_177 = arith.constant 0 : index
    %523 = vector.load %arg15[%522, %c0_177] : memref<64x384xf32, #tpu.memory_space<vmem>>, vector<8x384xf32>
    %c0_178 = arith.constant 0 : index
    %c0_179 = arith.constant 0 : index
    %524 = vector.load %arg4[%c0_178, %c0_179] : memref<128x384xf32, #tpu.memory_space<vmem>>, vector<128x384xf32>
    %cst_180 = arith.constant dense<0.000000e+00> : vector<8x384xf32>
    %525 = tpu.matmul %481, %524, %cst_180 {dimension_numbers = #tpu.dot_dimension_numbers<[1], [0], [0], [1], [0, 0, 1, 1], [], []>} : vector<8x128xf32>, vector<128x384xf32>, vector<8x384xf32> -> vector<8x384xf32>
    %c0_181 = arith.constant 0 : index
    %c0_182 = arith.constant 0 : index
    %526 = vector.load %arg5[%c0_181, %c0_182] : memref<1x384xf32, #tpu.memory_space<vmem>>, vector<1x384xf32>
    %527 = vector.broadcast %526 : vector<1x384xf32> to vector<8x384xf32>
    %528 = arith.addf %525, %527 : vector<8x384xf32>
    %529 = vector.extract_strided_slice %523 {offsets = [0, 0], sizes = [8, 128], strides = [1, 1]} : vector<8x384xf32> to vector<8x128xf32>
    %530 = vector.extract_strided_slice %528 {offsets = [0, 0], sizes = [8, 128], strides = [1, 1]} : vector<8x384xf32> to vector<8x128xf32>
    %531 = arith.addf %529, %530 : vector<8x128xf32>
    %532 = arith.negf %531 : vector<8x128xf32>
    %533 = math.exp %532 : vector<8x128xf32>
    %cst_183 = arith.constant 1.000000e+00 : f32
    %534 = vector.broadcast %cst_183 : f32 to vector<8x128xf32>
    %535 = arith.addf %534, %533 : vector<8x128xf32>
    %536 = arith.divf %534, %535 : vector<8x128xf32>
    %537 = vector.extract_strided_slice %523 {offsets = [0, 128], sizes = [8, 128], strides = [1, 1]} : vector<8x384xf32> to vector<8x128xf32>
    %538 = vector.extract_strided_slice %528 {offsets = [0, 128], sizes = [8, 128], strides = [1, 1]} : vector<8x384xf32> to vector<8x128xf32>
    %539 = arith.addf %537, %538 : vector<8x128xf32>
    %540 = arith.negf %539 : vector<8x128xf32>
    %541 = math.exp %540 : vector<8x128xf32>
    %cst_184 = arith.constant 1.000000e+00 : f32
    %542 = vector.broadcast %cst_184 : f32 to vector<8x128xf32>
    %543 = arith.addf %542, %541 : vector<8x128xf32>
    %544 = arith.divf %542, %543 : vector<8x128xf32>
    %545 = vector.extract_strided_slice %523 {offsets = [0, 256], sizes = [8, 128], strides = [1, 1]} : vector<8x384xf32> to vector<8x128xf32>
    %546 = vector.extract_strided_slice %528 {offsets = [0, 256], sizes = [8, 128], strides = [1, 1]} : vector<8x384xf32> to vector<8x128xf32>
    %547 = arith.mulf %536, %546 : vector<8x128xf32>
    %548 = arith.addf %545, %547 : vector<8x128xf32>
    %549 = math.tanh %548 : vector<8x128xf32>
    %cst_185 = arith.constant 1.000000e+00 : f32
    %550 = vector.broadcast %cst_185 : f32 to vector<8x128xf32>
    %551 = arith.subf %550, %544 : vector<8x128xf32>
    %552 = arith.mulf %551, %549 : vector<8x128xf32>
    %553 = arith.mulf %544, %481 : vector<8x128xf32>
    %554 = arith.addf %552, %553 : vector<8x128xf32>
    %c0_186 = arith.constant 0 : index
    %c0_187 = arith.constant 0 : index
    %555 = vector.load %arg6[%c0_186, %c0_187] : memref<128x384xf32, #tpu.memory_space<vmem>>, vector<128x384xf32>
    %cst_188 = arith.constant dense<0.000000e+00> : vector<8x384xf32>
    %556 = tpu.matmul %554, %555, %cst_188 {dimension_numbers = #tpu.dot_dimension_numbers<[1], [0], [0], [1], [0, 0, 1, 1], [], []>} : vector<8x128xf32>, vector<128x384xf32>, vector<8x384xf32> -> vector<8x384xf32>
    %c0_189 = arith.constant 0 : index
    %c0_190 = arith.constant 0 : index
    %557 = vector.load %arg7[%c0_189, %c0_190] : memref<1x384xf32, #tpu.memory_space<vmem>>, vector<1x384xf32>
    %558 = vector.broadcast %557 : vector<1x384xf32> to vector<8x384xf32>
    %559 = arith.addf %556, %558 : vector<8x384xf32>
    %c0_191 = arith.constant 0 : index
    %c0_192 = arith.constant 0 : index
    %560 = vector.load %arg8[%c0_191, %c0_192] : memref<128x384xf32, #tpu.memory_space<vmem>>, vector<128x384xf32>
    %cst_193 = arith.constant dense<0.000000e+00> : vector<8x384xf32>
    %561 = tpu.matmul %517, %560, %cst_193 {dimension_numbers = #tpu.dot_dimension_numbers<[1], [0], [0], [1], [0, 0, 1, 1], [], []>} : vector<8x128xf32>, vector<128x384xf32>, vector<8x384xf32> -> vector<8x384xf32>
    %c0_194 = arith.constant 0 : index
    %c0_195 = arith.constant 0 : index
    %562 = vector.load %arg9[%c0_194, %c0_195] : memref<1x384xf32, #tpu.memory_space<vmem>>, vector<1x384xf32>
    %563 = vector.broadcast %562 : vector<1x384xf32> to vector<8x384xf32>
    %564 = arith.addf %561, %563 : vector<8x384xf32>
    %565 = vector.extract_strided_slice %559 {offsets = [0, 0], sizes = [8, 128], strides = [1, 1]} : vector<8x384xf32> to vector<8x128xf32>
    %566 = vector.extract_strided_slice %564 {offsets = [0, 0], sizes = [8, 128], strides = [1, 1]} : vector<8x384xf32> to vector<8x128xf32>
    %567 = arith.addf %565, %566 : vector<8x128xf32>
    %568 = arith.negf %567 : vector<8x128xf32>
    %569 = math.exp %568 : vector<8x128xf32>
    %cst_196 = arith.constant 1.000000e+00 : f32
    %570 = vector.broadcast %cst_196 : f32 to vector<8x128xf32>
    %571 = arith.addf %570, %569 : vector<8x128xf32>
    %572 = arith.divf %570, %571 : vector<8x128xf32>
    %573 = vector.extract_strided_slice %559 {offsets = [0, 128], sizes = [8, 128], strides = [1, 1]} : vector<8x384xf32> to vector<8x128xf32>
    %574 = vector.extract_strided_slice %564 {offsets = [0, 128], sizes = [8, 128], strides = [1, 1]} : vector<8x384xf32> to vector<8x128xf32>
    %575 = arith.addf %573, %574 : vector<8x128xf32>
    %576 = arith.negf %575 : vector<8x128xf32>
    %577 = math.exp %576 : vector<8x128xf32>
    %cst_197 = arith.constant 1.000000e+00 : f32
    %578 = vector.broadcast %cst_197 : f32 to vector<8x128xf32>
    %579 = arith.addf %578, %577 : vector<8x128xf32>
    %580 = arith.divf %578, %579 : vector<8x128xf32>
    %581 = vector.extract_strided_slice %559 {offsets = [0, 256], sizes = [8, 128], strides = [1, 1]} : vector<8x384xf32> to vector<8x128xf32>
    %582 = vector.extract_strided_slice %564 {offsets = [0, 256], sizes = [8, 128], strides = [1, 1]} : vector<8x384xf32> to vector<8x128xf32>
    %583 = arith.mulf %572, %582 : vector<8x128xf32>
    %584 = arith.addf %581, %583 : vector<8x128xf32>
    %585 = math.tanh %584 : vector<8x128xf32>
    %cst_198 = arith.constant 1.000000e+00 : f32
    %586 = vector.broadcast %cst_198 : f32 to vector<8x128xf32>
    %587 = arith.subf %586, %580 : vector<8x128xf32>
    %588 = arith.mulf %587, %585 : vector<8x128xf32>
    %589 = arith.mulf %580, %517 : vector<8x128xf32>
    %590 = arith.addf %588, %589 : vector<8x128xf32>
    %591 = arith.index_cast %521 : i32 to index
    %c0_199 = arith.constant 0 : index
    %592 = vector.load %arg16[%591, %c0_199] : memref<64x128xf32, #tpu.memory_space<vmem>>, vector<8x128xf32>
    tpu.vector_store %arg16[%591, %c0_199], %590 {strides = array<i32>} : memref<64x128xf32, #tpu.memory_space<vmem>>, vector<8x128xf32>,
    %c8_i32_200 = arith.constant 8 : i32
    %c0_201 = arith.constant 0 : index
    %c0_202 = arith.constant 0 : index
    %593 = vector.load %arg16[%c0_201, %c0_202] : memref<64x128xf32, #tpu.memory_space<vmem>>, vector<64x128xf32>
    %c0_203 = arith.constant 0 : index
    %c0_204 = arith.constant 0 : index
    %594 = vector.load %arg10[%c0_203, %c0_204] : memref<128x128xf32, #tpu.memory_space<vmem>>, vector<128x128xf32>
    %cst_205 = arith.constant dense<0.000000e+00> : vector<64x128xf32>
    %595 = tpu.matmul %593, %594, %cst_205 {dimension_numbers = #tpu.dot_dimension_numbers<[1], [0], [0], [1], [0, 0, 1, 1], [], []>} : vector<64x128xf32>, vector<128x128xf32>, vector<64x128xf32> -> vector<64x128xf32>
    %c0_206 = arith.constant 0 : index
    %c0_207 = arith.constant 0 : index
    %596 = vector.load %arg11[%c0_206, %c0_207] : memref<1x128xf32, #tpu.memory_space<vmem>>, vector<1x128xf32>
    %597 = vector.broadcast %596 : vector<1x128xf32> to vector<64x128xf32>
    %598 = arith.addf %595, %597 : vector<64x128xf32>
    %cst_208 = arith.constant 0.000000e+00 : f32
    %599 = vector.broadcast %cst_208 : f32 to vector<64x128xf32>
    %600 = arith.maximumf %598, %599 : vector<64x128xf32>
    %c0_209 = arith.constant 0 : index
    %c0_210 = arith.constant 0 : index
    %601 = vector.load %arg12[%c0_209, %c0_210] : memref<128x128xf32, #tpu.memory_space<vmem>>, vector<128x128xf32>
    %cst_211 = arith.constant dense<0.000000e+00> : vector<64x128xf32>
    %602 = tpu.matmul %600, %601, %cst_211 {dimension_numbers = #tpu.dot_dimension_numbers<[1], [0], [0], [1], [0, 0, 1, 1], [], []>} : vector<64x128xf32>, vector<128x128xf32>, vector<64x128xf32> -> vector<64x128xf32>
    %c0_212 = arith.constant 0 : index
    %c0_213 = arith.constant 0 : index
    %603 = vector.load %arg13[%c0_212, %c0_213] : memref<1x128xf32, #tpu.memory_space<vmem>>, vector<1x128xf32>
    %604 = vector.broadcast %603 : vector<1x128xf32> to vector<64x128xf32>
    %605 = arith.addf %602, %604 : vector<64x128xf32>
    %c0_214 = arith.constant 0 : index
    %c0_215 = arith.constant 0 : index
    %606 = vector.load %arg14[%c0_214, %c0_215] : memref<64x128xf32, #tpu.memory_space<vmem>>, vector<64x128xf32>
    tpu.vector_store %arg14[%c0_214, %c0_215], %605 {strides = array<i32>} : memref<64x128xf32, #tpu.memory_space<vmem>>, vector<64x128xf32>,
    return
  }
  func.func @transform_0(%arg0: i32) -> (i32, i32) {
    %c0_i32 = arith.constant 0 : i32
    %c0_i32_0 = arith.constant 0 : i32
    %c0_i32_1 = arith.constant 0 : i32
    return %c0_i32, %c0_i32_0 : i32, i32
  }
  func.func @transform_1(%arg0: i32) -> (i32, i32) {
    %c0_i32 = arith.constant 0 : i32
    %c0_i32_0 = arith.constant 0 : i32
    %c0_i32_1 = arith.constant 0 : i32
    return %c0_i32, %c0_i32_0 : i32, i32
  }
  func.func @transform_2(%arg0: i32) -> (i32, i32) {
    %c0_i32 = arith.constant 0 : i32
    %c0_i32_0 = arith.constant 0 : i32
    %c0_i32_1 = arith.constant 0 : i32
    return %c0_i32, %c0_i32_0 : i32, i32
  }
  func.func @transform_3(%arg0: i32) -> (i32, i32) {
    %c0_i32 = arith.constant 0 : i32
    %c0_i32_0 = arith.constant 0 : i32
    %c0_i32_1 = arith.constant 0 : i32
    return %c0_i32, %c0_i32_0 : i32, i32
  }
  func.func @transform_4(%arg0: i32) -> (i32, i32) {
    %c0_i32 = arith.constant 0 : i32
    %c0_i32_0 = arith.constant 0 : i32
    %c0_i32_1 = arith.constant 0 : i32
    return %c0_i32, %c0_i32_0 : i32, i32
  }
  func.func @transform_5(%arg0: i32) -> (i32, i32) {
    %c0_i32 = arith.constant 0 : i32
    %c0_i32_0 = arith.constant 0 : i32
    %c0_i32_1 = arith.constant 0 : i32
    return %c0_i32, %c0_i32_0 : i32, i32
  }
  func.func @transform_6(%arg0: i32) -> (i32, i32) {
    %c0_i32 = arith.constant 0 : i32
    %c0_i32_0 = arith.constant 0 : i32
    %c0_i32_1 = arith.constant 0 : i32
    return %c0_i32, %c0_i32_0 : i32, i32
  }
  func.func @transform_7(%arg0: i32) -> (i32, i32) {
    %c0_i32 = arith.constant 0 : i32
    %c0_i32_0 = arith.constant 0 : i32
    %c0_i32_1 = arith.constant 0 : i32
    return %c0_i32, %c0_i32_0 : i32, i32
  }
  func.func @transform_8(%arg0: i32) -> (i32, i32) {
    %c0_i32 = arith.constant 0 : i32
    %c0_i32_0 = arith.constant 0 : i32
    %c0_i32_1 = arith.constant 0 : i32
    return %c0_i32, %c0_i32_0 : i32, i32
  }
  func.func @transform_9(%arg0: i32) -> (i32, i32) {
    %c0_i32 = arith.constant 0 : i32
    %c0_i32_0 = arith.constant 0 : i32
    %c0_i32_1 = arith.constant 0 : i32
    return %c0_i32, %c0_i32_0 : i32, i32
  }
  func.func @transform_10(%arg0: i32) -> (i32, i32) {
    %c0_i32 = arith.constant 0 : i32
    %c0_i32_0 = arith.constant 0 : i32
    %c0_i32_1 = arith.constant 0 : i32
    return %c0_i32, %c0_i32_0 : i32, i32
  }
  func.func @transform_11(%arg0: i32) -> (i32, i32) {
    %c0_i32 = arith.constant 0 : i32
    %c0_i32_0 = arith.constant 0 : i32
    %c0_i32_1 = arith.constant 0 : i32
    return %c0_i32, %c0_i32_0 : i32, i32
  }
  func.func @transform_12(%arg0: i32) -> (i32, i32) {
    %c0_i32 = arith.constant 0 : i32
    %c0_i32_0 = arith.constant 0 : i32
    %c0_i32_1 = arith.constant 0 : i32
    return %c0_i32, %c0_i32_0 : i32, i32
  }
  func.func @transform_13(%arg0: i32) -> (i32, i32) {
    %c0_i32 = arith.constant 0 : i32
    %c0_i32_0 = arith.constant 0 : i32
    %c0_i32_1 = arith.constant 0 : i32
    return %c0_i32, %c0_i32_0 : i32, i32
  }
}

</mosaic_0001>

<bundles_post_ra>
// kernel: tpu_custom_call.1
= control target key start
LH: loop header
LB: loop body
LE: loop exit
PB: predicated region body
PF: predicated region fallthrough
CT: control target
= control target key end

     0   :  { %18 = vsyncpa [#allocation5], 0  ;;  %s11465_s0 = inlined_call_operand.hbm [shape: f32[64,128], index: 0, kind: input, shape index: {}]   ;;  %s11466_s1 = inlined_call_operand.hbm [shape: f32[128,384], index: 1, kind: input, shape index: {}]   ;;  %s11467_s2 = inlined_call_operand.vmem [shape: f32[1,384], index: 2, kind: input, shape index: {}]   ;;  %s11468_s3 = inlined_call_operand.hbm [shape: f32[128,384], index: 3, kind: input, shape index: {}]   ;;  %s11469_s4 = inlined_call_operand.vmem [shape: f32[1,384], index: 4, kind: input, shape index: {}]   ;;  %s11470_s5 = inlined_call_operand.hbm [shape: f32[128,384], index: 5, kind: input, shape index: {}]   ;;  %s11471_s6 = inlined_call_operand.vmem [shape: f32[1,384], index: 6, kind: input, shape index: {}]   ;;  %s11472_s7 = inlined_call_operand.hbm [shape: f32[128,384], index: 7, kind: input, shape index: {}]   ;;  %s11473_s8 = inlined_call_operand.vmem [shape: f32[1,384], index: 8, kind: input, shape index: {}]   ;;  %s11474_s9 = inlined_call_operand.hbm [shape: f32[128,128], index: 9, kind: input, shape index: {}]   ;;  %s11475_s10 = inlined_call_operand.vmem [shape: f32[1,128], index: 10, kind: input, shape index: {}]   ;;  %s11476_s11 = inlined_call_operand.hbm [shape: f32[128,128], index: 11, kind: input, shape index: {}]   ;;  %s11477_s12 = inlined_call_operand.vmem [shape: f32[1,128], index: 12, kind: input, shape index: {}]   ;;  %s11478_s13 = inlined_call_operand.hbm [shape: f32[64,128], index: 13, kind: output, shape index: {}]  }
   0x1   :  { %19 = vsyncpa [#allocation8], 0 }
   0x2   :  { %20 = vsyncpa [#allocation11], 0 }
   0x3   :  { %21 = vsyncpa [#allocation14], 0 }
   0x4   :  { %22 = vsyncpa [#allocation6], 0  ;;  %s9520_s25 = smov [#allocation7]   ;;  %s9334_s29 = scalar_lea.hbm %s11466_s1, 6144 }
   0x5   :  { %s40_s26 = sshll.u32 %s9520_s25, 4  ;;  %p9335_p0 = scmp.ne.s32.totalorder %s11466_s1, %s9334_s29  ;;  %s41_s26 = int_to_ptr.vmem [resolvable:$true] %s40_s26 }
   0x6   :  { %p9338_p1 = scmp.lt.u32.totalorder %s9334_s29, %s11466_s1 }
   0x8   :  { %p9340_p2 = pnand %p9338_p1, %p9335_p0 }
   0xa   :  { %9343 = shalt.err (!%p9340_p2)
}
   0xb   :  { %s9344_s17 = scalar_lea.vmem %s41_s26, 6144  ;;  %p9349_p4 = scmp.lt.s32.totalorder %s41_s26, %s41_s26 }
   0xc   :  { %p9345_p3 = scmp.ne.s32.totalorder %s41_s26, %s9344_s17  ;;  %p9350_p5 = scmp.lt.s32.totalorder %s9344_s17, %s9344_s17 }
   0xe   :  { %p9351_p6 = por %p9350_p5, %p9349_p4 }
  0x10   :  { %p9352_p7 = pnand %p9351_p6, %p9345_p3 }
  0x12   :  { %9355 = shalt.err (!%p9352_p7)
}
  0x13   :  { %s9521_s18 = smov 384   ;;  %s9522_s19 = smov 24  }
  0x14   :  { %46 = dma.hbm_to_vmem [thread:$0]  %s11466_s1, 6144, %s41_s26, [#allocation8], %s9521_s18, %s9521_s18, %s9522_s19  }
  0x15   :  { %s9523_s22 = smov [#allocation10]   ;;  %s9356_s27 = scalar_lea.hbm %s11470_s5, 6144 }
  0x16   :  { %s68_s23 = sshll.u32 %s9523_s22, 4  ;;  %p9357_p8 = scmp.ne.s32.totalorder %s11470_s5, %s9356_s27  ;;  %s69_s23 = int_to_ptr.vmem [resolvable:$true] %s68_s23 }
  0x17   :  { %p9360_p9 = scmp.lt.u32.totalorder %s9356_s27, %s11470_s5 }
  0x19   :  { %p9362_p10 = pnand %p9360_p9, %p9357_p8 }
  0x1b   :  { %9365 = shalt.err (!%p9362_p10)
}
  0x1c   :  { %s9366_s15 = scalar_lea.vmem %s69_s23, 6144  ;;  %p9371_p12 = scmp.lt.s32.totalorder %s69_s23, %s69_s23 }
  0x1d   :  { %p9367_p11 = scmp.ne.s32.totalorder %s69_s23, %s9366_s15  ;;  %p9372_p13 = scmp.lt.s32.totalorder %s9366_s15, %s9366_s15 }
  0x1f   :  { %p9373_p0 = por %p9372_p13, %p9371_p12 }
  0x21   :  { %p9374_p1 = pnand %p9373_p0, %p9367_p11 }
  0x23   :  { %9377 = shalt.err (!%p9374_p1)
}
  0x24   :  { %74 = dma.hbm_to_vmem [thread:$0]  %s11470_s5, 6144, %s69_s23, [#allocation11], %s9521_s18, %s9521_s18, %s9522_s19  }
  0x25   :  { %s9524_s16 = smov [#allocation13]   ;;  %s9525_s20 = smov [#allocation4]  }
  0x26   :  { %s96_s17 = sshll.u32 %s9524_s16, 4  ;;  %s28_s21 = sshll.u32 %s9525_s20, 4  ;;  %s97_s17 = int_to_ptr.vmem [resolvable:$true] %s96_s17  ;;  %s9635_s21 = int_to_ptr.vmem [resolvable:$true] %s28_s21 }
  0x27   :  { %s9378_s25 = scalar_lea.hbm %s11474_s9, 2048 }
  0x28   :  { %p9379_p2 = scmp.ne.s32.totalorder %s11474_s9, %s9378_s25  ;;  %p9382_p3 = scmp.lt.u32.totalorder %s9378_s25, %s11474_s9 }
  0x2a   :  { %p9384_p4 = pnand %p9382_p3, %p9379_p2 }
  0x2c   :  { %9387 = shalt.err (!%p9384_p4)
}
  0x2d   :  { %s9388_s5 = scalar_lea.vmem %s97_s17, 2048  ;;  %p9393_p6 = scmp.lt.s32.totalorder %s97_s17, %s97_s17 }
  0x2e   :  { %p9389_p5 = scmp.ne.s32.totalorder %s97_s17, %s9388_s5  ;;  %p9394_p7 = scmp.lt.s32.totalorder %s9388_s5, %s9388_s5 }
  0x30   :  { %p9395_p8 = por %p9394_p7, %p9393_p6 }
  0x32   :  { %p9396_p9 = pnand %p9395_p8, %p9389_p5 }
  0x34   :  { %9399 = shalt.err (!%p9396_p9)
}
  0x35   :  { %s9526_s23 = smov 128   ;;  %s9527_s14 = smov 8  }
  0x36   :  { %102 = dma.hbm_to_vmem [thread:$0]  %s11474_s9, 2048, %s97_s17, [#allocation14], %s9526_s23, %s9526_s23, %s9527_s14  }
  0x37   :  { %s9400_s20 = scalar_lea.hbm %s11465_s0, 1024 }
  0x38   :  { %p9401_p10 = scmp.ne.s32.totalorder %s11465_s0, %s9400_s20  ;;  %p9404_p11 = scmp.lt.u32.totalorder %s9400_s20, %s11465_s0 }
  0x3a   :  { %p9406_p12 = pnand %p9404_p11, %p9401_p10 }
  0x3c   :  { %9409 = shalt.err (!%p9406_p12)
}
  0x3d   :  { %s9410_s28 = scalar_lea.vmem %s9635_s21, 1024  ;;  %p9415_p0 = scmp.lt.s32.totalorder %s9635_s21, %s9635_s21 }
  0x3e   :  { %p9411_p13 = scmp.ne.s32.totalorder %s9635_s21, %s9410_s28  ;;  %p9416_p1 = scmp.lt.s32.totalorder %s9410_s28, %s9410_s28 }
  0x40   :  { %p9417_p2 = por %p9416_p1, %p9415_p0 }
  0x42   :  { %p9418_p3 = pnand %p9417_p2, %p9411_p13 }
  0x44   :  { %9421 = shalt.err (!%p9418_p3)
}
  0x45   :  { %34 = dma.hbm_to_vmem [thread:$0]  %s11465_s0, 1024, %s9635_s21, [#allocation5], %s9526_s23, %s9526_s23, %s9527_s14  }
  0x46   :  { %s9528_s29 = smov [#allocation9]   ;;  %s9529_s5 = smov [#allocation12]  }
  0x47   :  { %s54_s30 = sshll.u32 %s9528_s29, 4  ;;  %s82_s15 = sshll.u32 %s9529_s5, 4  ;;  %s55_s30 = int_to_ptr.vmem [resolvable:$true] %s54_s30  ;;  %s9672_s15 = int_to_ptr.vmem [resolvable:$true] %s82_s15 }
  0x48   :  { %s9422_s16 = scalar_lea.hbm %s11468_s3, 6144 }
  0x49   :  { %p9423_p4 = scmp.ne.s32.totalorder %s11468_s3, %s9422_s16  ;;  %p9426_p5 = scmp.lt.u32.totalorder %s9422_s16, %s11468_s3 }
  0x4b   :  { %p9428_p6 = pnand %p9426_p5, %p9423_p4 }
  0x4d   :  { %9431 = shalt.err (!%p9428_p6)
}
  0x4e   :  { %s9432_s0 = scalar_lea.vmem %s55_s30, 6144  ;;  %p9437_p8 = scmp.lt.s32.totalorder %s55_s30, %s55_s30 }
  0x4f   :  { %p9433_p7 = scmp.ne.s32.totalorder %s55_s30, %s9432_s0  ;;  %p9438_p9 = scmp.lt.s32.totalorder %s9432_s0, %s9432_s0 }
  0x51   :  { %p9439_p10 = por %p9438_p9, %p9437_p8 }
  0x53   :  { %p9440_p11 = pnand %p9439_p10, %p9433_p7 }
  0x55   :  { %9443 = shalt.err (!%p9440_p11)
}
  0x56   :  { %60 = dma.hbm_to_vmem [thread:$0]  %s11468_s3, 6144, %s55_s30, [#allocation8], %s9521_s18, %s9521_s18, %s9522_s19  }
  0x57   :  { %s9444_s17 = scalar_lea.hbm %s11472_s7, 6144 }
  0x58   :  { %p9445_p12 = scmp.ne.s32.totalorder %s11472_s7, %s9444_s17  ;;  %p9448_p13 = scmp.lt.u32.totalorder %s9444_s17, %s11472_s7 }
  0x5a   :  { %p9450_p0 = pnand %p9448_p13, %p9445_p12 }
  0x5c   :  { %9453 = shalt.err (!%p9450_p0)
}
  0x5d   :  { %s9454_s16 = scalar_lea.vmem %s9672_s15, 6144  ;;  %p9459_p2 = scmp.lt.s32.totalorder %s9672_s15, %s9672_s15 }
  0x5e   :  { %p9455_p1 = scmp.ne.s32.totalorder %s9672_s15, %s9454_s16  ;;  %p9460_p3 = scmp.lt.s32.totalorder %s9454_s16, %s9454_s16 }
  0x60   :  { %p9461_p4 = por %p9460_p3, %p9459_p2 }
  0x62   :  { %p9462_p5 = pnand %p9461_p4, %p9455_p1 }
  0x64   :  { %9465 = shalt.err (!%p9462_p5)
}
  0x65   :  { %88 = dma.hbm_to_vmem [thread:$0]  %s11472_s7, 6144, %s9672_s15, [#allocation11], %s9521_s18, %s9521_s18, %s9522_s19  }
  0x66   :  { %s9530_s20 = smov [#allocation15]   ;;  %s9466_s0 = scalar_lea.hbm %s11476_s11, 2048 }
  0x67   :  { %s110_s22 = sshll.u32 %s9530_s20, 4  ;;  %p9467_p6 = scmp.ne.s32.totalorder %s11476_s11, %s9466_s0  ;;  %s111_s22 = int_to_ptr.vmem [resolvable:$true] %s110_s22 }
  0x68   :  { %p9470_p7 = scmp.lt.u32.totalorder %s9466_s0, %s11476_s11 }
  0x6a   :  { %p9472_p8 = pnand %p9470_p7, %p9467_p6 }
  0x6c   :  { %9475 = shalt.err (!%p9472_p8)
}
  0x6d   :  { %s9476_s17 = scalar_lea.vmem %s111_s22, 2048  ;;  %p9481_p10 = scmp.lt.s32.totalorder %s111_s22, %s111_s22 }
  0x6e   :  { %p9477_p9 = scmp.ne.s32.totalorder %s111_s22, %s9476_s17  ;;  %p9482_p11 = scmp.lt.s32.totalorder %s9476_s17, %s9476_s17 }
  0x70   :  { %p9483_p12 = por %p9482_p11, %p9481_p10 }
  0x72   :  { %p9484_p13 = pnand %p9483_p12, %p9477_p9 }
  0x74   :  { %9487 = shalt.err (!%p9484_p13)
}
  0x75   :  { %116 = dma.hbm_to_vmem [thread:$0]  %s11476_s11, 2048, %s111_s22, [#allocation14], %s9526_s23, %s9526_s23, %s9527_s14  }
  0x76   :  { %9510 = dma.done.wait [#allocation5], 1024  }
  0x77   :  { %9511 = vsyncadd [#allocation5], 4294966272 }
  0x78   :  { %9512 = dma.done.wait [#allocation8], 12288  }
  0x79   :  { %9513 = vsyncadd [#allocation8], 4294955008 }
  0x7a   :  { %9514 = dma.done.wait [#allocation11], 12288  }
  0x7b   :  { %9515 = vsyncadd [#allocation11], 4294955008 }
  0x7c   :  { %9516 = dma.done.wait [#allocation14], 4096  }
  0x7d   :  { %9517 = vsyncadd [#allocation14], 4294963200  ;;  %v11479_v0 = vmov 0.0   ;;  %v149_v1 = vld [vmem:[#allocation7 + $0x8] sm:$0xff]  ;;  %v152_v2 = vld [vmem:[#allocation7 + $0x20] sm:$0xff]  ;;  %vm9533_vm0 = vmmov 0  }
  0x7e   :  { %277 = vmatprep.mubr.f32.mxu0 %v11479_v0  ;;  %v148_v3 = vld [vmem:[#allocation7] sm:$0xff]  ;;  %v7591_v4 = vpack.c.bf16 %v152_v2, %v149_v1  ;;  %v151_v5 = vld [vmem:[#allocation7 + $0x18] sm:$0xff]  ;;  %v158_v7 = vld [vmem:[#allocation7 + $0x50] sm:$0xff] }
  0x7f   :  { %v155_v6 = vld [vmem:[#allocation7 + $0x38] sm:$0xff]  ;;  %v7593_v8 = vpack.c.bf16 %v151_v5, %v148_v3  ;;  %v154_v10 = vld [vmem:[#allocation7 + $0x30] sm:$0xff]  ;;  %v157_v11 = vld [vmem:[#allocation7 + $0x48] sm:$0xff] }
  0x80   :  { %v7595_v9 = vpack.c.bf16 %v158_v7, %v155_v6  ;;  %v161_v12 = vld [vmem:[#allocation7 + $0x68] sm:$0xff]  ;;  %7592 = vmatprep.subr.bf16.mxu0 %v7591_v4  ;;  %v164_v13 = vld [vmem:[#allocation7 + $0x80] sm:$0xff]  ;;  %v7597_v14 = vpack.c.bf16 %v157_v11, %v154_v10  ;;  %v163_v17 = vld [vmem:[#allocation7 + $0x78] sm:$0xff] }
  0x81   :  { %7594 = vmatpush1.bf16.msra.mxu0 %v7593_v8  ;;  %v7599_v15 = vpack.c.bf16 %v164_v13, %v161_v12  ;;  %v160_v16 = vld [vmem:[#allocation7 + $0x60] sm:$0xff]  ;;  %v167_v18 = vld [vmem:[#allocation7 + $0x98] sm:$0xff]  ;;  %v170_v19 = vld [vmem:[#allocation7 + $0xb0] sm:$0xff] }
  0x82   :  { %7596 = vmatprep.subr.bf16.mxu0 %v7595_v9  ;;  %v7601_v20 = vpack.c.bf16 %v163_v17, %v160_v16  ;;  %v166_v21 = vld [vmem:[#allocation7 + $0x90] sm:$0xff]  ;;  %v7603_v22 = vpack.c.bf16 %v170_v19, %v167_v18  ;;  %v169_v23 = vld [vmem:[#allocation7 + $0xa8] sm:$0xff]  ;;  %v176_v27 = vld [vmem:[#allocation7 + $0xe0] sm:$0xff] }
  0x83   :  { %v150_v24 = vld [vmem:[#allocation7 + $0x10] sm:$0xff]  ;;  %v153_v25 = vld [vmem:[#allocation7 + $0x28] sm:$0xff]  ;;  %v156_v29 = vld [vmem:[#allocation7 + $0x40] sm:$0xff]  ;;  %v7605_v31 = vpack.c.bf16 %v169_v23, %v166_v21 }
  0x84   :  { %v173_v26 = vld [vmem:[#allocation7 + $0xc8] sm:$0xff]  ;;  %v7623_v28 = vpack.c.bf16 %v153_v25, %v150_v24  ;;  %v159_v30 = vld [vmem:[#allocation7 + $0x58] sm:$0xff]  ;;  %v172_v32 = vld [vmem:[#allocation7 + $0xc0] sm:$0xff] }
  0x85   :  { %7598 = vmatpush1.bf16.msra.mxu0 %v7597_v14  ;;  %v7627_v33 = vpack.c.bf16 %v159_v30, %v156_v29  ;;  %v7607_v34 = vpack.c.bf16 %v176_v27, %v173_v26  ;;  %v175_v35 = vld [vmem:[#allocation7 + $0xd8] sm:$0xff]  ;;  %v9725_v36 = vld [vmem:[#allocation4] sm:$0xff]  ;;  %v162_v37 = vld [vmem:[#allocation7 + $0x70] sm:$0xff] }
  0x86   :  { %7600 = vmatprep.subr.bf16.mxu0 %v7599_v15  ;;  %7624 = vmatprep.subr.bf16.mxu1 %v7623_v28  ;;  %v179_v38 = vld [vmem:[#allocation7 + $0xf8] sm:$0xff]  ;;  %v182_v39 = vld [vmem:[#allocation7 + $0x110] sm:$0xff]  ;;  %v165_v40 = vld [vmem:[#allocation7 + $0x88] sm:$0xff]  ;;  %v7609_v42 = vpack.c.bf16 %v175_v35, %v172_v32 }
  0x87   :  { %7626 = vmatpush3.bf16.msra.mxu1 %v7623_v28  ;;  %6651 = vmatprep.mubr.f32.mxu1 %v9725_v36  ;;  %v7631_v41 = vpack.c.bf16 %v165_v40, %v162_v37  ;;  %v168_v43 = vld [vmem:[#allocation7 + $0xa0] sm:$0xff]  ;;  %v171_v44 = vld [vmem:[#allocation7 + $0xb8] sm:$0xff]  ;;  %v7611_v45 = vpack.c.bf16 %v182_v39, %v179_v38  ;;  %v178_v46 = vld [vmem:[#allocation7 + $0xf0] sm:$0xff]  ;;  %v11481_v40 = vmov 0.0|0.0  }
  0x88   :  { %7628 = vmatprep.subr.bf16.mxu1 %v7627_v33  ;;  %v181_v47 = vld [vmem:[#allocation7 + $0x108] sm:$0xff]  ;;  %v188_v49 = vld [vmem:[#allocation7 + $0x140] sm:$0xff]  ;;  %v7635_v50 = vpack.c.bf16 %v171_v44, %v168_v43  ;;  %v174_v51 = vld [vmem:[#allocation7 + $0xd0] sm:$0xff] }
  0x89   :  { %7602 = vmatpush1.bf16.msra.mxu0 %v7601_v20  ;;  %v185_v48 = vld [vmem:[#allocation7 + $0x128] sm:$0xff]  ;;  %v7613_v53 = vpack.c.bf16 %v181_v47, %v178_v46  ;;  %v184_v55 = vld [vmem:[#allocation7 + $0x120] sm:$0xff]  ;;  %v187_v56 = vld [vmem:[#allocation7 + $0x138] sm:$0xff] }
  0x8a   :  { %7604 = vmatprep.subr.bf16.mxu0 %v7603_v22  ;;  %v177_v52 = vld [vmem:[#allocation7 + $0xe8] sm:$0xff]  ;;  %v7615_v54 = vpack.c.bf16 %v188_v49, %v185_v48  ;;  %v191_v57 = vld [vmem:[#allocation7 + $0x158] sm:$0xff]  ;;  %v194_v58 = vld [vmem:[#allocation7 + $0x170] sm:$0xff]  ;;  %v7617_v62 = vpack.c.bf16 %v187_v56, %v184_v55 }
  0x8b   :  { %7630 = vmatpush3.bf16.msra.mxu1 %v7627_v33  ;;  %v7639_v59 = vpack.c.bf16 %v177_v52, %v174_v51  ;;  %v180_v60 = vld [vmem:[#allocation7 + $0x100] sm:$0xff]  ;;  %v183_v61 = vld [vmem:[#allocation7 + $0x118] sm:$0xff]  ;;  %v7619_v63 = vpack.c.bf16 %v194_v58, %v191_v57  ;;  %v190_v1 = vld [vmem:[#allocation7 + $0x150] sm:$0xff] }
  0x8c   :  { %7632 = vmatprep.subr.bf16.mxu1 %v7631_v41  ;;  %v193_v2 = vld [vmem:[#allocation7 + $0x168] sm:$0xff]  ;;  %v465_v4 = vld [vmem:[#allocation9 + $0x20] sm:$0xff]  ;;  %v7643_v5 = vpack.c.bf16 %v183_v61, %v180_v60  ;;  %v186_v6 = vld [vmem:[#allocation7 + $0x130] sm:$0xff] }
  0x8d   :  { %7606 = vmatpush1.bf16.msra.mxu0 %v7605_v31  ;;  %v462_v3 = vld [vmem:[#allocation9 + $0x8] sm:$0xff]  ;;  %v7621_v8 = vpack.c.bf16 %v193_v2, %v190_v1  ;;  %v461_v10 = vld [vmem:[#allocation9] sm:$0xff]  ;;  %v464_v11 = vld [vmem:[#allocation9 + $0x18] sm:$0xff] }
  0x8e   :  { %7608 = vmatprep.subr.bf16.mxu0 %v7607_v34  ;;  %v189_v7 = vld [vmem:[#allocation7 + $0x148] sm:$0xff]  ;;  %v9728_v9 = vpack.c.bf16 %v465_v4, %v462_v3  ;;  %v468_v12 = vld [vmem:[#allocation9 + $0x38] sm:$0xff]  ;;  %v471_v13 = vld [vmem:[#allocation9 + $0x50] sm:$0xff]  ;;  %v9730_v17 = vpack.c.bf16 %v464_v11, %v461_v10 }
  0x8f   :  { %7634 = vmatpush3.bf16.msra.mxu1 %v7631_v41  ;;  %v7647_v14 = vpack.c.bf16 %v189_v7, %v186_v6  ;;  %v192_v15 = vld [vmem:[#allocation7 + $0x160] sm:$0xff]  ;;  %v195_v16 = vld [vmem:[#allocation7 + $0x178] sm:$0xff]  ;;  %v9733_v18 = vpack.c.bf16 %v471_v13, %v468_v12  ;;  %v467_v19 = vld [vmem:[#allocation9 + $0x30] sm:$0xff] }
  0x90   :  { %7636 = vmatprep.subr.bf16.mxu1 %v7635_v50  ;;  %v470_v20 = vld [vmem:[#allocation9 + $0x48] sm:$0xff]  ;;  %v477_v22 = vld [vmem:[#allocation9 + $0x80] sm:$0xff]  ;;  %v7651_v23 = vpack.c.bf16 %v195_v16, %v192_v15  ;;  %v476_v28 = vld [vmem:[#allocation9 + $0x78] sm:$0xff] }
  0x91   :  { %7610 = vmatpush1.bf16.msra.mxu0 %v7609_v42  ;;  %v474_v21 = vld [vmem:[#allocation9 + $0x68] sm:$0xff]  ;;  %v9738_v25 = vpack.c.bf16 %v470_v20, %v467_v19  ;;  %v473_v27 = vld [vmem:[#allocation9 + $0x60] sm:$0xff]  ;;  %v480_v29 = vld [vmem:[#allocation9 + $0x98] sm:$0xff] }
  0x92   :  { %7612 = vmatprep.subr.bf16.mxu0 %v7611_v45  ;;  %v141_v24 = vld [vmem:[#allocation4 + $0x8] sm:$0xff]  ;;  %v9741_v26 = vpack.c.bf16 %v477_v22, %v474_v21  ;;  %v483_v30 = vld [vmem:[#allocation9 + $0xb0] sm:$0xff]  ;;  %v9745_v34 = vpack.c.bf16 %v476_v28, %v473_v27  ;;  %v489_v39 = vld [vmem:[#allocation9 + $0xe0] sm:$0xff] }
  0x93   :  { %7638 = vmatpush3.bf16.msra.mxu1 %v7635_v50  ;;  %v463_v31 = vld [vmem:[#allocation9 + $0x10] sm:$0xff]  ;;  %v466_v32 = vld [vmem:[#allocation9 + $0x28] sm:$0xff]  ;;  %v9748_v35 = vpack.c.bf16 %v483_v30, %v480_v29  ;;  %v469_v42 = vld [vmem:[#allocation9 + $0x40] sm:$0xff] }
  0x94   :  { %7640 = vmatprep.subr.bf16.mxu1 %v7639_v59  ;;  %v142_v33 = vld [vmem:[#allocation4 + $0x10] sm:$0xff]  ;;  %v482_v37 = vld [vmem:[#allocation9 + $0xa8] sm:$0xff]  ;;  %v9751_v41 = vpack.c.bf16 %v466_v32, %v463_v31  ;;  %v472_v43 = vld [vmem:[#allocation9 + $0x58] sm:$0xff] }
  0x95   :  { %7614 = vmatpush1.bf16.msra.mxu0 %v7613_v53  ;;  %v486_v38 = vld [vmem:[#allocation9 + $0xc8] sm:$0xff]  ;;  %v143_v44 = vld [vmem:[#allocation4 + $0x18] sm:$0xff]  ;;  %v485_v47 = vld [vmem:[#allocation9 + $0xc0] sm:$0xff]  ;;  %v9761_v51 = vpack.c.bf16 %v472_v43, %v469_v42 }
  0x96   :  { %7616 = vmatprep.subr.bf16.mxu0 %v7615_v54  ;;  %v9758_v46 = vpack.c.bf16 %v489_v39, %v486_v38  ;;  %v488_v48 = vld [vmem:[#allocation9 + $0xd8] sm:$0xff]  ;;  %v495_v50 = vld [vmem:[#allocation9 + $0x110] sm:$0xff]  ;;  %v478_v53 = vld [vmem:[#allocation9 + $0x88] sm:$0xff] }
  0x97   :  { %7642 = vmatpush3.bf16.msra.mxu1 %v7639_v59  ;;  %v492_v49 = vld [vmem:[#allocation9 + $0xf8] sm:$0xff]  ;;  %v475_v52 = vld [vmem:[#allocation9 + $0x70] sm:$0xff]  ;;  %v144_v54 = vld [vmem:[#allocation4 + $0x20] sm:$0xff]  ;;  %v9766_v55 = vpack.c.bf16 %v488_v48, %v485_v47 }
  0x98   :  { %7644 = vmatprep.subr.bf16.mxu1 %v7643_v5  ;;  %v9769_v56 = vpack.c.bf16 %v495_v50, %v492_v49  ;;  %v491_v57 = vld [vmem:[#allocation9 + $0xf0] sm:$0xff]  ;;  %v494_v58 = vld [vmem:[#allocation9 + $0x108] sm:$0xff]  ;;  %v501_v60 = vld [vmem:[#allocation9 + $0x140] sm:$0xff]  ;;  %v9772_v61 = vpack.c.bf16 %v478_v53, %v475_v52 }
  0x99   :  { %7618 = vmatpush1.bf16.msra.mxu0 %v7617_v62  ;;  %v498_v59 = vld [vmem:[#allocation9 + $0x128] sm:$0xff]  ;;  %v481_v62 = vld [vmem:[#allocation9 + $0xa0] sm:$0xff]  ;;  %v9777_v2 = vpack.c.bf16 %v494_v58, %v491_v57  ;;  %v146_v3 = vld [vmem:[#allocation4 + $0x30] sm:$0xff] }
  0x9a   :  { %7620 = vmatprep.subr.bf16.mxu0 %v7619_v63  ;;  %v484_v63 = vld [vmem:[#allocation9 + $0xb8] sm:$0xff]  ;;  %v145_v1 = vld [vmem:[#allocation4 + $0x28] sm:$0xff]  ;;  %v9780_v4 = vpack.c.bf16 %v501_v60, %v498_v59  ;;  %v487_v11 = vld [vmem:[#allocation9 + $0xd0] sm:$0xff] }
  0x9b   :  { %7646 = vmatpush3.bf16.msra.mxu1 %v7643_v5  ;;  %v497_v5 = vld [vmem:[#allocation9 + $0x120] sm:$0xff]  ;;  %v500_v6 = vld [vmem:[#allocation9 + $0x138] sm:$0xff]  ;;  %v9783_v10 = vpack.c.bf16 %v484_v63, %v481_v62  ;;  %v490_v12 = vld [vmem:[#allocation9 + $0xe8] sm:$0xff] }
  0x9c   :  { %7648 = vmatprep.subr.bf16.mxu1 %v7647_v14  ;;  %v504_v7 = vld [vmem:[#allocation9 + $0x158] sm:$0xff]  ;;  %v9788_v13 = vpack.c.bf16 %v500_v6, %v497_v5  ;;  %v503_v16 = vld [vmem:[#allocation9 + $0x150] sm:$0xff]  ;;  %v506_v19 = vld [vmem:[#allocation9 + $0x168] sm:$0xff]  ;;  %v9794_v20 = vpack.c.bf16 %v490_v12, %v487_v11 }
  0x9d   :  { %7622 = vmatpush1.bf16.msra.mxu0 %v7621_v8  ;;  %v507_v8 = vld [vmem:[#allocation9 + $0x170] sm:$0xff]  ;;  %v493_v21 = vld [vmem:[#allocation9 + $0x100] sm:$0xff]  ;;  %v496_v22 = vld [vmem:[#allocation9 + $0x118] sm:$0xff] }
  0x9e   :  { %7656 = vmatprep.subr.bf16.mxu0 %v9728_v9  ;;  %v9791_v15 = vpack.c.bf16 %v507_v8, %v504_v7  ;;  %v499_v27 = vld [vmem:[#allocation9 + $0x130] sm:$0xff]  ;;  %v502_v28 = vld [vmem:[#allocation9 + $0x148] sm:$0xff]  ;;  %v505_v30 = vld [vmem:[#allocation9 + $0x160] sm:$0xff] }
  0x9f   :  { %7650 = vmatpush3.bf16.msra.mxu1 %v7647_v14  ;;  %v147_v14 = vld [vmem:[#allocation4 + $0x38] sm:$0xff]  ;;  %v9811_v29 = vpack.c.bf16 %v502_v28, %v499_v27  ;;  %v688_v38 = vld [vmem:[#allocation10] sm:$0xff]  ;;  %v690_v42 = vld [vmem:[#allocation10 + $0x10] sm:$0xff] }
  0xa0   :  { %278 = vmatmul.mubr.f32.vlgmr.msra.gmra.mrb[0].mxu0 %v9725_v36  ;;  %7652 = vmatprep.subr.bf16.mxu1 %v7651_v23  ;;  %v479_v36 = vld [vmem:[#allocation9 + $0x90] sm:$0xff]  ;;  %v508_v31 = vld [vmem:[#allocation9 + $0x178] sm:$0xff]  ;;  %v697_v53 = vld [vmem:[#allocation10 + $0x48] sm:$0xff] }
  0xa1   :  { %7658 = vmatpush1.bf16.msra.mxu0 %v9730_v17  ;;  %283 = vmatprep.mubr.f32.mxu0 %v11479_v0  ;;  %v9755_v45 = vpack.c.bf16 %v482_v37, %v479_v36  ;;  %v9817_v32 = vpack.c.bf16 %v508_v31, %v505_v30  ;;  %v692_v36 = vld [vmem:[#allocation10 + $0x20] sm:$0xff]  ;;  %v691_v39 = vld [vmem:[#allocation10 + $0x18] sm:$0xff]  ;;  %v698_v49 = vld [vmem:[#allocation10 + $0x50] sm:$0xff] }
  0xa2   :  { %7660 = vmatprep.subr.bf16.mxu0 %v9733_v18  ;;  %v9827_v43 = vpack.c.bf16 %v691_v39, %v688_v38  ;;  %v695_v48 = vld [vmem:[#allocation10 + $0x38] sm:$0xff]  ;;  %v694_v52 = vld [vmem:[#allocation10 + $0x30] sm:$0xff]  ;;  %v701_v60 = vld [vmem:[#allocation10 + $0x68] sm:$0xff] }
  0xa3   :  { %7654 = vmatpush3.bf16.msra.mxu1 %v7651_v23  ;;  %v9801_v23 = vpack.c.bf16 %v506_v19, %v503_v16  ;;  %v9834_v50 = vpack.c.bf16 %v698_v49, %v695_v48  ;;  %v9837_v57 = vpack.c.bf16 %v697_v53, %v694_v52  ;;  %v699_v58 = vld [vmem:[#allocation10 + $0x58] sm:$0xff]  ;;  %v704_v62 = vld [vmem:[#allocation10 + $0x80] sm:$0xff]  ;;  %v702_v5 = vld [vmem:[#allocation10 + $0x70] sm:$0xff] }
  0xa4   :  { %284 = vmatmul.mubr.f32.gmra.mrb[2].mxu0 %v141_v24  ;;  %7687 = vmatprep.subr.bf16.mxu1 %v11481_v40  ;;  %v9844_v63 = vpack.c.bf16 %v704_v62, %v701_v60  ;;  %v705_v7 = vld [vmem:[#allocation10 + $0x88] sm:$0xff]  ;;  %v707_v11 = vld [vmem:[#allocation10 + $0x98] sm:$0xff]  ;;  %v710_v12 = vld [vmem:[#allocation10 + $0xb0] sm:$0xff] }
  0xa5   :  { %7662 = vmatpush1.bf16.msra.mxu0 %v9738_v25  ;;  %289 = vmatprep.mubr.f32.mxu0 %v11479_v0  ;;  %v9850_v8 = vpack.c.bf16 %v705_v7, %v702_v5  ;;  %v706_v16 = vld [vmem:[#allocation10 + $0x90] sm:$0xff]  ;;  %v709_v19 = vld [vmem:[#allocation10 + $0xa8] sm:$0xff]  ;;  %v711_v27 = vld [vmem:[#allocation10 + $0xb8] sm:$0xff] }
  0xa6   :  { %7664 = vmatprep.subr.bf16.mxu0 %v9741_v26  ;;  %6652 = vmatmul.mubr.f32.vlgmr.msra.gmra.mrb[0].mxu1 %v141_v24  ;;  %v9805_v24 = vpack.c.bf16 %v496_v22, %v493_v21  ;;  %v708_v21 = vld [vmem:[#allocation10 + $0xa0] sm:$0xff]  ;;  %v9857_v22 = vpack.c.bf16 %v709_v19, %v706_v16  ;;  %v713_v30 = vld [vmem:[#allocation10 + $0xc8] sm:$0xff]  ;;  %v715_v38 = vld [vmem:[#allocation10 + $0xd8] sm:$0xff] }
  0xa7   :  { %7689 = vmatpush3.bf16.msra.mxu1 %v9751_v41  ;;  %6654 = vmatprep.mubr.f32.mxu1 %v142_v33  ;;  %v9860_v28 = vpack.c.bf16 %v711_v27, %v708_v21  ;;  %v716_v31 = vld [vmem:[#allocation10 + $0xe0] sm:$0xff]  ;;  %v714_v39 = vld [vmem:[#allocation10 + $0xd0] sm:$0xff]  ;;  %v719_v49 = vld [vmem:[#allocation10 + $0xf8] sm:$0xff] }
  0xa8   :  { %290 = vmatmul.mubr.f32.gmra.mrb[4].mxu0 %v142_v33  ;;  %7690 = vmatprep.subr.bf16.mxu1 %v11481_v40  ;;  %v689_v33 = vld [vmem:[#allocation10 + $0x8] sm:$0xff]  ;;  %v722_v52 = vld [vmem:[#allocation10 + $0x110] sm:$0xff]  ;;  %v720_v60 = vld [vmem:[#allocation10 + $0x100] sm:$0xff] }
  0xa9   :  { %7666 = vmatpush1.bf16.msra.mxu0 %v9745_v34  ;;  %295 = vmatprep.mubr.f32.mxu0 %v11479_v0  ;;  %v9825_v37 = vpack.c.bf16 %v692_v36, %v689_v33  ;;  %v9864_v33 = vpack.c.bf16 %v716_v31, %v713_v30  ;;  %v712_v36 = vld [vmem:[#allocation10 + $0xc0] sm:$0xff]  ;;  %v9874_v53 = vpack.c.bf16 %v722_v52, %v719_v49  ;;  %v727_v16 = vld [vmem:[#allocation10 + $0x138] sm:$0xff]  ;;  %v726_v19 = vld [vmem:[#allocation10 + $0x130] sm:$0xff] }
  0xaa   :  { %7668 = vmatprep.subr.bf16.mxu0 %v9748_v35  ;;  %6655 = vmatmul.mubr.f32.gmra.mrb[2].mxu1 %v143_v44  ;;  %v728_v5 = vld [vmem:[#allocation10 + $0x140] sm:$0xff]  ;;  %v729_v27 = vld [vmem:[#allocation10 + $0x148] sm:$0xff]  ;;  %v731_v30 = vld [vmem:[#allocation10 + $0x158] sm:$0xff] }
  0xab   :  { %7692 = vmatpush3.bf16.msra.mxu1 %v9761_v51  ;;  %6657 = vmatprep.mubr.f32.mxu1 %v144_v54  ;;  %v734_v31 = vld [vmem:[#allocation10 + $0x170] sm:$0xff]  ;;  %v732_v49 = vld [vmem:[#allocation10 + $0x160] sm:$0xff]  ;;  %v735_v52 = vld [vmem:[#allocation10 + $0x178] sm:$0xff] }
  0xac   :  { %296 = vmatmul.mubr.f32.gmra.mrb[6].mxu0 %v143_v44  ;;  %7693 = vmatprep.subr.bf16.mxu1 %v11481_v40  ;;  %v693_v44 = vld [vmem:[#allocation10 + $0x28] sm:$0xff] }
  0xad   :  { %7670 = vmatpush1.bf16.msra.mxu0 %v9755_v45  ;;  %301 = vmatprep.mubr.f32.mxu0 %v11479_v0  ;;  %v9830_v47 = vpack.c.bf16 %v693_v44, %v690_v42  ;;  %v9867_v42 = vpack.c.bf16 %v715_v38, %v712_v36  ;;  %v717_v44 = vld [vmem:[#allocation10 + $0xe8] sm:$0xff]  ;;  %v9889_v36 = vpack.c.bf16 %v729_v27, %v726_v19  ;;  %v196_v19 = vld [vmem:[%s11467_s2] sm:$0x7] }
  0xae   :  { %7672 = vmatprep.subr.bf16.mxu0 %v9758_v46  ;;  %6658 = vmatmul.mubr.f32.gmra.mrb[4].mxu1 %v145_v1  ;;  %v9870_v48 = vpack.c.bf16 %v717_v44, %v714_v39  ;;  %v9891_v38 = vpack.c.bf16 %v734_v31, %v731_v30  ;;  %v730_v39 = vld [vmem:[#allocation10 + $0x150] sm:$0xff]  ;;  %v733_v44 = vld [vmem:[#allocation10 + $0x168] sm:$0xff] }
  0xaf   :  { %7695 = vmatpush3.bf16.msra.mxu1 %v9772_v61  ;;  %6660 = vmatprep.mubr.f32.mxu1 %v146_v3  ;;  %11599 = vst [vmem:[#allocation26_spill] sm:$0xff] %v9889_v36 }
  0xb0   :  { %302 = vmatmul.mubr.f32.gmra.mrb[8].mxu0 %v144_v54  ;;  %7696 = vmatprep.subr.bf16.mxu1 %v11481_v40  ;;  %v696_v54 = vld [vmem:[#allocation10 + $0x40] sm:$0xff]  ;;  %11600 = vst [vmem:[#allocation27_spill] sm:$0xff] %v9891_v38 }
  0xb1   :  { %7674 = vmatpush1.bf16.msra.mxu0 %v9766_v55  ;;  %307 = vmatprep.mubr.f32.mxu0 %v11479_v0  ;;  %v9840_v59 = vpack.c.bf16 %v699_v58, %v696_v54  ;;  %v718_v54 = vld [vmem:[#allocation10 + $0xf0] sm:$0xff]  ;;  %v721_v58 = vld [vmem:[#allocation10 + $0x108] sm:$0xff] }
  0xb2   :  { %7676 = vmatprep.subr.bf16.mxu0 %v9769_v56  ;;  %6661 = vmatmul.mubr.f32.gmra.mrb[6].mxu1 %v147_v14  ;;  %v9877_v62 = vpack.c.bf16 %v721_v58, %v718_v54  ;;  %v895_v54 = vld [vmem:[#allocation12 + $0x8] sm:$0xff]  ;;  %v898_v58 = vld [vmem:[#allocation12 + $0x20] sm:$0xff] }
  0xb3   :  { %7698 = vmatpush3.bf16.msra.mxu1 %v9783_v10  ;;  %6695 = vmatprep.mubr.msk.f32.mxu1 %vm9533_vm0, %v11479_v0 }
  0xb4   :  { %308 = vmatmul.mubr.f32.gmra.mrb[10].mxu0 %v145_v1  ;;  %7699 = vmatprep.subr.bf16.mxu1 %v11481_v40  ;;  %v700_v1 = vld [vmem:[#allocation10 + $0x60] sm:$0xff]  ;;  %11595 = vst [vmem:[#allocation22_spill] sm:$0xff] %v9877_v62 }
  0xb5   :  { %7678 = vmatpush1.bf16.msra.mxu0 %v9777_v2  ;;  %313 = vmatprep.mubr.f32.mxu0 %v11479_v0 }
  0xb6   :  { %7680 = vmatprep.subr.bf16.mxu0 %v9780_v4 }
  0xb7   :  { %7701 = vmatpush3.bf16.msra.mxu1 %v9794_v20 }
  0xb8   :  { %314 = vmatmul.mubr.f32.gmra.mrb[12].mxu0 %v146_v3  ;;  %7702 = vmatprep.subr.bf16.mxu1 %v11481_v40  ;;  %v703_v3 = vld [vmem:[#allocation10 + $0x78] sm:$0xff] }
  0xb9   :  { %7682 = vmatpush1.bf16.msra.mxu0 %v9788_v13  ;;  %319 = vmatprep.mubr.f32.mxu0 %v11479_v0  ;;  %v9847_v6 = vpack.c.bf16 %v703_v3, %v700_v1  ;;  %v723_v1 = vld [vmem:[#allocation10 + $0x118] sm:$0xff]  ;;  %v725_v3 = vld [vmem:[#allocation10 + $0x128] sm:$0xff] }
  0xba   :  { %7684 = vmatprep.subr.bf16.mxu0 %v9791_v15  ;;  %v9880_v7 = vpack.c.bf16 %v723_v1, %v720_v60  ;;  %v9895_v60 = vpack.c.bf16 %v733_v44, %v730_v39  ;;  %v9899_v1 = vpack.c.bf16 %v735_v52, %v732_v49 }
  0xbb   :  { %7704 = vmatpush3.bf16.msra.mxu1 %v9805_v24 }
  0xbc   :  { %320 = vmatmul.mubr.f32.gmra.mrb[14].mxu0 %v147_v14  ;;  %7705 = vmatprep.subr.bf16.mxu1 %v11481_v40  ;;  %v9854_v14 = vpack.c.bf16 %v710_v12, %v707_v11  ;;  %11596 = vst [vmem:[#allocation23_spill] sm:$0xff] %v9880_v7  ;;  %v9882_v11 = vpack.c.bf16 %v728_v5, %v725_v3  ;;  %v724_v12 = vld [vmem:[#allocation10 + $0x120] sm:$0xff]  ;;  %11601 = vst [vmem:[#allocation28_spill] sm:$0xff] %v9895_v60  ;;  %v198_v5 = vlaneseq }
  0xbd   :  { %7686 = vmatpush1.bf16.msra.mxu0 %v9801_v23  ;;  %590 = vmatprep.mubr.f32.mxu0 %v11479_v0  ;;  %v9885_v21 = vpack.c.bf16 %v727_v16, %v724_v12  ;;  %11602 = vst [vmem:[#allocation29_spill] sm:$0xff] %v9899_v1  ;;  %v9901_v3 = vpack.c.bf16 %v898_v58, %v895_v54 }
  0xbe   :  { %7712 = vmatprep.subr.bf16.mxu0 %v9825_v37  ;;  %11597 = vst [vmem:[#allocation24_spill] sm:$0xff] %v9882_v11  ;;  %v199_v12 = vshrl.u32 %v198_v5, 7 }
  0xbf   :  { %7707 = vmatpush3.bf16.msra.mxu1 %v9811_v29  ;;  %11598 = vst [vmem:[#allocation25_spill] sm:$0xff] %v9885_v21  ;;  %11603 = vst [vmem:[#allocation30_spill] sm:$0xff] %v9901_v3 }
  0xc0   :  { %591 = vmatmul.mubr.f32.vlgmr.msra.gmra.mrb[0].mxu0 %v11479_v0  ;;  %7708 = vmatprep.subr.bf16.mxu1 %v11481_v40  ;;  %v9908_v16 = vsub.s32 2, %v199_v12 }
  0xc1   :  { %817 = vmatprep.mubr.f32.mxu0 %v11479_v0  ;;  %7714 = vmatpush1.bf16.msra.mxu0 %v9827_v43 }
  0xc2   :  { %7716 = vmatprep.subr.bf16.mxu0 %v9834_v50  ;;  %v209_v27 = vrot.slane %v196_v19, %v9908_v16 }
  0xc3   :  { %7710 = vmatpush3.bf16.msra.mxu1 %v9817_v32 }
  0xc4   :  { %7743 = vmatprep.subr.bf16.mxu1 %v11481_v40 }
  0xc5   :  { %7718 = vmatpush1.bf16.msra.mxu0 %v9837_v57 }
  0xc6   :  { %6696 = vmatmul.mubr.f32.vlgmr.msra.gmra.mrb[8].mxu1 %v11479_v0  ;;  %7720 = vmatprep.subr.bf16.mxu0 %v9844_v63 }
  0xc7   :  { %6730 = vmatprep.mubr.msk.f32.mxu1 %vm9533_vm0, %v11479_v0  ;;  %7745 = vmatpush3.bf16.msra.mxu1 %v9830_v47 }
  0xc8   :  { %7746 = vmatprep.subr.bf16.mxu1 %v11481_v40 }
  0xc9   :  { %7722 = vmatpush1.bf16.msra.mxu0 %v9847_v6 }
  0xca   :  { %7724 = vmatprep.subr.bf16.mxu0 %v9854_v14 }
  0xcb   :  { %7748 = vmatpush3.bf16.msra.mxu1 %v9840_v59 }
  0xcc   :  { %7749 = vmatprep.subr.bf16.mxu1 %v11481_v40 }
  0xcd   :  { %7726 = vmatpush1.bf16.msra.mxu0 %v9857_v22 }
  0xce   :  { %7728 = vmatprep.subr.bf16.mxu0 %v9864_v33 }
  0xcf   :  { %7751 = vmatpush3.bf16.msra.mxu1 %v9850_v8 }
  0xd0   :  { %7752 = vmatprep.subr.bf16.mxu1 %v11481_v40 }
  0xd1   :  { %7730 = vmatpush1.bf16.msra.mxu0 %v9867_v42 }
  0xd2   :  { %7732 = vmatprep.subr.bf16.mxu0 %v9874_v53 }
  0xd3   :  { %7754 = vmatpush3.bf16.msra.mxu1 %v9860_v28 }
  0xd4   :  { %7755 = vmatprep.subr.bf16.mxu1 %v11481_v40 }
  0xd5   :  { %7734 = vmatpush1.bf16.msra.mxu0 %v9877_v62 }
  0xd6   :  { %7736 = vmatprep.subr.bf16.mxu0 %v9882_v11 }
  0xd7   :  { %7757 = vmatpush3.bf16.msra.mxu1 %v9870_v48 }
  0xd8   :  { %7758 = vmatprep.subr.bf16.mxu1 %v11481_v40 }
  0xd9   :  { %7738 = vmatpush1.bf16.msra.mxu0 %v9885_v21 }
  0xda   :  { %7740 = vmatprep.subr.bf16.mxu0 %v9891_v38 }
  0xdb   :  { %7760 = vmatpush3.bf16.msra.mxu1 %v9880_v7 }
  0xdc   :  { %7761 = vmatprep.subr.bf16.mxu1 %v11481_v40 }
  0xdd   :  { %7742 = vmatpush1.bf16.msra.mxu0 %v9895_v60 }
  0xde   :  { %7768 = vmatprep.subr.bf16.mxu0 %v9901_v3  ;;  %v9924_v3 = vsub.s32 0, %v199_v12 }
  0xdf   :  { %7763 = vmatpush3.bf16.msra.mxu1 %v9889_v36 }
  0xe0   :  { %7764 = vmatprep.subr.bf16.mxu1 %v11481_v40  ;;  %11609 = vst [vmem:[#allocation36_spill] sm:$0xff] %v9924_v3 }
  0xe3   :  { %7766 = vmatpush3.bf16.msra.mxu1 %v9899_v1 }
  0xe4   :  { %7799 = vmatprep.subr.bf16.mxu1 %v11481_v40 }
 0x179   :  { %v6653_v30 = vpop.f32.mrb[0].mxu1 }
 0x17a   :  { %v9914_v31 = vadd.f32 %v6653_v30, %v209_v27  ;;  %v392_v39 = vpop.f32.mrb[1].mxu1  ;;  %v509_v30 = vld [vmem:[%s11469_s4] sm:$0x7] }
 0x17b   :  { %v393_v62 = vadd.f32 %v392_v39, %v209_v27  ;;  %v903_v39 = vld [vmem:[#allocation12 + $0x48] sm:$0xff] }
 0x17c   :  { %11604 = vst [vmem:[#allocation31_spill] sm:$0xff] %v9914_v31 }
 0x17d   :  { %v6656_v44 = vpop.f32.mrb[2].mxu1 }
 0x17e   :  { %v9916_v49 = vadd.f32 %v6656_v44, %v209_v27  ;;  %v402_v52 = vpop.f32.mrb[3].mxu1 }
 0x17f   :  { %v9918_v54 = vadd.f32 %v402_v52, %v209_v27 }
 0x180   :  { %11605 = vst [vmem:[#allocation32_spill] sm:$0xff] %v9916_v49  ;;  %v9931_v49 = vsub.s32 1, %v199_v12 }
 0x181   :  { %11606 = vst [vmem:[#allocation33_spill] sm:$0xff] %v9918_v54  ;;  %v6659_v58 = vpop.f32.mrb[4].mxu1 }
 0x182   :  { %v9920_v5 = vadd.f32 %v6659_v58, %v209_v27  ;;  %v412_v0 = vpop.f32.mrb[5].mxu1  ;;  %11611 = vst [vmem:[#allocation38_spill] sm:$0xff] %v9931_v49  ;;  %v9936_v58 = vrot.slane %v196_v19, %v9924_v3 }
 0x183   :  { %v9922_v40 = vadd.f32 %v412_v0, %v209_v27  ;;  %v514_v0 = vrot.slane %v509_v30, %v9924_v3 }
 0x184   :  { %11607 = vst [vmem:[#allocation34_spill] sm:$0xff] %v9920_v5  ;;  %11613 = vst [vmem:[#allocation40_spill] sm:$0xff] %v9936_v58  ;;  %v9940_v5 = vrot.slane %v196_v19, %v9931_v49  ;;  %v522_v19 = vrot.slane %v509_v30, %v9908_v16 }
 0x185   :  { %11608 = vst [vmem:[#allocation35_spill] sm:$0xff] %v9922_v40  ;;  %v6662_v31 = vpop.f32.mrb[6].mxu1  ;;  %v518_v40 = vrot.slane %v509_v30, %v9931_v49  ;;  %v9063_v54 = vadd.f32 %v514_v0, %v9936_v58 }
 0x186   :  { %v9929_v1 = vadd.f32 %v6662_v31, %v209_v27  ;;  %v422_v44 = vpop.f32.mrb[7].mxu1  ;;  %11614 = vst [vmem:[#allocation41_spill] sm:$0xff] %v9940_v5 }
 0x187   :  { %v9933_v52 = vadd.f32 %v422_v44, %v209_v27  ;;  %v9065_v31 = vadd.f32 %v518_v40, %v9940_v5  ;;  %v900_v27 = vld [vmem:[#allocation12 + $0x30] sm:$0xff] }
 0x188   :  { %11610 = vst [vmem:[#allocation37_spill] sm:$0xff] %v9929_v1 }
 0x189   :  { %11612 = vst [vmem:[#allocation39_spill] sm:$0xff] %v9933_v52 }
 0x193   :  { %v592_v60 = vpop.f32.mrb[0].mxu0 }
 0x194   :  { %v9064_v1 = vadd.f32 %v9063_v54, %v592_v60  ;;  %v594_v12 = vpop.f32.mrb[1].mxu0 }
 0x195   :  { %v9066_v44 = vadd.f32 %v9065_v31, %v594_v12  ;;  %v897_v31 = vld [vmem:[#allocation12 + $0x18] sm:$0xff] }
 0x196   :  { %v6105_v38 = vmul.f32 -1.442695, %v9064_v1 }
 0x197   :  { %v6106_v52 = vmul.f32 -1.442695, %v9066_v44 }
 0x198   :  { %9174 = vpow2.f32 %v6105_v38  ;;  %v894_v38 = vld [vmem:[#allocation12] sm:$0xff] }
 0x199   :  { %v663_v36 = vpop.f32.mrb[8].mxu1  ;;  %9176 = vpow2.f32 %v6106_v52  ;;  %v899_v52 = vld [vmem:[#allocation12 + $0x28] sm:$0xff]  ;;  %v9946_v5 = vpack.c.bf16 %v897_v31, %v894_v38  ;;  %v11618_v38 = vmov 0.0|0.0   ;;  %v909_v31 = vld [vmem:[#allocation12 + $0x78] sm:$0xff] }
 0x19a   :  { %v6697_v21 = vpop.f32.mrb[9].mxu1  ;;  %v664_v0 = vadd.f32 %v663_v36, %v522_v19  ;;  %v907_v19 = vld [vmem:[#allocation12 + $0x68] sm:$0xff] }
 0x19b   :  { %v896_v21 = vld [vmem:[#allocation12 + $0x10] sm:$0xff] }
 0x19c   :  { %v9948_v36 = vpack.c.bf16 %v899_v52, %v896_v21  ;;  %v908_v21 = vld [vmem:[#allocation12 + $0x70] sm:$0xff]  ;;  %v911_v52 = vld [vmem:[#allocation12 + $0x88] sm:$0xff] }
 0x1a2   :  { %v9175_v3 = vpop.eup %9174 }
 0x1a3   :  { %v671_v11 = vadd.f32 1.0, %v9175_v3  ;;  %v9177_v49 = vpop.eup %9176  ;;  %v901_v3 = vld [vmem:[#allocation12 + $0x38] sm:$0xff] }
 0x1a4   :  { %v678_v7 = vadd.f32 1.0, %v9177_v49  ;;  %v902_v49 = vld [vmem:[#allocation12 + $0x40] sm:$0xff] }
 0x1a5   :  { %9178 = vrcp.f32 %v671_v11  ;;  %v904_v11 = vld [vmem:[#allocation12 + $0x50] sm:$0xff] }
 0x1a6   :  { %9180 = vrcp.f32 %v678_v7 }
 0x1af   :  { %v9179_v58 = vpop.eup %9178 }
 0x1b0   :  { %v681_v40 = vmul.f32 %v9179_v58, %v664_v0  ;;  %v9181_v1 = vpop.eup %9180  ;;  %v905_v58 = vld [vmem:[#allocation12 + $0x58] sm:$0xff]  ;;  %v910_v0 = vld [vmem:[#allocation12 + $0x80] sm:$0xff] }
 0x1b1   :  { %v684_v54 = vsub.f32 1.0, %v9181_v1  ;;  %v686_v30 = vmul.f32 0.0, %v9181_v1  ;;  %v906_v1 = vld [vmem:[#allocation12 + $0x60] sm:$0xff] }
 0x1b2   :  { %v682_v60 = vadd.f32 %v681_v40, %v393_v62  ;;  %v9952_v62 = vpack.c.bf16 %v904_v11, %v901_v3  ;;  %v9958_v40 = vpack.c.bf16 %v903_v39, %v900_v27  ;;  %v916_v3 = vld [vmem:[#allocation12 + $0xb0] sm:$0xff]  ;;  %v11620_v11 = vmov 0.0  }
 0x1b3   :  { %v912_v27 = vld [vmem:[#allocation12 + $0x90] sm:$0xff] }
 0x1b4   :  { %9182 = vtanh.f32 %v682_v60  ;;  %11615 = vst [vmem:[#allocation42_spill] sm:$0xff] %v9952_v62  ;;  %11616 = vst [vmem:[#allocation43_spill] sm:$0xff] %v9958_v40  ;;  %v9960_v60 = vpack.c.bf16 %v905_v58, %v902_v49  ;;  %v915_v49 = vld [vmem:[#allocation12 + $0xa8] sm:$0xff]  ;;  %v914_v58 = vld [vmem:[#allocation12 + $0xa0] sm:$0xff] }
 0x1b6   :  { %11617 = vst [vmem:[#allocation44_spill] sm:$0xff] %v9960_v60 }
 0x1be   :  { %v9183_v12 = vpop.eup %9182 }
 0x1bf   :  { %v685_v44 = vmul.f32 %v9183_v12, %v684_v54  ;;  %v9964_v54 = vpack.c.bf16 %v910_v0, %v907_v19  ;;  %v913_v12 = vld [vmem:[#allocation12 + $0x98] sm:$0xff]  ;;  %v919_v0 = vld [vmem:[#allocation12 + $0xc8] sm:$0xff] }
 0x1c0   :  { %v9977_v39 = vpack.c.bf16 %v916_v3, %v913_v12  ;;  %v917_v19 = vld [vmem:[#allocation12 + $0xb8] sm:$0xff]  ;;  %v920_v3 = vld [vmem:[#allocation12 + $0xd0] sm:$0xff] }
 0x1c1   :  { %v9950_v7 = vadd.f32 %v686_v30, %v685_v44  ;;  %11619 = vst [vmem:[#allocation45_spill] sm:$0xff] %v9964_v54  ;;  %v9971_v44 = vpack.c.bf16 %v909_v31, %v906_v1  ;;  %v9973_v30 = vpack.c.bf16 %v911_v52, %v908_v21  ;;  %v9981_v1 = vpack.c.bf16 %v915_v49, %v912_v27  ;;  %v918_v21 = vld [vmem:[#allocation12 + $0xc0] sm:$0xff]  ;;  %v921_v12 = vld [vmem:[#allocation12 + $0xd8] sm:$0xff] }
 0x1c2   :  { %11623 = vst [vmem:[#allocation48_spill] sm:$0xff] %v9977_v39  ;;  %v9983_v31 = vpack.c.bf16 %v917_v19, %v914_v58  ;;  %v9991_v27 = vpack.c.bf16 %v921_v12, %v918_v21  ;;  %v924_v58 = vld [vmem:[#allocation12 + $0xf0] sm:$0xff]  ;;  %v927_v19 = vld [vmem:[#allocation12 + $0x108] sm:$0xff]  ;;  %v930_v12 = vld [vmem:[#allocation12 + $0x120] sm:$0xff] }
 0x1c3   :  { %818 = vmatmul.mubr.f32.vlgmr.msra.gmra.mrb[16].mxu0 %v9950_v7  ;;  %6731 = vmatmul.mubr.f32.vlgmr.msra.gmra.mrb[10].mxu1 %v9950_v7  ;;  %11621 = vst [vmem:[#allocation46_spill] sm:$0xff] %v9971_v44  ;;  %11622 = vst [vmem:[#allocation47_spill] sm:$0xff] %v9973_v30  ;;  %v10001_v21 = vpack.c.bf16 %v927_v19, %v924_v58  ;;  %v936_v19 = vld [vmem:[#allocation12 + $0x150] sm:$0xff] }
 0x1c4   :  { %7770 = vmatpush1.bf16.msra.mxu0 %v9946_v5  ;;  %7801 = vmatpush3.bf16.msra.mxu1 %v9948_v36  ;;  %11624 = vst [vmem:[#allocation49_spill] sm:$0xff] %v9981_v1  ;;  %11625 = vst [vmem:[#allocation50_spill] sm:$0xff] %v9983_v31 }
 0x1c5   :  { %7772 = vmatprep.subr.bf16.mxu0 %v9952_v62  ;;  %7802 = vmatprep.subr.bf16.mxu1 %v11618_v38  ;;  %v922_v62 = vld [vmem:[#allocation12 + $0xe0] sm:$0xff]  ;;  %11628 = vst [vmem:[#allocation53_spill] sm:$0xff] %v10001_v21 }
 0x1c6   :  { %1023 = vmatprep.mubr.f32.mxu0 %v11620_v11  ;;  %6765 = vmatprep.mubr.msk.f32.mxu1 %vm9533_vm0, %v11620_v11  ;;  %v9987_v52 = vpack.c.bf16 %v922_v62, %v919_v0  ;;  %v926_v0 = vld [vmem:[#allocation12 + $0x100] sm:$0xff] }
 0x1c8   :  { %7774 = vmatpush1.bf16.msra.mxu0 %v9958_v40  ;;  %7804 = vmatpush3.bf16.msra.mxu1 %v9960_v60  ;;  %11626 = vst [vmem:[#allocation51_spill] sm:$0xff] %v9987_v52  ;;  %v925_v60 = vld [vmem:[#allocation12 + $0xf8] sm:$0xff]  ;;  %v928_v40 = vld [vmem:[#allocation12 + $0x110] sm:$0xff] }
 0x1c9   :  { %7776 = vmatprep.subr.bf16.mxu0 %v9964_v54  ;;  %7805 = vmatprep.subr.bf16.mxu1 %v11618_v38  ;;  %v923_v54 = vld [vmem:[#allocation12 + $0xe8] sm:$0xff]  ;;  %v9997_v62 = vpack.c.bf16 %v928_v40, %v925_v60  ;;  %v933_v60 = vld [vmem:[#allocation12 + $0x138] sm:$0xff] }
 0x1ca   :  { %v9993_v49 = vpack.c.bf16 %v923_v54, %v920_v3  ;;  %v932_v3 = vld [vmem:[#allocation12 + $0x130] sm:$0xff]  ;;  %v10011_v58 = vpack.c.bf16 %v933_v60, %v930_v12 }
 0x1cb   :  { %11627 = vst [vmem:[#allocation52_spill] sm:$0xff] %v9997_v62 }
 0x1cc   :  { %7778 = vmatpush1.bf16.msra.mxu0 %v9971_v44  ;;  %7807 = vmatpush3.bf16.msra.mxu1 %v9973_v30  ;;  %v931_v30 = vld [vmem:[#allocation12 + $0x128] sm:$0xff]  ;;  %v934_v44 = vld [vmem:[#allocation12 + $0x140] sm:$0xff] }
 0x1cd   :  { %7780 = vmatprep.subr.bf16.mxu0 %v9977_v39  ;;  %7808 = vmatprep.subr.bf16.mxu1 %v11618_v38  ;;  %v929_v39 = vld [vmem:[#allocation12 + $0x118] sm:$0xff]  ;;  %v10007_v40 = vpack.c.bf16 %v934_v44, %v931_v30  ;;  %v939_v30 = vld [vmem:[#allocation12 + $0x168] sm:$0xff] }
 0x1ce   :  { %v10003_v54 = vpack.c.bf16 %v929_v39, %v926_v0  ;;  %v938_v0 = vld [vmem:[#allocation12 + $0x160] sm:$0xff] }
 0x1d0   :  { %7782 = vmatpush1.bf16.msra.mxu0 %v9981_v1  ;;  %7810 = vmatpush3.bf16.msra.mxu1 %v9983_v31  ;;  %v937_v31 = vld [vmem:[#allocation12 + $0x158] sm:$0xff]  ;;  %v940_v1 = vld [vmem:[#allocation12 + $0x170] sm:$0xff] }
 0x1d1   :  { %7784 = vmatprep.subr.bf16.mxu0 %v9987_v52  ;;  %7811 = vmatprep.subr.bf16.mxu1 %v11618_v38  ;;  %v935_v52 = vld [vmem:[#allocation12 + $0x148] sm:$0xff]  ;;  %v10017_v44 = vpack.c.bf16 %v940_v1, %v937_v31 }
 0x1d2   :  { %v10013_v39 = vpack.c.bf16 %v935_v52, %v932_v3  ;;  %v11640_v52 = vld [vmem:[#allocation40_spill] sm:$0xff] }
 0x1d4   :  { %7786 = vmatpush1.bf16.msra.mxu0 %v9991_v27  ;;  %7813 = vmatpush3.bf16.msra.mxu1 %v9993_v49 }
 0x1d5   :  { %7788 = vmatprep.subr.bf16.mxu0 %v9997_v62  ;;  %7814 = vmatprep.subr.bf16.mxu1 %v11618_v38  ;;  %v941_v62 = vld [vmem:[#allocation12 + $0x178] sm:$0xff] }
 0x1d6   :  { %v10023_v12 = vpack.c.bf16 %v941_v62, %v938_v0 }
 0x1d8   :  { %7790 = vmatpush1.bf16.msra.mxu0 %v10001_v21  ;;  %7816 = vmatpush3.bf16.msra.mxu1 %v10003_v54  ;;  %v10021_v21 = vpack.c.bf16 %v939_v30, %v936_v19  ;;  %v11641_v30 = vld [vmem:[#allocation41_spill] sm:$0xff] }
 0x1d9   :  { %7792 = vmatprep.subr.bf16.mxu0 %v10007_v40  ;;  %7817 = vmatprep.subr.bf16.mxu1 %v11618_v38 }
 0x1dc   :  { %7794 = vmatpush1.bf16.msra.mxu0 %v10011_v58  ;;  %7819 = vmatpush3.bf16.msra.mxu1 %v10013_v39 }
 0x1dd   :  { %7796 = vmatprep.subr.bf16.mxu0 %v10017_v44  ;;  %7820 = vmatprep.subr.bf16.mxu1 %v11618_v38 }
 0x1e0   :  { %7798 = vmatpush1.bf16.msra.mxu0 %v10021_v21  ;;  %7822 = vmatpush3.bf16.msra.mxu1 %v10023_v12 }
 0x1e1   :  { %7824 = vmatprep.subr.bf16.mxu0 %v9728_v9  ;;  %7855 = vmatprep.subr.bf16.mxu1 %v11618_v38  ;;  %v11629_v9 = vld [vmem:[#allocation22_spill] sm:$0xff] }
 0x1e3   :  { %1024 = vmatmul.mubr.f32.vlgmr.msra.gmra.mrb[16].mxu0 %v11620_v11  ;;  %6766 = vmatmul.mubr.f32.vlgmr.msra.gmra.mrb[12].mxu1 %v11620_v11 }
 0x1e4   :  { %7826 = vmatpush1.bf16.msra.mxu0 %v9730_v17  ;;  %7857 = vmatpush3.bf16.msra.mxu1 %v9751_v41  ;;  %v11630_v17 = vld [vmem:[#allocation23_spill] sm:$0xff]  ;;  %v11636_v41 = vld [vmem:[#allocation29_spill] sm:$0xff] }
 0x1e5   :  { %7828 = vmatprep.subr.bf16.mxu0 %v9733_v18  ;;  %7858 = vmatprep.subr.bf16.mxu1 %v11618_v38  ;;  %v11631_v18 = vld [vmem:[#allocation24_spill] sm:$0xff] }
 0x1e6   :  { %1257 = vmatprep.mubr.f32.mxu0 %v11620_v11  ;;  %6800 = vmatprep.mubr.msk.f32.mxu1 %vm9533_vm0, %v11620_v11 }
 0x1e8   :  { %7830 = vmatpush1.bf16.msra.mxu0 %v9738_v25  ;;  %7860 = vmatpush3.bf16.msra.mxu1 %v9761_v51  ;;  %v11632_v25 = vld [vmem:[#allocation25_spill] sm:$0xff] }
 0x1e9   :  { %7832 = vmatprep.subr.bf16.mxu0 %v9741_v26  ;;  %7861 = vmatprep.subr.bf16.mxu1 %v11618_v38  ;;  %v11633_v26 = vld [vmem:[#allocation26_spill] sm:$0xff] }
 0x1ec   :  { %7834 = vmatpush1.bf16.msra.mxu0 %v9745_v34  ;;  %7863 = vmatpush3.bf16.msra.mxu1 %v9772_v61  ;;  %v11634_v34 = vld [vmem:[#allocation27_spill] sm:$0xff]  ;;  %v11638_v61 = vld [vmem:[#allocation36_spill] sm:$0xff] }
 0x1ed   :  { %7836 = vmatprep.subr.bf16.mxu0 %v9748_v35  ;;  %7864 = vmatprep.subr.bf16.mxu1 %v11618_v38  ;;  %v11635_v35 = vld [vmem:[#allocation28_spill] sm:$0xff] }
 0x1f0   :  { %7838 = vmatpush1.bf16.msra.mxu0 %v9755_v45  ;;  %7866 = vmatpush3.bf16.msra.mxu1 %v9783_v10  ;;  %v11637_v45 = vld [vmem:[#allocation30_spill] sm:$0xff] }
 0x1f1   :  { %7840 = vmatprep.subr.bf16.mxu0 %v9758_v46  ;;  %7867 = vmatprep.subr.bf16.mxu1 %v11618_v38  ;;  %v11639_v10 = vld [vmem:[#allocation38_spill] sm:$0xff] }
 0x1f4   :  { %7842 = vmatpush1.bf16.msra.mxu0 %v9766_v55  ;;  %7869 = vmatpush3.bf16.msra.mxu1 %v9794_v20  ;;  %v942_v55 = vld [vmem:[%s11473_s8] sm:$0x7] }
 0x1f5   :  { %7844 = vmatprep.subr.bf16.mxu0 %v9769_v56  ;;  %7870 = vmatprep.subr.bf16.mxu1 %v11618_v38  ;;  %v736_v56 = vld [vmem:[%s11471_s6] sm:$0x7] }
 0x1f8   :  { %7846 = vmatpush1.bf16.msra.mxu0 %v9777_v2  ;;  %7872 = vmatpush3.bf16.msra.mxu1 %v9805_v24  ;;  %v741_v2 = vrot.slane %v736_v56, %v11638_v61 }
 0x1f9   :  { %7848 = vmatprep.subr.bf16.mxu0 %v9780_v4  ;;  %7873 = vmatprep.subr.bf16.mxu1 %v11618_v38  ;;  %v947_v4 = vrot.slane %v942_v55, %v11638_v61 }
 0x1fb   :  { %v9095_v20 = vadd.f32 %v947_v4, %v741_v2 }
 0x1fc   :  { %7850 = vmatpush1.bf16.msra.mxu0 %v9788_v13  ;;  %7875 = vmatpush3.bf16.msra.mxu1 %v9811_v29  ;;  %v745_v13 = vrot.slane %v736_v56, %v11639_v10 }
 0x1fd   :  { %7852 = vmatprep.subr.bf16.mxu0 %v9791_v15  ;;  %7876 = vmatprep.subr.bf16.mxu1 %v11618_v38  ;;  %v951_v15 = vrot.slane %v942_v55, %v11639_v10 }
 0x1ff   :  { %v9097_v24 = vadd.f32 %v951_v15, %v745_v13 }
 0x200   :  { %7854 = vmatpush1.bf16.msra.mxu0 %v9801_v23  ;;  %7878 = vmatpush3.bf16.msra.mxu1 %v9817_v32 }
 0x201   :  { %7880 = vmatprep.subr.bf16.mxu0 %v9825_v37  ;;  %7911 = vmatprep.subr.bf16.mxu1 %v11618_v38 }
 0x203   :  { %1258 = vmatmul.mubr.f32.vlgmr.msra.gmra.mrb[2].mxu0 %v9950_v7  ;;  %6801 = vmatmul.mubr.f32.vlgmr.msra.gmra.mrb[14].mxu1 %v9950_v7 }
 0x204   :  { %7882 = vmatpush1.bf16.msra.mxu0 %v9827_v43  ;;  %7913 = vmatpush3.bf16.msra.mxu1 %v9830_v47 }
 0x205   :  { %7884 = vmatprep.subr.bf16.mxu0 %v9834_v50  ;;  %7914 = vmatprep.subr.bf16.mxu1 %v11618_v38 }
 0x206   :  { %1484 = vmatprep.mubr.f32.mxu0 %v11620_v11  ;;  %6835 = vmatprep.mubr.msk.f32.mxu1 %vm9533_vm0, %v11620_v11 }
 0x208   :  { %7886 = vmatpush1.bf16.msra.mxu0 %v9837_v57  ;;  %7916 = vmatpush3.bf16.msra.mxu1 %v9840_v59 }
 0x209   :  { %7888 = vmatprep.subr.bf16.mxu0 %v9844_v63  ;;  %7917 = vmatprep.subr.bf16.mxu1 %v11618_v38 }
 0x20c   :  { %7890 = vmatpush1.bf16.msra.mxu0 %v9847_v6  ;;  %7919 = vmatpush3.bf16.msra.mxu1 %v9850_v8  ;;  %v955_v6 = vrot.slane %v942_v55, %v9908_v16 }
 0x20d   :  { %7892 = vmatprep.subr.bf16.mxu0 %v9854_v14  ;;  %7920 = vmatprep.subr.bf16.mxu1 %v11618_v38  ;;  %v1176_v14 = vld [vmem:[%s11469_s4] sm:$0x7] }
 0x20e   :  { %v1189_v13 = vrot.slane %v1176_v14, %v9908_v16 }
 0x210   :  { %7894 = vmatpush1.bf16.msra.mxu0 %v9857_v22  ;;  %7922 = vmatpush3.bf16.msra.mxu1 %v9860_v28  ;;  %v749_v22 = vrot.slane %v736_v56, %v9908_v16 }
 0x211   :  { %7896 = vmatprep.subr.bf16.mxu0 %v9864_v33  ;;  %7923 = vmatprep.subr.bf16.mxu1 %v11618_v38 }
 0x214   :  { %7898 = vmatpush1.bf16.msra.mxu0 %v9867_v42  ;;  %7925 = vmatpush3.bf16.msra.mxu1 %v9870_v48  ;;  %v1181_v42 = vrot.slane %v1176_v14, %v11638_v61 }
 0x215   :  { %7900 = vmatprep.subr.bf16.mxu0 %v9874_v53  ;;  %7926 = vmatprep.subr.bf16.mxu1 %v11618_v38  ;;  %v1185_v53 = vrot.slane %v1176_v14, %v11639_v10  ;;  %v11650_v14 = vld [vmem:[#allocation48_spill] sm:$0xff] }
 0x216   :  { %v9067_v62 = vadd.f32 %v1181_v42, %v11640_v52  ;;  %v11654_v42 = vld [vmem:[#allocation52_spill] sm:$0xff] }
 0x217   :  { %v9069_v0 = vadd.f32 %v1185_v53, %v11641_v30  ;;  %v1797_v53 = vld [vmem:[#allocation9 + $0x8] sm:$0xff] }
 0x218   :  { %7902 = vmatpush1.bf16.msra.mxu0 %v11629_v9  ;;  %7928 = vmatpush3.bf16.msra.mxu1 %v11630_v17 }
 0x219   :  { %7904 = vmatprep.subr.bf16.mxu0 %v11631_v18  ;;  %7929 = vmatprep.subr.bf16.mxu1 %v11618_v38 }
 0x21c   :  { %7906 = vmatpush1.bf16.msra.mxu0 %v11632_v25  ;;  %7931 = vmatpush3.bf16.msra.mxu1 %v11633_v26 }
 0x21d   :  { %7908 = vmatprep.subr.bf16.mxu0 %v11634_v34  ;;  %7932 = vmatprep.subr.bf16.mxu1 %v11618_v38 }
 0x220   :  { %7910 = vmatpush1.bf16.msra.mxu0 %v11635_v35  ;;  %7934 = vmatpush3.bf16.msra.mxu1 %v11636_v41 }
 0x221   :  { %7936 = vmatprep.subr.bf16.mxu0 %v11637_v45  ;;  %7967 = vmatprep.subr.bf16.mxu1 %v11618_v38 }
 0x296   :  { %v890_v46 = vpop.f32.mrb[10].mxu1 }
 0x297   :  { %v6732_v51 = vpop.f32.mrb[11].mxu1  ;;  %v891_v1 = vadd.f32 %v890_v46, %v749_v22  ;;  %v11651_v22 = vld [vmem:[#allocation49_spill] sm:$0xff] }
 0x2b6   :  { %v1025_v23 = vpop.f32.mrb[16].mxu0  ;;  %v1096_v29 = vpop.f32.mrb[12].mxu1 }
 0x2b7   :  { %v9096_v32 = vadd.f32 %v9095_v20, %v1025_v23  ;;  %v1027_v37 = vpop.f32.mrb[17].mxu0  ;;  %v6767_v43 = vpop.f32.mrb[13].mxu1  ;;  %v1097_v33 = vadd.f32 %v1096_v29, %v955_v6  ;;  %v11643_v29 = vld [vmem:[#allocation31_spill] sm:$0xff]  ;;  %v11646_v6 = vld [vmem:[#allocation44_spill] sm:$0xff] }
 0x2b8   :  { %v9098_v50 = vadd.f32 %v9097_v24, %v1027_v37 }
 0x2b9   :  { %v6107_v47 = vmul.f32 -1.442695, %v9096_v32 }
 0x2ba   :  { %v6108_v57 = vmul.f32 -1.442695, %v9098_v50 }
 0x2bb   :  { %9184 = vpow2.f32 %v6107_v47 }
 0x2bc   :  { %9186 = vpow2.f32 %v6108_v57 }
 0x2c5   :  { %v9185_v59 = vpop.eup %9184 }
 0x2c6   :  { %v1104_v63 = vadd.f32 1.0, %v9185_v59  ;;  %v9187_v8 = vpop.eup %9186 }
 0x2c7   :  { %v1111_v28 = vadd.f32 1.0, %v9187_v8  ;;  %v11647_v8 = vld [vmem:[#allocation45_spill] sm:$0xff] }
 0x2c8   :  { %9188 = vrcp.f32 %v1104_v63  ;;  %v11644_v63 = vld [vmem:[#allocation42_spill] sm:$0xff] }
 0x2c9   :  { %9190 = vrcp.f32 %v1111_v28  ;;  %v11652_v28 = vld [vmem:[#allocation50_spill] sm:$0xff] }
 0x2d2   :  { %v9189_v48 = vpop.eup %9188 }
 0x2d3   :  { %v1114_v31 = vmul.f32 %v9189_v48, %v1097_v33  ;;  %v9191_v34 = vpop.eup %9190  ;;  %v11653_v33 = vld [vmem:[#allocation51_spill] sm:$0xff]  ;;  %v11655_v48 = vld [vmem:[#allocation53_spill] sm:$0xff] }
 0x2d4   :  { %v1117_v41 = vsub.f32 1.0, %v9191_v34  ;;  %v1119_v51 = vmul.f32 0.0, %v9191_v34  ;;  %v1811_v34 = vld [vmem:[#allocation9 + $0x78] sm:$0xff] }
 0x2d5   :  { %v1115_v60 = vadd.f32 %v1114_v31, %v891_v1  ;;  %v1800_v1 = vld [vmem:[#allocation9 + $0x20] sm:$0xff]  ;;  %v1799_v31 = vld [vmem:[#allocation9 + $0x18] sm:$0xff] }
 0x2d6   :  { %v1259_v3 = vpop.f32.mrb[2].mxu0  ;;  %v1330_v19 = vpop.f32.mrb[14].mxu1 }
 0x2d7   :  { %9192 = vtanh.f32 %v1115_v60  ;;  %v9068_v9 = vadd.f32 %v9067_v62, %v1259_v3  ;;  %v1261_v17 = vpop.f32.mrb[3].mxu0  ;;  %v6802_v18 = vpop.f32.mrb[15].mxu1  ;;  %v1331_v20 = vadd.f32 %v1330_v19, %v1189_v13  ;;  %v1798_v62 = vld [vmem:[#allocation9 + $0x10] sm:$0xff]  ;;  %v1803_v60 = vld [vmem:[#allocation9 + $0x38] sm:$0xff]  ;;  %v1805_v19 = vld [vmem:[#allocation9 + $0x48] sm:$0xff] }
 0x2d8   :  { %v9070_v26 = vadd.f32 %v9069_v0, %v1261_v17  ;;  %v1804_v0 = vld [vmem:[#allocation9 + $0x40] sm:$0xff]  ;;  %v1809_v17 = vld [vmem:[#allocation9 + $0x68] sm:$0xff] }
 0x2d9   :  { %v6109_v25 = vmul.f32 -1.442695, %v9068_v9  ;;  %v1807_v9 = vld [vmem:[#allocation9 + $0x58] sm:$0xff]  ;;  %v1812_v18 = vld [vmem:[#allocation9 + $0x80] sm:$0xff]  ;;  %v1817_v13 = vld [vmem:[#allocation9 + $0xa8] sm:$0xff] }
 0x2da   :  { %v6110_v35 = vmul.f32 -1.442695, %v9070_v26  ;;  %v10186_v26 = vpack.c.bf16 %v1812_v18, %v1809_v17  ;;  %v1841_v17 = vld [vmem:[#allocation9 + $0x168] sm:$0xff]  ;;  %v1840_v18 = vld [vmem:[#allocation9 + $0x160] sm:$0xff] }
 0x2db   :  { %9194 = vpow2.f32 %v6109_v25  ;;  %v1808_v25 = vld [vmem:[#allocation9 + $0x60] sm:$0xff] }
 0x2dc   :  { %9196 = vpow2.f32 %v6110_v35  ;;  %v1810_v35 = vld [vmem:[#allocation9 + $0x70] sm:$0xff] }
 0x2e1   :  { %v9193_v45 = vpop.eup %9192 }
 0x2e2   :  { %v1118_v46 = vmul.f32 %v9193_v45, %v1117_v41  ;;  %v1813_v41 = vld [vmem:[#allocation9 + $0x88] sm:$0xff]  ;;  %v1815_v45 = vld [vmem:[#allocation9 + $0x98] sm:$0xff] }
 0x2e4   :  { %v10124_v55 = vadd.f32 %v1119_v51, %v1118_v46  ;;  %v1818_v46 = vld [vmem:[#allocation9 + $0xb0] sm:$0xff]  ;;  %v10193_v51 = vpack.c.bf16 %v1811_v34, %v1808_v25  ;;  %v1843_v25 = vld [vmem:[#allocation9 + $0x178] sm:$0xff] }
 0x2e5   :  { %v9195_v56 = vpop.eup %9194 }
 0x2e6   :  { %11642 = vst [vmem:[#allocation22_spill] sm:$0xff] %v10124_v55  ;;  %v1338_v2 = vadd.f32 1.0, %v9195_v56  ;;  %v9197_v4 = vpop.eup %9196  ;;  %v10195_v56 = vpack.c.bf16 %v1813_v41, %v1810_v35  ;;  %v10245_v35 = vpack.c.bf16 %v1843_v25, %v1840_v18  ;;  %v2024_v41 = vld [vmem:[#allocation10 + $0x8] sm:$0xff]  ;;  %v2041_v25 = vld [vmem:[#allocation10 + $0x90] sm:$0xff] }
 0x2e7   :  { %v1345_v15 = vadd.f32 1.0, %v9197_v4  ;;  %v10199_v4 = vpack.c.bf16 %v1818_v46, %v1815_v45  ;;  %v2027_v45 = vld [vmem:[#allocation10 + $0x20] sm:$0xff] }
 0x2e8   :  { %9198 = vrcp.f32 %v1338_v2  ;;  %v1814_v2 = vld [vmem:[#allocation9 + $0x90] sm:$0xff]  ;;  %v10257_v46 = vpack.c.bf16 %v2027_v45, %v2024_v41  ;;  %v2044_v41 = vld [vmem:[#allocation10 + $0xa8] sm:$0xff]  ;;  %v2043_v45 = vld [vmem:[#allocation10 + $0xa0] sm:$0xff] }
 0x2e9   :  { %9200 = vrcp.f32 %v1345_v15  ;;  %v1816_v15 = vld [vmem:[#allocation9 + $0xa0] sm:$0xff] }
 0x2f2   :  { %v9199_v23 = vpop.eup %9198 }
 0x2f3   :  { %v1348_v24 = vmul.f32 %v9199_v23, %v1331_v20  ;;  %v9201_v37 = vpop.eup %9200  ;;  %v1819_v20 = vld [vmem:[#allocation9 + $0xb8] sm:$0xff]  ;;  %v1821_v23 = vld [vmem:[#allocation9 + $0xc8] sm:$0xff] }
 0x2f4   :  { %v1351_v43 = vsub.f32 1.0, %v9201_v37  ;;  %v1353_v57 = vmul.f32 %v9201_v37, %v9950_v7  ;;  %v11645_v7 = vld [vmem:[#allocation43_spill] sm:$0xff]  ;;  %v1820_v37 = vld [vmem:[#allocation9 + $0xc0] sm:$0xff] }
 0x2f5   :  { %v1349_v32 = vadd.f32 %v1348_v24, %v11643_v29  ;;  %v1824_v24 = vld [vmem:[#allocation9 + $0xe0] sm:$0xff]  ;;  %v10203_v29 = vpack.c.bf16 %v1817_v13, %v1814_v2  ;;  %v2026_v13 = vld [vmem:[#allocation10 + $0x18] sm:$0xff] }
 0x2f6   :  { %v2023_v2 = vld [vmem:[#allocation10] sm:$0xff] }
 0x2f7   :  { %9202 = vtanh.f32 %v1349_v32  ;;  %v10205_v32 = vpack.c.bf16 %v1819_v20, %v1816_v15  ;;  %v2025_v15 = vld [vmem:[#allocation10 + $0x10] sm:$0xff]  ;;  %v10259_v20 = vpack.c.bf16 %v2026_v13, %v2023_v2  ;;  %v10289_v2 = vpack.c.bf16 %v2044_v41, %v2041_v25  ;;  %v2046_v13 = vld [vmem:[#allocation10 + $0xb8] sm:$0xff] }
 0x2f8   :  { %v2058_v41 = vld [vmem:[#allocation10 + $0x118] sm:$0xff] }
 0x2f9   :  { %11656 = vst [vmem:[#allocation23_spill] sm:$0xff] %v10289_v2 }
 0x301   :  { %v9203_v47 = vpop.eup %9202 }
 0x302   :  { %v1352_v50 = vmul.f32 %v9203_v47, %v1351_v43  ;;  %v10209_v43 = vpack.c.bf16 %v1824_v24, %v1821_v23  ;;  %v1823_v47 = vld [vmem:[#allocation9 + $0xd8] sm:$0xff]  ;;  %v2028_v23 = vld [vmem:[#allocation10 + $0x28] sm:$0xff] }
 0x303   :  { %v10262_v24 = vpack.c.bf16 %v2028_v23, %v2025_v15  ;;  %v10292_v15 = vpack.c.bf16 %v2046_v13, %v2043_v45  ;;  %v2048_v23 = vld [vmem:[#allocation10 + $0xc8] sm:$0xff]  ;;  %v2063_v13 = vld [vmem:[#allocation10 + $0x140] sm:$0xff] }
 0x304   :  { %v10129_v59 = vadd.f32 %v1353_v57, %v1352_v50  ;;  %v1822_v50 = vld [vmem:[#allocation9 + $0xd0] sm:$0xff]  ;;  %v1825_v57 = vld [vmem:[#allocation9 + $0xe8] sm:$0xff] }
 0x305   :  { %11657 = vst [vmem:[#allocation24_spill] sm:$0xff] %v10292_v15  ;;  %v2060_v45 = vld [vmem:[#allocation10 + $0x128] sm:$0xff] }
 0x306   :  { %1485 = vmatmul.mubr.f32.vlgmr.msra.gmra.mrb[18].mxu0 %v10129_v59  ;;  %6836 = vmatmul.mubr.f32.vlgmr.msra.gmra.mrb[16].mxu1 %v10129_v59 }
 0x307   :  { %7938 = vmatpush1.bf16.msra.mxu0 %v9946_v5  ;;  %7969 = vmatpush3.bf16.msra.mxu1 %v9948_v36  ;;  %v11648_v5 = vld [vmem:[#allocation46_spill] sm:$0xff]  ;;  %v11649_v36 = vld [vmem:[#allocation47_spill] sm:$0xff] }
 0x308   :  { %7940 = vmatprep.subr.bf16.mxu0 %v11644_v63  ;;  %7970 = vmatprep.subr.bf16.mxu1 %v11618_v38  ;;  %v1827_v63 = vld [vmem:[#allocation9 + $0xf8] sm:$0xff] }
 0x309   :  { %1690 = vmatprep.mubr.f32.mxu0 %v11620_v11  ;;  %6870 = vmatprep.mubr.msk.f32.mxu1 %vm9533_vm0, %v11620_v11 }
 0x30b   :  { %7942 = vmatpush1.bf16.msra.mxu0 %v11645_v7  ;;  %7972 = vmatpush3.bf16.msra.mxu1 %v11646_v6  ;;  %v1830_v7 = vld [vmem:[#allocation9 + $0x110] sm:$0xff]  ;;  %v10213_v6 = vpack.c.bf16 %v1823_v47, %v1820_v37  ;;  %v2030_v37 = vld [vmem:[#allocation10 + $0x38] sm:$0xff] }
 0x30c   :  { %7944 = vmatprep.subr.bf16.mxu0 %v11647_v8  ;;  %7973 = vmatprep.subr.bf16.mxu1 %v11618_v38  ;;  %v10215_v8 = vpack.c.bf16 %v1825_v57, %v1822_v50  ;;  %v2033_v47 = vld [vmem:[#allocation10 + $0x50] sm:$0xff] }
 0x30d   :  { %v10266_v50 = vpack.c.bf16 %v2033_v47, %v2030_v37  ;;  %v2029_v57 = vld [vmem:[#allocation10 + $0x30] sm:$0xff]  ;;  %v2051_v37 = vld [vmem:[#allocation10 + $0xe0] sm:$0xff] }
 0x30e   :  { %v10296_v47 = vpack.c.bf16 %v2051_v37, %v2048_v23  ;;  %v10314_v37 = vpack.c.bf16 %v2063_v13, %v2060_v45  ;;  %v2068_v45 = vld [vmem:[#allocation10 + $0x168] sm:$0xff]  ;;  %v2067_v13 = vld [vmem:[#allocation10 + $0x160] sm:$0xff] }
 0x30f   :  { %7946 = vmatpush1.bf16.msra.mxu0 %v11648_v5  ;;  %7975 = vmatpush3.bf16.msra.mxu1 %v11649_v36  ;;  %v1826_v5 = vld [vmem:[#allocation9 + $0xf0] sm:$0xff]  ;;  %v10219_v36 = vpack.c.bf16 %v1830_v7, %v1827_v63  ;;  %v2032_v63 = vld [vmem:[#allocation10 + $0x48] sm:$0xff]  ;;  %v2031_v7 = vld [vmem:[#allocation10 + $0x40] sm:$0xff] }
 0x310   :  { %7948 = vmatprep.subr.bf16.mxu0 %v11650_v14  ;;  %7976 = vmatprep.subr.bf16.mxu1 %v11618_v38  ;;  %v1829_v14 = vld [vmem:[#allocation9 + $0x108] sm:$0xff]  ;;  %11658 = vst [vmem:[#allocation25_spill] sm:$0xff] %v10296_v47  ;;  %11664 = vst [vmem:[#allocation40_spill] sm:$0xff] %v10314_v37 }
 0x313   :  { %7950 = vmatpush1.bf16.msra.mxu0 %v11651_v22  ;;  %7978 = vmatpush3.bf16.msra.mxu1 %v11652_v28  ;;  %v1828_v22 = vld [vmem:[#allocation9 + $0x100] sm:$0xff]  ;;  %v1831_v28 = vld [vmem:[#allocation9 + $0x118] sm:$0xff] }
 0x314   :  { %7952 = vmatprep.subr.bf16.mxu0 %v11653_v33  ;;  %7979 = vmatprep.subr.bf16.mxu1 %v11618_v38  ;;  %v1833_v33 = vld [vmem:[#allocation9 + $0x128] sm:$0xff] }
 0x317   :  { %7954 = vmatpush1.bf16.msra.mxu0 %v9991_v27  ;;  %7981 = vmatpush3.bf16.msra.mxu1 %v9993_v49  ;;  %v1796_v27 = vld [vmem:[#allocation9] sm:$0xff]  ;;  %v10164_v49 = vpack.c.bf16 %v1800_v1, %v1797_v53  ;;  %v10225_v53 = vpack.c.bf16 %v1831_v28, %v1828_v22  ;;  %v2036_v28 = vld [vmem:[#allocation10 + $0x68] sm:$0xff] }
 0x318   :  { %7956 = vmatprep.subr.bf16.mxu0 %v11654_v42  ;;  %7982 = vmatprep.subr.bf16.mxu1 %v11618_v38  ;;  %v10168_v3 = vpack.c.bf16 %v1799_v31, %v1796_v27  ;;  %v1836_v42 = vld [vmem:[#allocation9 + $0x140] sm:$0xff]  ;;  %v1835_v31 = vld [vmem:[#allocation9 + $0x138] sm:$0xff] }
 0x319   :  { %v1832_v1 = vld [vmem:[#allocation9 + $0x120] sm:$0xff]  ;;  %v10229_v27 = vpack.c.bf16 %v1836_v42, %v1833_v33 }
 0x31a   :  { %v2039_v33 = vld [vmem:[#allocation10 + $0x80] sm:$0xff] }
 0x31b   :  { %7958 = vmatpush1.bf16.msra.mxu0 %v11655_v48  ;;  %7984 = vmatpush3.bf16.msra.mxu1 %v10003_v54  ;;  %v1801_v54 = vld [vmem:[#allocation9 + $0x28] sm:$0xff]  ;;  %v10223_v48 = vpack.c.bf16 %v1829_v14, %v1826_v5  ;;  %v10269_v5 = vpack.c.bf16 %v2032_v63, %v2029_v57  ;;  %v2034_v14 = vld [vmem:[#allocation10 + $0x58] sm:$0xff]  ;;  %v10276_v42 = vpack.c.bf16 %v2039_v33, %v2036_v28  ;;  %v2047_v57 = vld [vmem:[#allocation10 + $0xc0] sm:$0xff] }
 0x31c   :  { %7960 = vmatprep.subr.bf16.mxu0 %v10007_v40  ;;  %7985 = vmatprep.subr.bf16.mxu1 %v11618_v38  ;;  %v1806_v40 = vld [vmem:[#allocation9 + $0x50] sm:$0xff]  ;;  %v10272_v22 = vpack.c.bf16 %v2034_v14, %v2031_v7  ;;  %v2050_v63 = vld [vmem:[#allocation10 + $0xd8] sm:$0xff]  ;;  %v2052_v28 = vld [vmem:[#allocation10 + $0xe8] sm:$0xff] }
 0x31d   :  { %v2049_v7 = vld [vmem:[#allocation10 + $0xd0] sm:$0xff]  ;;  %v10299_v14 = vpack.c.bf16 %v2050_v63, %v2047_v57  ;;  %v2059_v57 = vld [vmem:[#allocation10 + $0x120] sm:$0xff]  ;;  %v2062_v63 = vld [vmem:[#allocation10 + $0x138] sm:$0xff] }
 0x31e   :  { %v10302_v33 = vpack.c.bf16 %v2052_v28, %v2049_v7  ;;  %v2061_v7 = vld [vmem:[#allocation10 + $0x130] sm:$0xff]  ;;  %v10317_v28 = vpack.c.bf16 %v2062_v63, %v2059_v57  ;;  %v2233_v57 = vld [vmem:[#allocation12 + $0x20] sm:$0xff] }
 0x31f   :  { %7962 = vmatpush1.bf16.msra.mxu0 %v10011_v58  ;;  %7987 = vmatpush3.bf16.msra.mxu1 %v10013_v39  ;;  %v10170_v58 = vpack.c.bf16 %v1801_v54, %v1798_v62  ;;  %v1802_v39 = vld [vmem:[#allocation9 + $0x30] sm:$0xff]  ;;  %v1837_v54 = vld [vmem:[#allocation9 + $0x148] sm:$0xff]  ;;  %11659 = vst [vmem:[#allocation26_spill] sm:$0xff] %v10299_v14 }
 0x320   :  { %7964 = vmatprep.subr.bf16.mxu0 %v10017_v44  ;;  %7988 = vmatprep.subr.bf16.mxu1 %v11618_v38  ;;  %v10174_v44 = vpack.c.bf16 %v1806_v40, %v1803_v60  ;;  %v1834_v62 = vld [vmem:[#allocation9 + $0x130] sm:$0xff]  ;;  %v1839_v60 = vld [vmem:[#allocation9 + $0x158] sm:$0xff]  ;;  %11660 = vst [vmem:[#allocation27_spill] sm:$0xff] %v10302_v33  ;;  %11665 = vst [vmem:[#allocation41_spill] sm:$0xff] %v10317_v28 }
 0x321   :  { %v1842_v40 = vld [vmem:[#allocation9 + $0x170] sm:$0xff] }
 0x323   :  { %7966 = vmatpush1.bf16.msra.mxu0 %v10021_v21  ;;  %7990 = vmatpush3.bf16.msra.mxu1 %v10023_v12  ;;  %v10180_v21 = vpack.c.bf16 %v1805_v19, %v1802_v39  ;;  %v10182_v12 = vpack.c.bf16 %v1807_v9, %v1804_v0  ;;  %v10233_v39 = vpack.c.bf16 %v1835_v31, %v1832_v1  ;;  %v1838_v0 = vld [vmem:[#allocation9 + $0x150] sm:$0xff]  ;;  %v2035_v1 = vld [vmem:[#allocation10 + $0x60] sm:$0xff]  ;;  %v2038_v31 = vld [vmem:[#allocation10 + $0x78] sm:$0xff] }
 0x324   :  { %7992 = vmatprep.subr.bf16.mxu0 %v10164_v49  ;;  %8023 = vmatprep.subr.bf16.mxu1 %v11618_v38  ;;  %v10235_v19 = vpack.c.bf16 %v1837_v54, %v1834_v62  ;;  %v10239_v9 = vpack.c.bf16 %v1842_v40, %v1839_v60  ;;  %v10243_v34 = vpack.c.bf16 %v1841_v17, %v1838_v0  ;;  %v2037_v62 = vld [vmem:[#allocation10 + $0x70] sm:$0xff]  ;;  %v2040_v60 = vld [vmem:[#allocation10 + $0x88] sm:$0xff]  ;;  %v2042_v0 = vld [vmem:[#allocation10 + $0x98] sm:$0xff] }
 0x325   :  { %v10279_v54 = vpack.c.bf16 %v2038_v31, %v2035_v1  ;;  %v10282_v40 = vpack.c.bf16 %v2040_v60, %v2037_v62  ;;  %v2045_v17 = vld [vmem:[#allocation10 + $0xb0] sm:$0xff]  ;;  %v2054_v1 = vld [vmem:[#allocation10 + $0xf8] sm:$0xff] }
 0x326   :  { %1691 = vmatmul.mubr.f32.vlgmr.msra.gmra.mrb[18].mxu0 %v10124_v55  ;;  %6871 = vmatmul.mubr.f32.vlgmr.msra.gmra.mrb[18].mxu1 %v10124_v55  ;;  %v10286_v18 = vpack.c.bf16 %v2045_v17, %v2042_v0  ;;  %v2057_v31 = vld [vmem:[#allocation10 + $0x110] sm:$0xff]  ;;  %v2056_v0 = vld [vmem:[#allocation10 + $0x108] sm:$0xff]  ;;  %v2055_v17 = vld [vmem:[#allocation10 + $0x100] sm:$0xff] }
 0x327   :  { %7994 = vmatpush1.bf16.msra.mxu0 %v10168_v3  ;;  %8025 = vmatpush3.bf16.msra.mxu1 %v10170_v58  ;;  %v10306_v62 = vpack.c.bf16 %v2057_v31, %v2054_v1  ;;  %v2053_v60 = vld [vmem:[#allocation10 + $0xf0] sm:$0xff]  ;;  %v10312_v23 = vpack.c.bf16 %v2058_v41, %v2055_v17  ;;  %v2064_v1 = vld [vmem:[#allocation10 + $0x148] sm:$0xff]  ;;  %v2066_v31 = vld [vmem:[#allocation10 + $0x158] sm:$0xff] }
 0x328   :  { %7996 = vmatprep.subr.bf16.mxu0 %v10174_v44  ;;  %8026 = vmatprep.subr.bf16.mxu1 %v11618_v38  ;;  %v10309_v25 = vpack.c.bf16 %v2056_v0, %v2053_v60  ;;  %v2069_v60 = vld [vmem:[#allocation10 + $0x170] sm:$0xff]  ;;  %v10321_v0 = vpack.c.bf16 %v2064_v1, %v2061_v7 }
 0x329   :  { %1925 = vmatprep.mubr.f32.mxu0 %v11620_v11  ;;  %6905 = vmatprep.mubr.msk.f32.mxu1 %vm9533_vm0, %v11620_v11  ;;  %11661 = vst [vmem:[#allocation28_spill] sm:$0xff] %v10306_v62  ;;  %11663 = vst [vmem:[#allocation30_spill] sm:$0xff] %v10312_v23  ;;  %v10323_v17 = vpack.c.bf16 %v2069_v60, %v2066_v31  ;;  %v2065_v41 = vld [vmem:[#allocation10 + $0x150] sm:$0xff] }
 0x32a   :  { %11662 = vst [vmem:[#allocation29_spill] sm:$0xff] %v10309_v25  ;;  %11666 = vst [vmem:[#allocation31_spill] sm:$0xff] %v10321_v0  ;;  %v10327_v63 = vpack.c.bf16 %v2068_v45, %v2065_v41  ;;  %v1609_v41 = vld [vmem:[%s11473_s8] sm:$0x7] }
 0x32b   :  { %7998 = vmatpush1.bf16.msra.mxu0 %v10180_v21  ;;  %8028 = vmatpush3.bf16.msra.mxu1 %v10182_v12  ;;  %11667 = vst [vmem:[#allocation42_spill] sm:$0xff] %v10323_v17  ;;  %v1614_v45 = vrot.slane %v1609_v41, %v11638_v61 }
 0x32c   :  { %8000 = vmatprep.subr.bf16.mxu0 %v10186_v26  ;;  %8029 = vmatprep.subr.bf16.mxu1 %v11618_v38  ;;  %11668 = vst [vmem:[#allocation43_spill] sm:$0xff] %v10327_v63 }
 0x32f   :  { %8002 = vmatpush1.bf16.msra.mxu0 %v10193_v51  ;;  %8031 = vmatpush3.bf16.msra.mxu1 %v10195_v56 }
 0x330   :  { %8004 = vmatprep.subr.bf16.mxu0 %v10199_v4  ;;  %8032 = vmatprep.subr.bf16.mxu1 %v11618_v38 }
 0x333   :  { %8006 = vmatpush1.bf16.msra.mxu0 %v10203_v29  ;;  %8034 = vmatpush3.bf16.msra.mxu1 %v10205_v32 }
 0x334   :  { %8008 = vmatprep.subr.bf16.mxu0 %v10209_v43  ;;  %8035 = vmatprep.subr.bf16.mxu1 %v11618_v38 }
 0x337   :  { %8010 = vmatpush1.bf16.msra.mxu0 %v10213_v6  ;;  %8037 = vmatpush3.bf16.msra.mxu1 %v10215_v8 }
 0x338   :  { %8012 = vmatprep.subr.bf16.mxu0 %v10219_v36  ;;  %8038 = vmatprep.subr.bf16.mxu1 %v11618_v38 }
 0x33b   :  { %8014 = vmatpush1.bf16.msra.mxu0 %v10223_v48  ;;  %8040 = vmatpush3.bf16.msra.mxu1 %v10225_v53 }
 0x33c   :  { %8016 = vmatprep.subr.bf16.mxu0 %v10229_v27  ;;  %8041 = vmatprep.subr.bf16.mxu1 %v11618_v38 }
 0x33f   :  { %8018 = vmatpush1.bf16.msra.mxu0 %v10233_v39  ;;  %8043 = vmatpush3.bf16.msra.mxu1 %v10235_v19 }
 0x340   :  { %8020 = vmatprep.subr.bf16.mxu0 %v10239_v9  ;;  %8044 = vmatprep.subr.bf16.mxu1 %v11618_v38 }
 0x343   :  { %8022 = vmatpush1.bf16.msra.mxu0 %v10243_v34  ;;  %8046 = vmatpush3.bf16.msra.mxu1 %v10245_v35 }
 0x344   :  { %8079 = vmatprep.subr.bf16.mxu1 %v11618_v38  ;;  %8048 = vmatprep.subr.bf16.mxu0 %v10257_v46 }
 0x346   :  { %1926 = vmatmul.mubr.f32.vlgmr.msra.gmra.mrb[4].mxu0 %v10129_v59  ;;  %6906 = vmatmul.mubr.f32.vlgmr.msra.gmra.mrb[20].mxu1 %v10129_v59 }
 0x347   :  { %2152 = vmatprep.mubr.f32.mxu0 %v11620_v11  ;;  %6940 = vmatprep.mubr.msk.f32.mxu1 %vm9533_vm0, %v11620_v11 }
 0x348   :  { %8050 = vmatpush1.bf16.msra.mxu0 %v10259_v20  ;;  %8081 = vmatpush3.bf16.msra.mxu1 %v10262_v24 }
 0x349   :  { %8082 = vmatprep.subr.bf16.mxu1 %v11618_v38  ;;  %8052 = vmatprep.subr.bf16.mxu0 %v10266_v50 }
 0x34c   :  { %8054 = vmatpush1.bf16.msra.mxu0 %v10269_v5  ;;  %8084 = vmatpush3.bf16.msra.mxu1 %v10272_v22 }
 0x34d   :  { %8085 = vmatprep.subr.bf16.mxu1 %v11618_v38  ;;  %8056 = vmatprep.subr.bf16.mxu0 %v10276_v42 }
 0x350   :  { %8058 = vmatpush1.bf16.msra.mxu0 %v10279_v54  ;;  %8087 = vmatpush3.bf16.msra.mxu1 %v10282_v40 }
 0x351   :  { %8088 = vmatprep.subr.bf16.mxu1 %v11618_v38  ;;  %8060 = vmatprep.subr.bf16.mxu0 %v10286_v18 }
 0x354   :  { %8062 = vmatpush1.bf16.msra.mxu0 %v10289_v2  ;;  %8090 = vmatpush3.bf16.msra.mxu1 %v10292_v15  ;;  %v1844_v2 = vld [vmem:[%s11469_s4] sm:$0x7] }
 0x355   :  { %8091 = vmatprep.subr.bf16.mxu1 %v11618_v38  ;;  %8064 = vmatprep.subr.bf16.mxu0 %v10296_v47 }
 0x358   :  { %8066 = vmatpush1.bf16.msra.mxu0 %v10299_v14  ;;  %8093 = vmatpush3.bf16.msra.mxu1 %v10302_v33 }
 0x359   :  { %8094 = vmatprep.subr.bf16.mxu1 %v11618_v38  ;;  %8068 = vmatprep.subr.bf16.mxu0 %v10306_v62  ;;  %v2070_v62 = vld [vmem:[#allocation10 + $0x178] sm:$0xff] }
 0x35a   :  { %v10331_v7 = vpack.c.bf16 %v2070_v62, %v2067_v13  ;;  %v1403_v62 = vld [vmem:[%s11471_s6] sm:$0x7] }
 0x35b   :  { %v1412_v13 = vrot.slane %v1403_v62, %v11639_v10 }
 0x35c   :  { %8070 = vmatpush1.bf16.msra.mxu0 %v10309_v25  ;;  %8096 = vmatpush3.bf16.msra.mxu1 %v10312_v23  ;;  %v2230_v25 = vld [vmem:[#allocation12 + $0x8] sm:$0xff]  ;;  %11669 = vst [vmem:[#allocation44_spill] sm:$0xff] %v10331_v7 }
 0x35d   :  { %8072 = vmatprep.subr.bf16.mxu0 %v10314_v37  ;;  %8097 = vmatprep.subr.bf16.mxu1 %v11618_v38  ;;  %v10333_v1 = vpack.c.bf16 %v2233_v57, %v2230_v25  ;;  %v1408_v25 = vrot.slane %v1403_v62, %v11638_v61  ;;  %v1618_v57 = vrot.slane %v1609_v41, %v11639_v10 }
 0x35f   :  { %11670 = vst [vmem:[#allocation45_spill] sm:$0xff] %v10333_v1 }
 0x360   :  { %8074 = vmatpush1.bf16.msra.mxu0 %v10317_v28  ;;  %8099 = vmatpush3.bf16.msra.mxu1 %v10321_v0 }
 0x361   :  { %8076 = vmatprep.subr.bf16.mxu0 %v10323_v17  ;;  %8100 = vmatprep.subr.bf16.mxu1 %v11618_v38 }
 0x364   :  { %8078 = vmatpush1.bf16.msra.mxu0 %v10327_v63  ;;  %8102 = vmatpush3.bf16.msra.mxu1 %v10331_v7 }
 0x365   :  { %8104 = vmatprep.subr.bf16.mxu0 %v10333_v1  ;;  %8135 = vmatprep.subr.bf16.mxu1 %v11618_v38  ;;  %v9099_v1 = vadd.f32 %v1614_v45, %v1408_v25  ;;  %v1622_v25 = vrot.slane %v1609_v41, %v9908_v16  ;;  %v1416_v45 = vrot.slane %v1403_v62, %v9908_v16 }
 0x3d9   :  { %v1557_v31 = vpop.f32.mrb[16].mxu1 }
 0x3da   :  { %v6837_v60 = vpop.f32.mrb[17].mxu1 }
 0x3db   :  { %v9101_v60 = vadd.f32 %v1618_v57, %v1412_v13 }
 0x3f9   :  { %v1692_v7 = vpop.f32.mrb[18].mxu0  ;;  %v1763_v63 = vpop.f32.mrb[18].mxu1 }
 0x3fa   :  { %v9100_v17 = vadd.f32 %v9099_v1, %v1692_v7  ;;  %v1694_v0 = vpop.f32.mrb[19].mxu0  ;;  %v6872_v28 = vpop.f32.mrb[19].mxu1 }
 0x3fb   :  { %v9102_v23 = vadd.f32 %v9101_v60, %v1694_v0  ;;  %v1849_v28 = vrot.slane %v1844_v2, %v11638_v61 }
 0x3fc   :  { %v6111_v37 = vmul.f32 -1.442695, %v9100_v17  ;;  %v1764_v17 = vadd.f32 %v1763_v63, %v1622_v25 }
 0x3fd   :  { %v6112_v33 = vmul.f32 -1.442695, %v9102_v23  ;;  %v1853_v23 = vrot.slane %v1844_v2, %v11639_v10 }
 0x3fe   :  { %9204 = vpow2.f32 %v6111_v37 }
 0x3ff   :  { %9206 = vpow2.f32 %v6112_v33  ;;  %v1558_v33 = vadd.f32 %v1557_v31, %v1416_v45  ;;  %v9073_v57 = vadd.f32 %v1853_v23, %v11641_v30 }
 0x408   :  { %v9205_v14 = vpop.eup %9204 }
 0x409   :  { %v1771_v47 = vadd.f32 1.0, %v9205_v14  ;;  %v9207_v15 = vpop.eup %9206 }
 0x40a   :  { %v1778_v7 = vadd.f32 1.0, %v9207_v15 }
 0x40b   :  { %9208 = vrcp.f32 %v1771_v47  ;;  %v9071_v47 = vadd.f32 %v1849_v28, %v11640_v52 }
 0x40c   :  { %9210 = vrcp.f32 %v1778_v7 }
 0x415   :  { %v9209_v0 = vpop.eup %9208 }
 0x416   :  { %v1781_v37 = vmul.f32 %v9209_v0, %v1764_v17  ;;  %v9211_v63 = vpop.eup %9210 }
 0x417   :  { %v1784_v10 = vsub.f32 1.0, %v9211_v63  ;;  %v1786_v7 = vmul.f32 %v9211_v63, %v10124_v55  ;;  %v2234_v63 = vld [vmem:[#allocation12 + $0x28] sm:$0xff]  ;;  %v2260_v55 = vld [vmem:[#allocation12 + $0xf8] sm:$0xff] }
 0x418   :  { %v1782_v14 = vadd.f32 %v1781_v37, %v1558_v33  ;;  %v1857_v33 = vrot.slane %v1844_v2, %v9908_v16 }
 0x419   :  { %v1927_v1 = vpop.f32.mrb[4].mxu0  ;;  %v1998_v13 = vpop.f32.mrb[20].mxu1 }
 0x41a   :  { %9212 = vtanh.f32 %v1782_v14  ;;  %v9072_v41 = vadd.f32 %v9071_v47, %v1927_v1  ;;  %v1929_v62 = vpop.f32.mrb[5].mxu0  ;;  %v6907_v15 = vpop.f32.mrb[21].mxu1  ;;  %v1999_v47 = vadd.f32 %v1998_v13, %v1857_v33 }
 0x41b   :  { %v9074_v61 = vadd.f32 %v9073_v57, %v1929_v62  ;;  %v2232_v15 = vld [vmem:[#allocation12 + $0x18] sm:$0xff] }
 0x41c   :  { %v6113_v60 = vmul.f32 -1.442695, %v9072_v41 }
 0x41d   :  { %v6114_v25 = vmul.f32 -1.442695, %v9074_v61  ;;  %v11672_v61 = vld [vmem:[#allocation33_spill] sm:$0xff] }
 0x41e   :  { %9214 = vpow2.f32 %v6113_v60  ;;  %v2231_v60 = vld [vmem:[#allocation12 + $0x10] sm:$0xff] }
 0x41f   :  { %9216 = vpow2.f32 %v6114_v25  ;;  %v10367_v13 = vpack.c.bf16 %v2234_v63, %v2231_v60  ;;  %v2246_v60 = vld [vmem:[#allocation12 + $0x88] sm:$0xff]  ;;  %v2248_v63 = vld [vmem:[#allocation12 + $0x98] sm:$0xff] }
 0x424   :  { %v9213_v31 = vpop.eup %9212 }
 0x425   :  { %v1785_v45 = vmul.f32 %v9213_v31, %v1784_v10  ;;  %v2229_v10 = vld [vmem:[#allocation12] sm:$0xff]  ;;  %v2236_v31 = vld [vmem:[#allocation12 + $0x38] sm:$0xff] }
 0x427   :  { %v10360_v28 = vadd.f32 %v1786_v7, %v1785_v45  ;;  %v2239_v45 = vld [vmem:[#allocation12 + $0x50] sm:$0xff] }
 0x428   :  { %v9215_v17 = vpop.eup %9214  ;;  %v10371_v33 = vpack.c.bf16 %v2239_v45, %v2236_v31 }
 0x429   :  { %11671 = vst [vmem:[#allocation46_spill] sm:$0xff] %v10360_v28  ;;  %v2006_v0 = vadd.f32 1.0, %v9215_v17  ;;  %v9217_v23 = vpop.eup %9216  ;;  %v10365_v17 = vpack.c.bf16 %v2232_v15, %v2229_v10  ;;  %v2243_v15 = vld [vmem:[#allocation12 + $0x70] sm:$0xff] }
 0x42a   :  { %v2013_v37 = vadd.f32 1.0, %v9217_v23  ;;  %v10392_v45 = vpack.c.bf16 %v2246_v60, %v2243_v15  ;;  %v2256_v60 = vld [vmem:[#allocation12 + $0xd8] sm:$0xff] }
 0x42b   :  { %9218 = vrcp.f32 %v2006_v0  ;;  %v2235_v0 = vld [vmem:[#allocation12 + $0x30] sm:$0xff] }
 0x42c   :  { %9220 = vrcp.f32 %v2013_v37  ;;  %v2238_v37 = vld [vmem:[#allocation12 + $0x48] sm:$0xff]  ;;  %11675 = vst [vmem:[#allocation49_spill] sm:$0xff] %v10392_v45 }
 0x435   :  { %v9219_v14 = vpop.eup %9218 }
 0x436   :  { %v2016_v1 = vmul.f32 %v9219_v14, %v1999_v47  ;;  %v9221_v41 = vpop.eup %9220  ;;  %v2237_v47 = vld [vmem:[#allocation12 + $0x40] sm:$0xff]  ;;  %v2240_v14 = vld [vmem:[#allocation12 + $0x58] sm:$0xff] }
 0x437   :  { %v2019_v62 = vsub.f32 1.0, %v9221_v41  ;;  %v2021_v2 = vmul.f32 %v9221_v41, %v10129_v59  ;;  %v10377_v59 = vpack.c.bf16 %v2238_v37, %v2235_v0  ;;  %v2241_v41 = vld [vmem:[#allocation12 + $0x60] sm:$0xff]  ;;  %v2250_v0 = vld [vmem:[#allocation12 + $0xa8] sm:$0xff] }
 0x438   :  { %v2017_v57 = vadd.f32 %v2016_v1, %v11672_v61  ;;  %v2242_v1 = vld [vmem:[#allocation12 + $0x68] sm:$0xff]  ;;  %v2245_v61 = vld [vmem:[#allocation12 + $0x80] sm:$0xff] }
 0x439   :  { %v10383_v10 = vpack.c.bf16 %v2245_v61, %v2242_v1  ;;  %v2249_v37 = vld [vmem:[#allocation12 + $0xa0] sm:$0xff] }
 0x43a   :  { %9222 = vtanh.f32 %v2017_v57  ;;  %v10379_v57 = vpack.c.bf16 %v2240_v14, %v2237_v47  ;;  %v2252_v47 = vld [vmem:[#allocation12 + $0xb8] sm:$0xff]  ;;  %v2254_v14 = vld [vmem:[#allocation12 + $0xc8] sm:$0xff]  ;;  %v2257_v1 = vld [vmem:[#allocation12 + $0xe0] sm:$0xff] }
 0x43b   :  { %11673 = vst [vmem:[#allocation47_spill] sm:$0xff] %v10383_v10  ;;  %v10406_v15 = vpack.c.bf16 %v2257_v1, %v2254_v14  ;;  %v2262_v14 = vld [vmem:[#allocation12 + $0x108] sm:$0xff]  ;;  %v2261_v1 = vld [vmem:[#allocation12 + $0x100] sm:$0xff] }
 0x43d   :  { %11679 = vst [vmem:[#allocation53_spill] sm:$0xff] %v10406_v15 }
 0x444   :  { %v9223_v25 = vpop.eup %9222 }
 0x445   :  { %v2020_v7 = vmul.f32 %v9223_v25, %v2019_v62  ;;  %v2244_v62 = vld [vmem:[#allocation12 + $0x78] sm:$0xff]  ;;  %v2251_v25 = vld [vmem:[#allocation12 + $0xb0] sm:$0xff] }
 0x446   :  { %v10390_v31 = vpack.c.bf16 %v2244_v62, %v2241_v41  ;;  %v10402_v41 = vpack.c.bf16 %v2252_v47, %v2249_v37  ;;  %v2253_v62 = vld [vmem:[#allocation12 + $0xc0] sm:$0xff]  ;;  %v2259_v37 = vld [vmem:[#allocation12 + $0xf0] sm:$0xff] }
 0x447   :  { %v10369_v23 = vadd.f32 %v2021_v2, %v2020_v7  ;;  %v2247_v7 = vld [vmem:[#allocation12 + $0x90] sm:$0xff]  ;;  %v10396_v2 = vpack.c.bf16 %v2251_v25, %v2248_v63  ;;  %v2258_v25 = vld [vmem:[#allocation12 + $0xe8] sm:$0xff] }
 0x448   :  { %11674 = vst [vmem:[#allocation48_spill] sm:$0xff] %v10390_v31  ;;  %v10400_v61 = vpack.c.bf16 %v2250_v0, %v2247_v7  ;;  %11678 = vst [vmem:[#allocation52_spill] sm:$0xff] %v10402_v41  ;;  %v2255_v63 = vld [vmem:[#allocation12 + $0xd0] sm:$0xff]  ;;  %v10410_v7 = vpack.c.bf16 %v2256_v60, %v2253_v62  ;;  %v10420_v62 = vpack.c.bf16 %v2262_v14, %v2259_v37 }
 0x449   :  { %2153 = vmatmul.mubr.f32.vlgmr.msra.gmra.mrb[20].mxu0 %v10369_v23  ;;  %6941 = vmatmul.mubr.f32.vlgmr.msra.gmra.mrb[22].mxu1 %v10369_v23  ;;  %11676 = vst [vmem:[#allocation50_spill] sm:$0xff] %v10396_v2  ;;  %v10412_v0 = vpack.c.bf16 %v2258_v25, %v2255_v63  ;;  %v2265_v63 = vld [vmem:[#allocation12 + $0x120] sm:$0xff]  ;;  %v2267_v25 = vld [vmem:[#allocation12 + $0x130] sm:$0xff] }
 0x44a   :  { %8106 = vmatpush1.bf16.msra.mxu0 %v10365_v17  ;;  %8137 = vmatpush3.bf16.msra.mxu1 %v10367_v13  ;;  %11677 = vst [vmem:[#allocation51_spill] sm:$0xff] %v10400_v61  ;;  %11681 = vst [vmem:[#allocation54_spill] sm:$0xff] %v10420_v62  ;;  %v2271_v14 = vld [vmem:[#allocation12 + $0x150] sm:$0xff] }
 0x44b   :  { %8108 = vmatprep.subr.bf16.mxu0 %v10371_v33  ;;  %8138 = vmatprep.subr.bf16.mxu1 %v11618_v38 }
 0x44c   :  { %2358 = vmatprep.mubr.f32.mxu0 %v11620_v11  ;;  %6975 = vmatprep.mubr.msk.f32.mxu1 %vm9533_vm0, %v11620_v11 }
 0x44e   :  { %8110 = vmatpush1.bf16.msra.mxu0 %v10377_v59  ;;  %8140 = vmatpush3.bf16.msra.mxu1 %v10379_v57 }
 0x44f   :  { %8112 = vmatprep.subr.bf16.mxu0 %v10383_v10  ;;  %8141 = vmatprep.subr.bf16.mxu1 %v11618_v38  ;;  %v2263_v10 = vld [vmem:[#allocation12 + $0x110] sm:$0xff] }
 0x450   :  { %v10416_v47 = vpack.c.bf16 %v2263_v10, %v2260_v55  ;;  %v2268_v10 = vld [vmem:[#allocation12 + $0x138] sm:$0xff] }
 0x451   :  { %v10430_v37 = vpack.c.bf16 %v2268_v10, %v2265_v63  ;;  %v2512_v10 = vld [vmem:[%s11469_s4] sm:$0x7] }
 0x452   :  { %8114 = vmatpush1.bf16.msra.mxu0 %v10390_v31  ;;  %8143 = vmatpush3.bf16.msra.mxu1 %v10392_v45  ;;  %11680 = vst [vmem:[#allocation33_spill] sm:$0xff] %v10416_v47  ;;  %v2266_v45 = vld [vmem:[#allocation12 + $0x128] sm:$0xff]  ;;  %v2269_v31 = vld [vmem:[#allocation12 + $0x140] sm:$0xff] }
 0x453   :  { %8116 = vmatprep.subr.bf16.mxu0 %v10396_v2  ;;  %8144 = vmatprep.subr.bf16.mxu1 %v11618_v38  ;;  %v2264_v2 = vld [vmem:[#allocation12 + $0x118] sm:$0xff]  ;;  %v10426_v55 = vpack.c.bf16 %v2269_v31, %v2266_v45  ;;  %v2274_v45 = vld [vmem:[#allocation12 + $0x168] sm:$0xff] }
 0x454   :  { %v10422_v60 = vpack.c.bf16 %v2264_v2, %v2261_v1  ;;  %v2273_v1 = vld [vmem:[#allocation12 + $0x160] sm:$0xff] }
 0x456   :  { %8118 = vmatpush1.bf16.msra.mxu0 %v10400_v61  ;;  %8146 = vmatpush3.bf16.msra.mxu1 %v10402_v41  ;;  %v2272_v41 = vld [vmem:[#allocation12 + $0x158] sm:$0xff]  ;;  %v2275_v61 = vld [vmem:[#allocation12 + $0x170] sm:$0xff] }
 0x457   :  { %8120 = vmatprep.subr.bf16.mxu0 %v10406_v15  ;;  %8147 = vmatprep.subr.bf16.mxu1 %v11618_v38  ;;  %v2270_v15 = vld [vmem:[#allocation12 + $0x148] sm:$0xff]  ;;  %v10436_v31 = vpack.c.bf16 %v2275_v61, %v2272_v41 }
 0x458   :  { %v10432_v2 = vpack.c.bf16 %v2270_v15, %v2267_v25 }
 0x45a   :  { %8122 = vmatpush1.bf16.msra.mxu0 %v10410_v7  ;;  %8149 = vmatpush3.bf16.msra.mxu1 %v10412_v0 }
 0x45b   :  { %8124 = vmatprep.subr.bf16.mxu0 %v10416_v47  ;;  %8150 = vmatprep.subr.bf16.mxu1 %v11618_v38  ;;  %v2276_v47 = vld [vmem:[#allocation12 + $0x178] sm:$0xff] }
 0x45c   :  { %v10442_v63 = vpack.c.bf16 %v2276_v47, %v2273_v1 }
 0x45e   :  { %8126 = vmatpush1.bf16.msra.mxu0 %v10420_v62  ;;  %8152 = vmatpush3.bf16.msra.mxu1 %v10422_v60  ;;  %v10440_v62 = vpack.c.bf16 %v2274_v45, %v2271_v14 }
 0x45f   :  { %8128 = vmatprep.subr.bf16.mxu0 %v10426_v55  ;;  %8153 = vmatprep.subr.bf16.mxu1 %v11618_v38 }
 0x462   :  { %8130 = vmatpush1.bf16.msra.mxu0 %v10430_v37  ;;  %8155 = vmatpush3.bf16.msra.mxu1 %v10432_v2 }
 0x463   :  { %8132 = vmatprep.subr.bf16.mxu0 %v10436_v31  ;;  %8156 = vmatprep.subr.bf16.mxu1 %v11618_v38 }
 0x466   :  { %8134 = vmatpush1.bf16.msra.mxu0 %v10440_v62  ;;  %8158 = vmatpush3.bf16.msra.mxu1 %v10442_v63 }
 0x467   :  { %8160 = vmatprep.subr.bf16.mxu0 %v10164_v49  ;;  %8191 = vmatprep.subr.bf16.mxu1 %v11618_v38  ;;  %v11682_v49 = vld [vmem:[#allocation23_spill] sm:$0xff] }
 0x469   :  { %2359 = vmatmul.mubr.f32.vlgmr.msra.gmra.mrb[20].mxu0 %v10360_v28  ;;  %6976 = vmatmul.mubr.f32.vlgmr.msra.gmra.mrb[24].mxu1 %v10360_v28 }
 0x46a   :  { %8162 = vmatpush1.bf16.msra.mxu0 %v10168_v3  ;;  %8193 = vmatpush3.bf16.msra.mxu1 %v10170_v58  ;;  %v11683_v3 = vld [vmem:[#allocation24_spill] sm:$0xff]  ;;  %v11684_v58 = vld [vmem:[#allocation25_spill] sm:$0xff] }
 0x46b   :  { %8164 = vmatprep.subr.bf16.mxu0 %v10174_v44  ;;  %8194 = vmatprep.subr.bf16.mxu1 %v11618_v38  ;;  %v11685_v44 = vld [vmem:[#allocation26_spill] sm:$0xff] }
 0x46c   :  { %2593 = vmatprep.mubr.f32.mxu0 %v11620_v11  ;;  %7010 = vmatprep.mubr.msk.f32.mxu1 %vm9533_vm0, %v11620_v11 }
 0x46e   :  { %8166 = vmatpush1.bf16.msra.mxu0 %v10180_v21  ;;  %8196 = vmatpush3.bf16.msra.mxu1 %v10182_v12  ;;  %v11686_v21 = vld [vmem:[#allocation27_spill] sm:$0xff]  ;;  %v11687_v12 = vld [vmem:[#allocation28_spill] sm:$0xff] }
 0x46f   :  { %8168 = vmatprep.subr.bf16.mxu0 %v10186_v26  ;;  %8197 = vmatprep.subr.bf16.mxu1 %v11618_v38  ;;  %v11688_v26 = vld [vmem:[#allocation29_spill] sm:$0xff] }
 0x472   :  { %8170 = vmatpush1.bf16.msra.mxu0 %v10193_v51  ;;  %8199 = vmatpush3.bf16.msra.mxu1 %v10195_v56  ;;  %v11689_v51 = vld [vmem:[#allocation30_spill] sm:$0xff]  ;;  %v11690_v56 = vld [vmem:[#allocation40_spill] sm:$0xff] }
 0x473   :  { %8172 = vmatprep.subr.bf16.mxu0 %v10199_v4  ;;  %8200 = vmatprep.subr.bf16.mxu1 %v11618_v38  ;;  %v11691_v4 = vld [vmem:[#allocation41_spill] sm:$0xff] }
 0x476   :  { %8174 = vmatpush1.bf16.msra.mxu0 %v10203_v29  ;;  %8202 = vmatpush3.bf16.msra.mxu1 %v10205_v32  ;;  %v11692_v29 = vld [vmem:[#allocation31_spill] sm:$0xff]  ;;  %v11693_v32 = vld [vmem:[#allocation42_spill] sm:$0xff] }
 0x477   :  { %8176 = vmatprep.subr.bf16.mxu0 %v10209_v43  ;;  %8203 = vmatprep.subr.bf16.mxu1 %v11618_v38  ;;  %v11694_v43 = vld [vmem:[#allocation43_spill] sm:$0xff] }
 0x47a   :  { %8178 = vmatpush1.bf16.msra.mxu0 %v10213_v6  ;;  %8205 = vmatpush3.bf16.msra.mxu1 %v10215_v8  ;;  %v11695_v6 = vld [vmem:[#allocation44_spill] sm:$0xff]  ;;  %v11696_v8 = vld [vmem:[#allocation45_spill] sm:$0xff] }
 0x47b   :  { %8180 = vmatprep.subr.bf16.mxu0 %v10219_v36  ;;  %8206 = vmatprep.subr.bf16.mxu1 %v11618_v38 }
 0x47e   :  { %8182 = vmatpush1.bf16.msra.mxu0 %v10223_v48  ;;  %8208 = vmatpush3.bf16.msra.mxu1 %v10225_v53  ;;  %v2277_v53 = vld [vmem:[%s11473_s8] sm:$0x7] }
 0x47f   :  { %8184 = vmatprep.subr.bf16.mxu0 %v10229_v27  ;;  %8209 = vmatprep.subr.bf16.mxu1 %v11618_v38  ;;  %v2071_v27 = vld [vmem:[%s11471_s6] sm:$0x7]  ;;  %v2290_v25 = vrot.slane %v2277_v53, %v9908_v16 }
 0x480   :  { %v2084_v14 = vrot.slane %v2071_v27, %v9908_v16 }
 0x482   :  { %8186 = vmatpush1.bf16.msra.mxu0 %v10233_v39  ;;  %8211 = vmatpush3.bf16.msra.mxu1 %v10235_v19  ;;  %v11697_v39 = vld [vmem:[#allocation36_spill] sm:$0xff] }
 0x483   :  { %8188 = vmatprep.subr.bf16.mxu0 %v10239_v9  ;;  %8212 = vmatprep.subr.bf16.mxu1 %v11618_v38  ;;  %v2076_v19 = vrot.slane %v2071_v27, %v11697_v39  ;;  %v2282_v9 = vrot.slane %v2277_v53, %v11697_v39  ;;  %v2517_v1 = vrot.slane %v2512_v10, %v11697_v39 }
 0x486   :  { %8190 = vmatpush1.bf16.msra.mxu0 %v10243_v34  ;;  %8214 = vmatpush3.bf16.msra.mxu1 %v10245_v35  ;;  %v11698_v34 = vld [vmem:[#allocation38_spill] sm:$0xff] }
 0x487   :  { %8216 = vmatprep.subr.bf16.mxu0 %v10257_v46  ;;  %8247 = vmatprep.subr.bf16.mxu1 %v11618_v38  ;;  %v2080_v35 = vrot.slane %v2071_v27, %v11698_v34  ;;  %v2286_v46 = vrot.slane %v2277_v53, %v11698_v34 }
 0x489   :  { %2594 = vmatmul.mubr.f32.vlgmr.msra.gmra.mrb[6].mxu0 %v10369_v23  ;;  %7011 = vmatmul.mubr.f32.vlgmr.msra.gmra.mrb[26].mxu1 %v10369_v23 }
 0x48a   :  { %8218 = vmatpush1.bf16.msra.mxu0 %v10259_v20  ;;  %8249 = vmatpush3.bf16.msra.mxu1 %v10262_v24  ;;  %v9103_v20 = vadd.f32 %v2282_v9, %v2076_v19 }
 0x48b   :  { %8220 = vmatprep.subr.bf16.mxu0 %v10266_v50  ;;  %8250 = vmatprep.subr.bf16.mxu1 %v11618_v38 }
 0x48c   :  { %2820 = vmatprep.mubr.f32.mxu0 %v11620_v11  ;;  %7045 = vmatprep.mubr.msk.f32.mxu1 %vm9533_vm0, %v11620_v11 }
 0x48e   :  { %8222 = vmatpush1.bf16.msra.mxu0 %v10269_v5  ;;  %8252 = vmatpush3.bf16.msra.mxu1 %v10272_v22  ;;  %v9105_v5 = vadd.f32 %v2286_v46, %v2080_v35 }
 0x48f   :  { %8224 = vmatprep.subr.bf16.mxu0 %v10276_v42  ;;  %8253 = vmatprep.subr.bf16.mxu1 %v11618_v38 }
 0x492   :  { %8226 = vmatpush1.bf16.msra.mxu0 %v10279_v54  ;;  %8255 = vmatpush3.bf16.msra.mxu1 %v10282_v40 }
 0x493   :  { %8228 = vmatprep.subr.bf16.mxu0 %v10286_v18  ;;  %8256 = vmatprep.subr.bf16.mxu1 %v11618_v38 }
 0x496   :  { %8230 = vmatpush1.bf16.msra.mxu0 %v11682_v49  ;;  %8258 = vmatpush3.bf16.msra.mxu1 %v11683_v3 }
 0x497   :  { %8232 = vmatprep.subr.bf16.mxu0 %v11684_v58  ;;  %8259 = vmatprep.subr.bf16.mxu1 %v11618_v38  ;;  %v2521_v58 = vrot.slane %v2512_v10, %v11698_v34 }
 0x49a   :  { %8234 = vmatpush1.bf16.msra.mxu0 %v11685_v44  ;;  %8261 = vmatpush3.bf16.msra.mxu1 %v11686_v21 }
 0x49b   :  { %8236 = vmatprep.subr.bf16.mxu0 %v11687_v12  ;;  %8262 = vmatprep.subr.bf16.mxu1 %v11618_v38  ;;  %v9075_v12 = vadd.f32 %v2517_v1, %v11640_v52  ;;  %v11707_v1 = vld [vmem:[#allocation53_spill] sm:$0xff] }
 0x49e   :  { %8238 = vmatpush1.bf16.msra.mxu0 %v11688_v26  ;;  %8264 = vmatpush3.bf16.msra.mxu1 %v11689_v51 }
 0x49f   :  { %8240 = vmatprep.subr.bf16.mxu0 %v11690_v56  ;;  %8265 = vmatprep.subr.bf16.mxu1 %v11618_v38 }
 0x4a2   :  { %8242 = vmatpush1.bf16.msra.mxu0 %v11691_v4  ;;  %8267 = vmatpush3.bf16.msra.mxu1 %v11692_v29  ;;  %v9077_v4 = vadd.f32 %v2521_v58, %v11641_v30  ;;  %v3135_v58 = vld [vmem:[#allocation9 + $0x18] sm:$0xff] }
 0x4a3   :  { %8244 = vmatprep.subr.bf16.mxu0 %v11693_v32  ;;  %8268 = vmatprep.subr.bf16.mxu1 %v11618_v38 }
 0x4a6   :  { %8246 = vmatpush1.bf16.msra.mxu0 %v11694_v43  ;;  %8270 = vmatpush3.bf16.msra.mxu1 %v11695_v6 }
 0x4a7   :  { %8272 = vmatprep.subr.bf16.mxu0 %v11696_v8  ;;  %8303 = vmatprep.subr.bf16.mxu1 %v11618_v38 }
 0x51c   :  { %v2225_v36 = vpop.f32.mrb[22].mxu1 }
 0x51d   :  { %v6942_v48 = vpop.f32.mrb[23].mxu1  ;;  %v2226_v44 = vadd.f32 %v2225_v36, %v2084_v14 }
 0x53c   :  { %v2360_v24 = vpop.f32.mrb[20].mxu0  ;;  %v2431_v50 = vpop.f32.mrb[24].mxu1 }
 0x53d   :  { %v9104_v22 = vadd.f32 %v9103_v20, %v2360_v24  ;;  %v2362_v42 = vpop.f32.mrb[21].mxu0  ;;  %v6977_v54 = vpop.f32.mrb[25].mxu1  ;;  %v2432_v49 = vadd.f32 %v2431_v50, %v2290_v25  ;;  %v2525_v50 = vrot.slane %v2512_v10, %v9908_v16  ;;  %v11705_v10 = vld [vmem:[#allocation51_spill] sm:$0xff] }
 0x53e   :  { %v9106_v18 = vadd.f32 %v9105_v5, %v2362_v42 }
 0x53f   :  { %v6115_v40 = vmul.f32 -1.442695, %v9104_v22 }
 0x540   :  { %v6116_v61 = vmul.f32 -1.442695, %v9106_v18 }
 0x541   :  { %9224 = vpow2.f32 %v6115_v40  ;;  %v11700_v40 = vld [vmem:[#allocation32_spill] sm:$0xff] }
 0x542   :  { %9226 = vpow2.f32 %v6116_v61 }
 0x54b   :  { %v9225_v41 = vpop.eup %9224 }
 0x54c   :  { %v2439_v15 = vadd.f32 1.0, %v9225_v41  ;;  %v9227_v47 = vpop.eup %9226 }
 0x54d   :  { %v2446_v45 = vadd.f32 1.0, %v9227_v47 }
 0x54e   :  { %9228 = vrcp.f32 %v2439_v15 }
 0x54f   :  { %9230 = vrcp.f32 %v2446_v45  ;;  %v11706_v45 = vld [vmem:[#allocation52_spill] sm:$0xff] }
 0x558   :  { %v9229_v3 = vpop.eup %9228 }
 0x559   :  { %v2449_v21 = vmul.f32 %v9229_v3, %v2432_v49  ;;  %v9231_v48 = vpop.eup %9230  ;;  %v3133_v49 = vld [vmem:[#allocation9 + $0x8] sm:$0xff]  ;;  %v3136_v3 = vld [vmem:[#allocation9 + $0x20] sm:$0xff] }
 0x55a   :  { %v2452_v27 = vsub.f32 1.0, %v9231_v48  ;;  %v2454_v9 = vmul.f32 %v9231_v48, %v10360_v28  ;;  %v3149_v48 = vld [vmem:[#allocation9 + $0x88] sm:$0xff]  ;;  %v3402_v28 = vld [vmem:[#allocation10 + $0x158] sm:$0xff] }
 0x55b   :  { %v2450_v26 = vadd.f32 %v2449_v21, %v2226_v44  ;;  %v3134_v44 = vld [vmem:[#allocation9 + $0x10] sm:$0xff]  ;;  %v3139_v21 = vld [vmem:[#allocation9 + $0x38] sm:$0xff] }
 0x55c   :  { %v2595_v51 = vpop.f32.mrb[6].mxu0  ;;  %v2666_v56 = vpop.f32.mrb[26].mxu1 }
 0x55d   :  { %9232 = vtanh.f32 %v2450_v26  ;;  %v9076_v29 = vadd.f32 %v9075_v12, %v2595_v51  ;;  %v2597_v32 = vpop.f32.mrb[7].mxu0  ;;  %v7012_v43 = vpop.f32.mrb[27].mxu1  ;;  %v2667_v22 = vadd.f32 %v2666_v56, %v2525_v50  ;;  %v3141_v26 = vld [vmem:[#allocation9 + $0x48] sm:$0xff]  ;;  %v3140_v51 = vld [vmem:[#allocation9 + $0x40] sm:$0xff]  ;;  %v3143_v56 = vld [vmem:[#allocation9 + $0x58] sm:$0xff] }
 0x55e   :  { %v9078_v8 = vadd.f32 %v9077_v4, %v2597_v32  ;;  %v3145_v4 = vld [vmem:[#allocation9 + $0x68] sm:$0xff]  ;;  %v3144_v32 = vld [vmem:[#allocation9 + $0x60] sm:$0xff]  ;;  %v3155_v50 = vld [vmem:[#allocation9 + $0xb8] sm:$0xff] }
 0x55f   :  { %v6117_v6 = vmul.f32 -1.442695, %v9076_v29  ;;  %v3148_v29 = vld [vmem:[#allocation9 + $0x80] sm:$0xff] }
 0x560   :  { %v6118_v53 = vmul.f32 -1.442695, %v9078_v8  ;;  %v10606_v43 = vpack.c.bf16 %v3148_v29, %v3145_v4  ;;  %v3146_v8 = vld [vmem:[#allocation9 + $0x70] sm:$0xff]  ;;  %v3177_v29 = vld [vmem:[#allocation9 + $0x168] sm:$0xff] }
 0x561   :  { %9234 = vpow2.f32 %v6117_v6  ;;  %v3147_v6 = vld [vmem:[#allocation9 + $0x78] sm:$0xff] }
 0x562   :  { %9236 = vpow2.f32 %v6118_v53  ;;  %v3151_v53 = vld [vmem:[#allocation9 + $0x98] sm:$0xff] }
 0x567   :  { %v9233_v36 = vpop.eup %9232 }
 0x568   :  { %v2453_v19 = vmul.f32 %v9233_v36, %v2452_v27  ;;  %v3154_v27 = vld [vmem:[#allocation9 + $0xb0] sm:$0xff]  ;;  %v10613_v36 = vpack.c.bf16 %v3147_v6, %v3144_v32  ;;  %v3176_v32 = vld [vmem:[#allocation9 + $0x160] sm:$0xff]  ;;  %v3179_v6 = vld [vmem:[#allocation9 + $0x178] sm:$0xff] }
 0x56a   :  { %v10544_v35 = vadd.f32 %v2454_v9, %v2453_v19  ;;  %v10615_v19 = vpack.c.bf16 %v3149_v48, %v3146_v8  ;;  %v3150_v9 = vld [vmem:[#allocation9 + $0x90] sm:$0xff]  ;;  %v10665_v48 = vpack.c.bf16 %v3179_v6, %v3176_v32 }
 0x56b   :  { %v9235_v46 = vpop.eup %9234  ;;  %v3381_v32 = vld [vmem:[#allocation10 + $0xb0] sm:$0xff] }
 0x56c   :  { %11699 = vst [vmem:[#allocation23_spill] sm:$0xff] %v10544_v35  ;;  %v2674_v20 = vadd.f32 1.0, %v9235_v46  ;;  %v9237_v24 = vpop.eup %9236  ;;  %v10619_v46 = vpack.c.bf16 %v3154_v27, %v3151_v53  ;;  %v3360_v53 = vld [vmem:[#allocation10 + $0x8] sm:$0xff]  ;;  %v3363_v27 = vld [vmem:[#allocation10 + $0x20] sm:$0xff] }
 0x56d   :  { %v2681_v5 = vadd.f32 1.0, %v9237_v24  ;;  %v3152_v24 = vld [vmem:[#allocation9 + $0xa0] sm:$0xff] }
 0x56e   :  { %9238 = vrcp.f32 %v2674_v20  ;;  %v3153_v20 = vld [vmem:[#allocation9 + $0xa8] sm:$0xff] }
 0x56f   :  { %9240 = vrcp.f32 %v2681_v5  ;;  %v3157_v5 = vld [vmem:[#allocation9 + $0xc8] sm:$0xff] }
 0x578   :  { %v9239_v42 = vpop.eup %9238 }
 0x579   :  { %v2684_v54 = vmul.f32 %v9239_v42, %v2667_v22  ;;  %v9241_v61 = vpop.eup %9240  ;;  %v3160_v22 = vld [vmem:[#allocation9 + $0xe0] sm:$0xff]  ;;  %v10623_v42 = vpack.c.bf16 %v3153_v20, %v3150_v9  ;;  %v10677_v9 = vpack.c.bf16 %v3363_v27, %v3360_v53  ;;  %v3377_v53 = vld [vmem:[#allocation10 + $0x90] sm:$0xff]  ;;  %v3380_v27 = vld [vmem:[#allocation10 + $0xa8] sm:$0xff] }
 0x57a   :  { %v2687_v41 = vsub.f32 1.0, %v9241_v61  ;;  %v2689_v25 = vmul.f32 %v9241_v61, %v10369_v23  ;;  %v11701_v23 = vld [vmem:[#allocation47_spill] sm:$0xff]  ;;  %v3159_v61 = vld [vmem:[#allocation9 + $0xd8] sm:$0xff]  ;;  %v3359_v20 = vld [vmem:[#allocation10] sm:$0xff] }
 0x57b   :  { %v2685_v18 = vadd.f32 %v2684_v54, %v11700_v40  ;;  %v10625_v54 = vpack.c.bf16 %v3155_v50, %v3152_v24  ;;  %v3156_v40 = vld [vmem:[#allocation9 + $0xc0] sm:$0xff]  ;;  %v3362_v24 = vld [vmem:[#allocation10 + $0x18] sm:$0xff]  ;;  %v3361_v50 = vld [vmem:[#allocation10 + $0x10] sm:$0xff] }
 0x57d   :  { %9242 = vtanh.f32 %v2685_v18  ;;  %v10629_v18 = vpack.c.bf16 %v3160_v22, %v3157_v5  ;;  %v10679_v5 = vpack.c.bf16 %v3362_v24, %v3359_v20  ;;  %v3364_v22 = vld [vmem:[#allocation10 + $0x28] sm:$0xff]  ;;  %v3379_v20 = vld [vmem:[#allocation10 + $0xa0] sm:$0xff]  ;;  %v10709_v24 = vpack.c.bf16 %v3380_v27, %v3377_v53 }
 0x57e   :  { %v3391_v53 = vld [vmem:[#allocation10 + $0x100] sm:$0xff] }
 0x57f   :  { %11710 = vst [vmem:[#allocation24_spill] sm:$0xff] %v10709_v24 }
 0x587   :  { %v9243_v15 = vpop.eup %9242 }
 0x588   :  { %v2688_v47 = vmul.f32 %v9243_v15, %v2687_v41  ;;  %v3158_v41 = vld [vmem:[#allocation9 + $0xd0] sm:$0xff]  ;;  %v3161_v15 = vld [vmem:[#allocation9 + $0xe8] sm:$0xff] }
 0x58a   :  { %v10549_v14 = vadd.f32 %v2689_v25, %v2688_v47  ;;  %v3163_v47 = vld [vmem:[#allocation9 + $0xf8] sm:$0xff]  ;;  %v3166_v25 = vld [vmem:[#allocation9 + $0x110] sm:$0xff] }
 0x58c   :  { %2821 = vmatmul.mubr.f32.vlgmr.msra.gmra.mrb[22].mxu0 %v10549_v14  ;;  %7046 = vmatmul.mubr.f32.vlgmr.msra.gmra.mrb[28].mxu1 %v10549_v14 }
 0x58d   :  { %8274 = vmatpush1.bf16.msra.mxu0 %v10365_v17  ;;  %8305 = vmatpush3.bf16.msra.mxu1 %v10367_v13  ;;  %v11702_v17 = vld [vmem:[#allocation48_spill] sm:$0xff]  ;;  %v11703_v13 = vld [vmem:[#allocation49_spill] sm:$0xff] }
 0x58e   :  { %8276 = vmatprep.subr.bf16.mxu0 %v10371_v33  ;;  %8306 = vmatprep.subr.bf16.mxu1 %v11618_v38  ;;  %v11704_v33 = vld [vmem:[#allocation50_spill] sm:$0xff] }
 0x58f   :  { %3026 = vmatprep.mubr.f32.mxu0 %v11620_v11  ;;  %7080 = vmatprep.mubr.msk.f32.mxu1 %vm9533_vm0, %v11620_v11 }
 0x591   :  { %8278 = vmatpush1.bf16.msra.mxu0 %v10377_v59  ;;  %8308 = vmatpush3.bf16.msra.mxu1 %v10379_v57  ;;  %v11708_v59 = vld [vmem:[#allocation33_spill] sm:$0xff]  ;;  %v11709_v57 = vld [vmem:[#allocation54_spill] sm:$0xff] }
 0x592   :  { %8280 = vmatprep.subr.bf16.mxu0 %v11701_v23  ;;  %8309 = vmatprep.subr.bf16.mxu1 %v11618_v38  ;;  %v10633_v23 = vpack.c.bf16 %v3159_v61, %v3156_v40  ;;  %v10682_v40 = vpack.c.bf16 %v3364_v22, %v3361_v50  ;;  %v3366_v61 = vld [vmem:[#allocation10 + $0x38] sm:$0xff] }
 0x593   :  { %v3382_v50 = vld [vmem:[#allocation10 + $0xb8] sm:$0xff] }
 0x594   :  { %v10712_v22 = vpack.c.bf16 %v3382_v50, %v3379_v20  ;;  %v3394_v20 = vld [vmem:[#allocation10 + $0x118] sm:$0xff]  ;;  %v3396_v50 = vld [vmem:[#allocation10 + $0x128] sm:$0xff] }
 0x595   :  { %8282 = vmatpush1.bf16.msra.mxu0 %v11702_v17  ;;  %8311 = vmatpush3.bf16.msra.mxu1 %v11703_v13  ;;  %v10635_v17 = vpack.c.bf16 %v3161_v15, %v3158_v41  ;;  %v3162_v13 = vld [vmem:[#allocation9 + $0xf0] sm:$0xff] }
 0x596   :  { %8284 = vmatprep.subr.bf16.mxu0 %v11704_v33  ;;  %8312 = vmatprep.subr.bf16.mxu1 %v11618_v38  ;;  %v10639_v33 = vpack.c.bf16 %v3166_v25, %v3163_v47  ;;  %v3369_v41 = vld [vmem:[#allocation10 + $0x50] sm:$0xff]  ;;  %v3368_v25 = vld [vmem:[#allocation10 + $0x48] sm:$0xff]  ;;  %11711 = vst [vmem:[#allocation25_spill] sm:$0xff] %v10712_v22 }
 0x597   :  { %v10686_v15 = vpack.c.bf16 %v3369_v41, %v3366_v61  ;;  %v3365_v47 = vld [vmem:[#allocation10 + $0x30] sm:$0xff]  ;;  %v3384_v61 = vld [vmem:[#allocation10 + $0xc8] sm:$0xff]  ;;  %v3387_v41 = vld [vmem:[#allocation10 + $0xe0] sm:$0xff] }
 0x599   :  { %8286 = vmatpush1.bf16.msra.mxu0 %v11705_v10  ;;  %8314 = vmatpush3.bf16.msra.mxu1 %v11706_v45  ;;  %v3165_v10 = vld [vmem:[#allocation9 + $0x108] sm:$0xff]  ;;  %v3164_v45 = vld [vmem:[#allocation9 + $0x100] sm:$0xff] }
 0x59a   :  { %8288 = vmatprep.subr.bf16.mxu0 %v11707_v1  ;;  %8315 = vmatprep.subr.bf16.mxu1 %v11618_v38  ;;  %v3167_v1 = vld [vmem:[#allocation9 + $0x118] sm:$0xff] }
 0x59d   :  { %8290 = vmatpush1.bf16.msra.mxu0 %v10410_v7  ;;  %8317 = vmatpush3.bf16.msra.mxu1 %v10412_v0  ;;  %v3132_v7 = vld [vmem:[#allocation9] sm:$0xff]  ;;  %v10584_v0 = vpack.c.bf16 %v3136_v3, %v3133_v49  ;;  %v10643_v49 = vpack.c.bf16 %v3165_v10, %v3162_v13  ;;  %v10645_v3 = vpack.c.bf16 %v3167_v1, %v3164_v45  ;;  %v3370_v45 = vld [vmem:[#allocation10 + $0x58] sm:$0xff] }
 0x59e   :  { %8292 = vmatprep.subr.bf16.mxu0 %v11708_v59  ;;  %8318 = vmatprep.subr.bf16.mxu1 %v11618_v38  ;;  %v10588_v12 = vpack.c.bf16 %v3135_v58, %v3132_v7  ;;  %v3169_v59 = vld [vmem:[#allocation9 + $0x128] sm:$0xff]  ;;  %v3168_v7 = vld [vmem:[#allocation9 + $0x120] sm:$0xff]  ;;  %v10689_v10 = vpack.c.bf16 %v3368_v25, %v3365_v47  ;;  %v10716_v47 = vpack.c.bf16 %v3387_v41, %v3384_v61 }
 0x59f   :  { %v3367_v13 = vld [vmem:[#allocation10 + $0x40] sm:$0xff]  ;;  %v10732_v41 = vpack.c.bf16 %v3394_v20, %v3391_v53  ;;  %v3401_v20 = vld [vmem:[#allocation10 + $0x150] sm:$0xff] }
 0x5a0   :  { %v10692_v1 = vpack.c.bf16 %v3370_v45, %v3367_v13  ;;  %11712 = vst [vmem:[#allocation26_spill] sm:$0xff] %v10716_v47  ;;  %v3383_v25 = vld [vmem:[#allocation10 + $0xc0] sm:$0xff]  ;;  %v3386_v13 = vld [vmem:[#allocation10 + $0xd8] sm:$0xff]  ;;  %v3385_v45 = vld [vmem:[#allocation10 + $0xd0] sm:$0xff] }
 0x5a1   :  { %8294 = vmatpush1.bf16.msra.mxu0 %v11709_v57  ;;  %8320 = vmatpush3.bf16.msra.mxu1 %v10422_v60  ;;  %v3137_v60 = vld [vmem:[#allocation9 + $0x28] sm:$0xff]  ;;  %v3172_v57 = vld [vmem:[#allocation9 + $0x140] sm:$0xff]  ;;  %11717 = vst [vmem:[#allocation40_spill] sm:$0xff] %v10732_v41 }
 0x5a2   :  { %8296 = vmatprep.subr.bf16.mxu0 %v10426_v55  ;;  %8321 = vmatprep.subr.bf16.mxu1 %v11618_v38  ;;  %v3142_v55 = vld [vmem:[#allocation9 + $0x50] sm:$0xff]  ;;  %v10649_v58 = vpack.c.bf16 %v3172_v57, %v3169_v59  ;;  %v3372_v59 = vld [vmem:[#allocation10 + $0x68] sm:$0xff]  ;;  %v3375_v57 = vld [vmem:[#allocation10 + $0x80] sm:$0xff] }
 0x5a3   :  { %v3399_v61 = vld [vmem:[#allocation10 + $0x140] sm:$0xff] }
 0x5a5   :  { %8298 = vmatpush1.bf16.msra.mxu0 %v10430_v37  ;;  %8323 = vmatpush3.bf16.msra.mxu1 %v10432_v2  ;;  %v10590_v37 = vpack.c.bf16 %v3137_v60, %v3134_v44  ;;  %v3138_v2 = vld [vmem:[#allocation9 + $0x30] sm:$0xff]  ;;  %v3171_v44 = vld [vmem:[#allocation9 + $0x138] sm:$0xff] }
 0x5a6   :  { %8300 = vmatprep.subr.bf16.mxu0 %v10436_v31  ;;  %8324 = vmatprep.subr.bf16.mxu1 %v11618_v38  ;;  %v10594_v31 = vpack.c.bf16 %v3142_v55, %v3139_v21  ;;  %v3170_v60 = vld [vmem:[#allocation9 + $0x130] sm:$0xff]  ;;  %v3173_v21 = vld [vmem:[#allocation9 + $0x148] sm:$0xff]  ;;  %v3175_v55 = vld [vmem:[#allocation9 + $0x158] sm:$0xff] }
 0x5a9   :  { %8302 = vmatpush1.bf16.msra.mxu0 %v10440_v62  ;;  %8326 = vmatpush3.bf16.msra.mxu1 %v10442_v63  ;;  %v10600_v62 = vpack.c.bf16 %v3141_v26, %v3138_v2  ;;  %v10602_v63 = vpack.c.bf16 %v3143_v56, %v3140_v51  ;;  %v3178_v2 = vld [vmem:[#allocation9 + $0x170] sm:$0xff]  ;;  %v10653_v26 = vpack.c.bf16 %v3171_v44, %v3168_v7  ;;  %v3371_v44 = vld [vmem:[#allocation10 + $0x60] sm:$0xff] }
 0x5aa   :  { %8328 = vmatprep.subr.bf16.mxu0 %v10584_v0  ;;  %8359 = vmatprep.subr.bf16.mxu1 %v11618_v38  ;;  %v10655_v51 = vpack.c.bf16 %v3173_v21, %v3170_v60  ;;  %v3174_v56 = vld [vmem:[#allocation9 + $0x150] sm:$0xff]  ;;  %v10659_v4 = vpack.c.bf16 %v3178_v2, %v3175_v55  ;;  %v10696_v7 = vpack.c.bf16 %v3375_v57, %v3372_v59  ;;  %v3374_v60 = vld [vmem:[#allocation10 + $0x78] sm:$0xff]  ;;  %v3376_v2 = vld [vmem:[#allocation10 + $0x88] sm:$0xff] }
 0x5ab   :  { %v10663_v8 = vpack.c.bf16 %v3177_v29, %v3174_v56  ;;  %v3373_v21 = vld [vmem:[#allocation10 + $0x70] sm:$0xff]  ;;  %v10699_v55 = vpack.c.bf16 %v3374_v60, %v3371_v44  ;;  %v3378_v29 = vld [vmem:[#allocation10 + $0x98] sm:$0xff]  ;;  %v10719_v59 = vpack.c.bf16 %v3386_v13, %v3383_v25  ;;  %v3388_v57 = vld [vmem:[#allocation10 + $0xe8] sm:$0xff]  ;;  %v10734_v25 = vpack.c.bf16 %v3399_v61, %v3396_v50 }
 0x5ac   :  { %3027 = vmatmul.mubr.f32.vlgmr.msra.gmra.mrb[22].mxu0 %v10544_v35  ;;  %7081 = vmatmul.mubr.f32.vlgmr.msra.gmra.mrb[30].mxu1 %v10544_v35  ;;  %v10702_v56 = vpack.c.bf16 %v3376_v2, %v3373_v21  ;;  %v10706_v6 = vpack.c.bf16 %v3381_v32, %v3378_v29  ;;  %v10722_v44 = vpack.c.bf16 %v3388_v57, %v3385_v45  ;;  %v3390_v60 = vld [vmem:[#allocation10 + $0xf8] sm:$0xff]  ;;  %v3393_v21 = vld [vmem:[#allocation10 + $0x110] sm:$0xff]  ;;  %v3392_v32 = vld [vmem:[#allocation10 + $0x108] sm:$0xff] }
 0x5ad   :  { %8330 = vmatpush1.bf16.msra.mxu0 %v10588_v12  ;;  %8361 = vmatpush3.bf16.msra.mxu1 %v10590_v37  ;;  %11713 = vst [vmem:[#allocation27_spill] sm:$0xff] %v10719_v59  ;;  %v10726_v2 = vpack.c.bf16 %v3393_v21, %v3390_v60  ;;  %v3389_v29 = vld [vmem:[#allocation10 + $0xf0] sm:$0xff]  ;;  %11718 = vst [vmem:[#allocation41_spill] sm:$0xff] %v10734_v25  ;;  %v3395_v13 = vld [vmem:[#allocation10 + $0x120] sm:$0xff] }
 0x5ae   :  { %8332 = vmatprep.subr.bf16.mxu0 %v10594_v31  ;;  %8362 = vmatprep.subr.bf16.mxu1 %v11618_v38  ;;  %11714 = vst [vmem:[#allocation28_spill] sm:$0xff] %v10722_v44  ;;  %v10729_v27 = vpack.c.bf16 %v3392_v32, %v3389_v29  ;;  %v3398_v45 = vld [vmem:[#allocation10 + $0x138] sm:$0xff]  ;;  %v3397_v57 = vld [vmem:[#allocation10 + $0x130] sm:$0xff]  ;;  %v3400_v21 = vld [vmem:[#allocation10 + $0x148] sm:$0xff] }
 0x5af   :  { %3261 = vmatprep.mubr.f32.mxu0 %v11620_v11  ;;  %7115 = vmatprep.mubr.msk.f32.mxu1 %vm9533_vm0, %v11620_v11  ;;  %11715 = vst [vmem:[#allocation29_spill] sm:$0xff] %v10726_v2  ;;  %v10737_v60 = vpack.c.bf16 %v3398_v45, %v3395_v13  ;;  %v3405_v29 = vld [vmem:[#allocation10 + $0x170] sm:$0xff]  ;;  %v10741_v32 = vpack.c.bf16 %v3400_v21, %v3397_v57  ;;  %v3404_v50 = vld [vmem:[#allocation10 + $0x168] sm:$0xff]  ;;  %v3403_v61 = vld [vmem:[#allocation10 + $0x160] sm:$0xff] }
 0x5b0   :  { %11716 = vst [vmem:[#allocation30_spill] sm:$0xff] %v10729_v27  ;;  %v10743_v53 = vpack.c.bf16 %v3405_v29, %v3402_v28  ;;  %v3569_v13 = vld [vmem:[#allocation12 + $0x20] sm:$0xff]  ;;  %v10747_v45 = vpack.c.bf16 %v3404_v50, %v3401_v20 }
 0x5b1   :  { %8334 = vmatpush1.bf16.msra.mxu0 %v10600_v62  ;;  %8364 = vmatpush3.bf16.msra.mxu1 %v10602_v63  ;;  %11719 = vst [vmem:[#allocation31_spill] sm:$0xff] %v10737_v60  ;;  %11720 = vst [vmem:[#allocation42_spill] sm:$0xff] %v10741_v32  ;;  %v2945_v20 = vld [vmem:[%s11473_s8] sm:$0x7] }
 0x5b2   :  { %8336 = vmatprep.subr.bf16.mxu0 %v10606_v43  ;;  %8365 = vmatprep.subr.bf16.mxu1 %v11618_v38  ;;  %11721 = vst [vmem:[#allocation43_spill] sm:$0xff] %v10743_v53  ;;  %11722 = vst [vmem:[#allocation44_spill] sm:$0xff] %v10747_v45  ;;  %v2950_v50 = vrot.slane %v2945_v20, %v11697_v39 }
 0x5b5   :  { %8338 = vmatpush1.bf16.msra.mxu0 %v10613_v36  ;;  %8367 = vmatpush3.bf16.msra.mxu1 %v10615_v19 }
 0x5b6   :  { %8340 = vmatprep.subr.bf16.mxu0 %v10619_v46  ;;  %8368 = vmatprep.subr.bf16.mxu1 %v11618_v38 }
 0x5b9   :  { %8342 = vmatpush1.bf16.msra.mxu0 %v10623_v42  ;;  %8370 = vmatpush3.bf16.msra.mxu1 %v10625_v54 }
 0x5ba   :  { %8344 = vmatprep.subr.bf16.mxu0 %v10629_v18  ;;  %8371 = vmatprep.subr.bf16.mxu1 %v11618_v38 }
 0x5bd   :  { %8346 = vmatpush1.bf16.msra.mxu0 %v10633_v23  ;;  %8373 = vmatpush3.bf16.msra.mxu1 %v10635_v17 }
 0x5be   :  { %8348 = vmatprep.subr.bf16.mxu0 %v10639_v33  ;;  %8374 = vmatprep.subr.bf16.mxu1 %v11618_v38 }
 0x5c1   :  { %8350 = vmatpush1.bf16.msra.mxu0 %v10643_v49  ;;  %8376 = vmatpush3.bf16.msra.mxu1 %v10645_v3 }
 0x5c2   :  { %8352 = vmatprep.subr.bf16.mxu0 %v10649_v58  ;;  %8377 = vmatprep.subr.bf16.mxu1 %v11618_v38 }
 0x5c5   :  { %8354 = vmatpush1.bf16.msra.mxu0 %v10653_v26  ;;  %8379 = vmatpush3.bf16.msra.mxu1 %v10655_v51 }
 0x5c6   :  { %8356 = vmatprep.subr.bf16.mxu0 %v10659_v4  ;;  %8380 = vmatprep.subr.bf16.mxu1 %v11618_v38 }
 0x5c9   :  { %8358 = vmatpush1.bf16.msra.mxu0 %v10663_v8  ;;  %8382 = vmatpush3.bf16.msra.mxu1 %v10665_v48 }
 0x5ca   :  { %8415 = vmatprep.subr.bf16.mxu1 %v11618_v38  ;;  %8384 = vmatprep.subr.bf16.mxu0 %v10677_v9 }
 0x5cc   :  { %3262 = vmatmul.mubr.f32.vlgmr.msra.gmra.mrb[8].mxu0 %v10549_v14  ;;  %7116 = vmatmul.mubr.f32.vlgmr.msra.gmra.mrb[32].mxu1 %v10549_v14 }
 0x5cd   :  { %3488 = vmatprep.mubr.f32.mxu0 %v11620_v11  ;;  %7150 = vmatprep.mubr.msk.f32.mxu1 %vm9533_vm0, %v11620_v11 }
 0x5ce   :  { %8386 = vmatpush1.bf16.msra.mxu0 %v10679_v5  ;;  %8417 = vmatpush3.bf16.msra.mxu1 %v10682_v40 }
 0x5cf   :  { %8418 = vmatprep.subr.bf16.mxu1 %v11618_v38  ;;  %8388 = vmatprep.subr.bf16.mxu0 %v10686_v15 }
 0x5d2   :  { %8390 = vmatpush1.bf16.msra.mxu0 %v10689_v10  ;;  %8420 = vmatpush3.bf16.msra.mxu1 %v10692_v1 }
 0x5d3   :  { %8421 = vmatprep.subr.bf16.mxu1 %v11618_v38  ;;  %8392 = vmatprep.subr.bf16.mxu0 %v10696_v7 }
 0x5d6   :  { %8394 = vmatpush1.bf16.msra.mxu0 %v10699_v55  ;;  %8423 = vmatpush3.bf16.msra.mxu1 %v10702_v56 }
 0x5d7   :  { %8424 = vmatprep.subr.bf16.mxu1 %v11618_v38  ;;  %8396 = vmatprep.subr.bf16.mxu0 %v10706_v6 }
 0x5da   :  { %8398 = vmatpush1.bf16.msra.mxu0 %v10709_v24  ;;  %8426 = vmatpush3.bf16.msra.mxu1 %v10712_v22  ;;  %v3180_v24 = vld [vmem:[%s11469_s4] sm:$0x7] }
 0x5db   :  { %8427 = vmatprep.subr.bf16.mxu1 %v11618_v38  ;;  %8400 = vmatprep.subr.bf16.mxu0 %v10716_v47 }
 0x5de   :  { %8402 = vmatpush1.bf16.msra.mxu0 %v10719_v59  ;;  %8429 = vmatpush3.bf16.msra.mxu1 %v10722_v44 }
 0x5df   :  { %8430 = vmatprep.subr.bf16.mxu1 %v11618_v38  ;;  %8404 = vmatprep.subr.bf16.mxu0 %v10726_v2  ;;  %v3406_v2 = vld [vmem:[#allocation10 + $0x178] sm:$0xff] }
 0x5e0   :  { %v10751_v57 = vpack.c.bf16 %v3406_v2, %v3403_v61  ;;  %v2739_v2 = vld [vmem:[%s11471_s6] sm:$0x7] }
 0x5e1   :  { %v2748_v61 = vrot.slane %v2739_v2, %v11698_v34 }
 0x5e2   :  { %8406 = vmatpush1.bf16.msra.mxu0 %v10729_v27  ;;  %8432 = vmatpush3.bf16.msra.mxu1 %v10732_v41  ;;  %v3566_v27 = vld [vmem:[#allocation12 + $0x8] sm:$0xff]  ;;  %11723 = vst [vmem:[#allocation45_spill] sm:$0xff] %v10751_v57 }
 0x5e3   :  { %8408 = vmatprep.subr.bf16.mxu0 %v10734_v25  ;;  %8433 = vmatprep.subr.bf16.mxu1 %v11618_v38  ;;  %v10753_v28 = vpack.c.bf16 %v3569_v13, %v3566_v27  ;;  %v2744_v27 = vrot.slane %v2739_v2, %v11697_v39  ;;  %v2954_v13 = vrot.slane %v2945_v20, %v11698_v34 }
 0x5e5   :  { %11724 = vst [vmem:[#allocation32_spill] sm:$0xff] %v10753_v28 }
 0x5e6   :  { %8410 = vmatpush1.bf16.msra.mxu0 %v10737_v60  ;;  %8435 = vmatpush3.bf16.msra.mxu1 %v10741_v32 }
 0x5e7   :  { %8412 = vmatprep.subr.bf16.mxu0 %v10743_v53  ;;  %8436 = vmatprep.subr.bf16.mxu1 %v11618_v38 }
 0x5ea   :  { %8414 = vmatpush1.bf16.msra.mxu0 %v10747_v45  ;;  %8438 = vmatpush3.bf16.msra.mxu1 %v10751_v57 }
 0x5eb   :  { %8440 = vmatprep.subr.bf16.mxu0 %v10753_v28  ;;  %8471 = vmatprep.subr.bf16.mxu1 %v11618_v38  ;;  %v9107_v28 = vadd.f32 %v2950_v50, %v2744_v27  ;;  %v2958_v27 = vrot.slane %v2945_v20, %v9908_v16  ;;  %v2752_v50 = vrot.slane %v2739_v2, %v9908_v16 }
 0x65f   :  { %v2893_v21 = vpop.f32.mrb[28].mxu1 }
 0x660   :  { %v7047_v29 = vpop.f32.mrb[29].mxu1 }
 0x661   :  { %v9109_v29 = vadd.f32 %v2954_v13, %v2748_v61 }
 0x67f   :  { %v3028_v57 = vpop.f32.mrb[22].mxu0  ;;  %v3099_v45 = vpop.f32.mrb[30].mxu1 }
 0x680   :  { %v9108_v53 = vadd.f32 %v9107_v28, %v3028_v57  ;;  %v3030_v32 = vpop.f32.mrb[23].mxu0  ;;  %v7082_v60 = vpop.f32.mrb[31].mxu1 }
 0x681   :  { %v9110_v41 = vadd.f32 %v9109_v29, %v3030_v32  ;;  %v3185_v60 = vrot.slane %v3180_v24, %v11697_v39 }
 0x682   :  { %v6119_v25 = vmul.f32 -1.442695, %v9108_v53  ;;  %v3100_v53 = vadd.f32 %v3099_v45, %v2958_v27 }
 0x683   :  { %v6120_v44 = vmul.f32 -1.442695, %v9110_v41  ;;  %v3189_v41 = vrot.slane %v3180_v24, %v11698_v34 }
 0x684   :  { %9244 = vpow2.f32 %v6119_v25 }
 0x685   :  { %9246 = vpow2.f32 %v6120_v44  ;;  %v2894_v44 = vadd.f32 %v2893_v21, %v2752_v50  ;;  %v9081_v13 = vadd.f32 %v3189_v41, %v11641_v30 }
 0x68e   :  { %v9245_v59 = vpop.eup %9244 }
 0x68f   :  { %v3107_v47 = vadd.f32 1.0, %v9245_v59  ;;  %v9247_v22 = vpop.eup %9246 }
 0x690   :  { %v3114_v57 = vadd.f32 1.0, %v9247_v22 }
 0x691   :  { %9248 = vrcp.f32 %v3107_v47  ;;  %v9079_v47 = vadd.f32 %v3185_v60, %v11640_v52 }
 0x692   :  { %9250 = vrcp.f32 %v3114_v57 }
 0x69b   :  { %v9249_v32 = vpop.eup %9248 }
 0x69c   :  { %v3117_v25 = vmul.f32 %v9249_v32, %v3100_v53  ;;  %v9251_v45 = vpop.eup %9250 }
 0x69d   :  { %v3120_v34 = vsub.f32 1.0, %v9251_v45  ;;  %v3122_v57 = vmul.f32 %v9251_v45, %v10544_v35  ;;  %v3570_v45 = vld [vmem:[#allocation12 + $0x28] sm:$0xff]  ;;  %v3596_v35 = vld [vmem:[#allocation12 + $0xf8] sm:$0xff] }
 0x69e   :  { %v3118_v59 = vadd.f32 %v3117_v25, %v2894_v44  ;;  %v3193_v44 = vrot.slane %v3180_v24, %v9908_v16 }
 0x69f   :  { %v3263_v28 = vpop.f32.mrb[8].mxu0  ;;  %v3334_v61 = vpop.f32.mrb[32].mxu1 }
 0x6a0   :  { %9252 = vtanh.f32 %v3118_v59  ;;  %v9080_v20 = vadd.f32 %v9079_v47, %v3263_v28  ;;  %v3265_v2 = vpop.f32.mrb[9].mxu0  ;;  %v7117_v22 = vpop.f32.mrb[33].mxu1  ;;  %v3335_v47 = vadd.f32 %v3334_v61, %v3193_v44 }
 0x6a1   :  { %v9082_v39 = vadd.f32 %v9081_v13, %v3265_v2  ;;  %v3568_v22 = vld [vmem:[#allocation12 + $0x18] sm:$0xff] }
 0x6a2   :  { %v6121_v29 = vmul.f32 -1.442695, %v9080_v20 }
 0x6a3   :  { %v6122_v27 = vmul.f32 -1.442695, %v9082_v39  ;;  %v11726_v39 = vld [vmem:[#allocation35_spill] sm:$0xff] }
 0x6a4   :  { %9254 = vpow2.f32 %v6121_v29  ;;  %v3567_v29 = vld [vmem:[#allocation12 + $0x10] sm:$0xff] }
 0x6a5   :  { %9256 = vpow2.f32 %v6122_v27  ;;  %v10787_v61 = vpack.c.bf16 %v3570_v45, %v3567_v29  ;;  %v3582_v29 = vld [vmem:[#allocation12 + $0x88] sm:$0xff]  ;;  %v3584_v45 = vld [vmem:[#allocation12 + $0x98] sm:$0xff] }
 0x6aa   :  { %v9253_v21 = vpop.eup %9252 }
 0x6ab   :  { %v3121_v50 = vmul.f32 %v9253_v21, %v3120_v34  ;;  %v3565_v34 = vld [vmem:[#allocation12] sm:$0xff]  ;;  %v3572_v21 = vld [vmem:[#allocation12 + $0x38] sm:$0xff] }
 0x6ad   :  { %v10780_v60 = vadd.f32 %v3122_v57, %v3121_v50  ;;  %v3575_v50 = vld [vmem:[#allocation12 + $0x50] sm:$0xff] }
 0x6ae   :  { %v9255_v53 = vpop.eup %9254  ;;  %v10791_v44 = vpack.c.bf16 %v3575_v50, %v3572_v21 }
 0x6af   :  { %11725 = vst [vmem:[#allocation47_spill] sm:$0xff] %v10780_v60  ;;  %v3342_v32 = vadd.f32 1.0, %v9255_v53  ;;  %v9257_v41 = vpop.eup %9256  ;;  %v10785_v53 = vpack.c.bf16 %v3568_v22, %v3565_v34  ;;  %v3579_v22 = vld [vmem:[#allocation12 + $0x70] sm:$0xff] }
 0x6b0   :  { %v3349_v25 = vadd.f32 1.0, %v9257_v41  ;;  %v10812_v50 = vpack.c.bf16 %v3582_v29, %v3579_v22  ;;  %v3592_v29 = vld [vmem:[#allocation12 + $0xd8] sm:$0xff] }
 0x6b1   :  { %9258 = vrcp.f32 %v3342_v32  ;;  %v3571_v32 = vld [vmem:[#allocation12 + $0x30] sm:$0xff] }
 0x6b2   :  { %9260 = vrcp.f32 %v3349_v25  ;;  %v3574_v25 = vld [vmem:[#allocation12 + $0x48] sm:$0xff]  ;;  %11729 = vst [vmem:[#allocation50_spill] sm:$0xff] %v10812_v50 }
 0x6bb   :  { %v9259_v59 = vpop.eup %9258 }
 0x6bc   :  { %v3352_v28 = vmul.f32 %v9259_v59, %v3335_v47  ;;  %v9261_v20 = vpop.eup %9260  ;;  %v3573_v47 = vld [vmem:[#allocation12 + $0x40] sm:$0xff]  ;;  %v3576_v59 = vld [vmem:[#allocation12 + $0x58] sm:$0xff] }
 0x6bd   :  { %v3355_v2 = vsub.f32 1.0, %v9261_v20  ;;  %v3357_v24 = vmul.f32 %v9261_v20, %v10549_v14  ;;  %v10797_v14 = vpack.c.bf16 %v3574_v25, %v3571_v32  ;;  %v3577_v20 = vld [vmem:[#allocation12 + $0x60] sm:$0xff]  ;;  %v3586_v32 = vld [vmem:[#allocation12 + $0xa8] sm:$0xff] }
 0x6be   :  { %v3353_v13 = vadd.f32 %v3352_v28, %v11726_v39  ;;  %v3578_v28 = vld [vmem:[#allocation12 + $0x68] sm:$0xff]  ;;  %v3581_v39 = vld [vmem:[#allocation12 + $0x80] sm:$0xff] }
 0x6bf   :  { %v10803_v34 = vpack.c.bf16 %v3581_v39, %v3578_v28  ;;  %v3585_v25 = vld [vmem:[#allocation12 + $0xa0] sm:$0xff] }
 0x6c0   :  { %9262 = vtanh.f32 %v3353_v13  ;;  %v10799_v13 = vpack.c.bf16 %v3576_v59, %v3573_v47  ;;  %v3588_v47 = vld [vmem:[#allocation12 + $0xb8] sm:$0xff]  ;;  %v3590_v59 = vld [vmem:[#allocation12 + $0xc8] sm:$0xff]  ;;  %v3593_v28 = vld [vmem:[#allocation12 + $0xe0] sm:$0xff] }
 0x6c1   :  { %11727 = vst [vmem:[#allocation48_spill] sm:$0xff] %v10803_v34  ;;  %v10826_v22 = vpack.c.bf16 %v3593_v28, %v3590_v59  ;;  %v3598_v59 = vld [vmem:[#allocation12 + $0x108] sm:$0xff]  ;;  %v3597_v28 = vld [vmem:[#allocation12 + $0x100] sm:$0xff] }
 0x6c3   :  { %11733 = vst [vmem:[#allocation33_spill] sm:$0xff] %v10826_v22 }
 0x6ca   :  { %v9263_v27 = vpop.eup %9262 }
 0x6cb   :  { %v3356_v57 = vmul.f32 %v9263_v27, %v3355_v2  ;;  %v3580_v2 = vld [vmem:[#allocation12 + $0x78] sm:$0xff]  ;;  %v3587_v27 = vld [vmem:[#allocation12 + $0xb0] sm:$0xff] }
 0x6cc   :  { %v10810_v21 = vpack.c.bf16 %v3580_v2, %v3577_v20  ;;  %v10822_v20 = vpack.c.bf16 %v3588_v47, %v3585_v25  ;;  %v3589_v2 = vld [vmem:[#allocation12 + $0xc0] sm:$0xff]  ;;  %v3595_v25 = vld [vmem:[#allocation12 + $0xf0] sm:$0xff] }
 0x6cd   :  { %v10789_v41 = vadd.f32 %v3357_v24, %v3356_v57  ;;  %v3583_v57 = vld [vmem:[#allocation12 + $0x90] sm:$0xff]  ;;  %v10816_v24 = vpack.c.bf16 %v3587_v27, %v3584_v45  ;;  %v3594_v27 = vld [vmem:[#allocation12 + $0xe8] sm:$0xff] }
 0x6ce   :  { %11728 = vst [vmem:[#allocation49_spill] sm:$0xff] %v10810_v21  ;;  %v10820_v39 = vpack.c.bf16 %v3586_v32, %v3583_v57  ;;  %11732 = vst [vmem:[#allocation53_spill] sm:$0xff] %v10822_v20  ;;  %v3591_v45 = vld [vmem:[#allocation12 + $0xd0] sm:$0xff]  ;;  %v10830_v57 = vpack.c.bf16 %v3592_v29, %v3589_v2  ;;  %v10840_v2 = vpack.c.bf16 %v3598_v59, %v3595_v25 }
 0x6cf   :  { %3489 = vmatmul.mubr.f32.vlgmr.msra.gmra.mrb[24].mxu0 %v10789_v41  ;;  %7151 = vmatmul.mubr.f32.vlgmr.msra.gmra.mrb[34].mxu1 %v10789_v41  ;;  %11730 = vst [vmem:[#allocation51_spill] sm:$0xff] %v10816_v24  ;;  %v10832_v32 = vpack.c.bf16 %v3594_v27, %v3591_v45  ;;  %v3601_v45 = vld [vmem:[#allocation12 + $0x120] sm:$0xff]  ;;  %v3603_v27 = vld [vmem:[#allocation12 + $0x130] sm:$0xff] }
 0x6d0   :  { %8442 = vmatpush1.bf16.msra.mxu0 %v10785_v53  ;;  %8473 = vmatpush3.bf16.msra.mxu1 %v10787_v61  ;;  %11731 = vst [vmem:[#allocation52_spill] sm:$0xff] %v10820_v39  ;;  %11735 = vst [vmem:[#allocation35_spill] sm:$0xff] %v10840_v2  ;;  %v3607_v59 = vld [vmem:[#allocation12 + $0x150] sm:$0xff] }
 0x6d1   :  { %8444 = vmatprep.subr.bf16.mxu0 %v10791_v44  ;;  %8474 = vmatprep.subr.bf16.mxu1 %v11618_v38 }
 0x6d2   :  { %3694 = vmatprep.mubr.f32.mxu0 %v11620_v11  ;;  %7185 = vmatprep.mubr.msk.f32.mxu1 %vm9533_vm0, %v11620_v11 }
 0x6d4   :  { %8446 = vmatpush1.bf16.msra.mxu0 %v10797_v14  ;;  %8476 = vmatpush3.bf16.msra.mxu1 %v10799_v13 }
 0x6d5   :  { %8448 = vmatprep.subr.bf16.mxu0 %v10803_v34  ;;  %8477 = vmatprep.subr.bf16.mxu1 %v11618_v38  ;;  %v3599_v34 = vld [vmem:[#allocation12 + $0x110] sm:$0xff] }
 0x6d6   :  { %v10836_v47 = vpack.c.bf16 %v3599_v34, %v3596_v35  ;;  %v3604_v34 = vld [vmem:[#allocation12 + $0x138] sm:$0xff] }
 0x6d7   :  { %v10850_v25 = vpack.c.bf16 %v3604_v34, %v3601_v45  ;;  %v3848_v34 = vld [vmem:[%s11469_s4] sm:$0x7] }
 0x6d8   :  { %8450 = vmatpush1.bf16.msra.mxu0 %v10810_v21  ;;  %8479 = vmatpush3.bf16.msra.mxu1 %v10812_v50  ;;  %11734 = vst [vmem:[#allocation54_spill] sm:$0xff] %v10836_v47  ;;  %v3602_v50 = vld [vmem:[#allocation12 + $0x128] sm:$0xff]  ;;  %v3605_v21 = vld [vmem:[#allocation12 + $0x140] sm:$0xff] }
 0x6d9   :  { %8452 = vmatprep.subr.bf16.mxu0 %v10816_v24  ;;  %8480 = vmatprep.subr.bf16.mxu1 %v11618_v38  ;;  %v3600_v24 = vld [vmem:[#allocation12 + $0x118] sm:$0xff]  ;;  %v10846_v35 = vpack.c.bf16 %v3605_v21, %v3602_v50  ;;  %v3610_v50 = vld [vmem:[#allocation12 + $0x168] sm:$0xff] }
 0x6da   :  { %v10842_v29 = vpack.c.bf16 %v3600_v24, %v3597_v28  ;;  %v3609_v28 = vld [vmem:[#allocation12 + $0x160] sm:$0xff] }
 0x6dc   :  { %8454 = vmatpush1.bf16.msra.mxu0 %v10820_v39  ;;  %8482 = vmatpush3.bf16.msra.mxu1 %v10822_v20  ;;  %v3608_v20 = vld [vmem:[#allocation12 + $0x158] sm:$0xff]  ;;  %v3611_v39 = vld [vmem:[#allocation12 + $0x170] sm:$0xff] }
 0x6dd   :  { %8456 = vmatprep.subr.bf16.mxu0 %v10826_v22  ;;  %8483 = vmatprep.subr.bf16.mxu1 %v11618_v38  ;;  %v3606_v22 = vld [vmem:[#allocation12 + $0x148] sm:$0xff]  ;;  %v10856_v21 = vpack.c.bf16 %v3611_v39, %v3608_v20 }
 0x6de   :  { %v10852_v24 = vpack.c.bf16 %v3606_v22, %v3603_v27 }
 0x6e0   :  { %8458 = vmatpush1.bf16.msra.mxu0 %v10830_v57  ;;  %8485 = vmatpush3.bf16.msra.mxu1 %v10832_v32 }
 0x6e1   :  { %8460 = vmatprep.subr.bf16.mxu0 %v10836_v47  ;;  %8486 = vmatprep.subr.bf16.mxu1 %v11618_v38  ;;  %v3612_v47 = vld [vmem:[#allocation12 + $0x178] sm:$0xff] }
 0x6e2   :  { %v10862_v45 = vpack.c.bf16 %v3612_v47, %v3609_v28 }
 0x6e4   :  { %8462 = vmatpush1.bf16.msra.mxu0 %v10840_v2  ;;  %8488 = vmatpush3.bf16.msra.mxu1 %v10842_v29  ;;  %v10860_v2 = vpack.c.bf16 %v3610_v50, %v3607_v59 }
 0x6e5   :  { %8464 = vmatprep.subr.bf16.mxu0 %v10846_v35  ;;  %8489 = vmatprep.subr.bf16.mxu1 %v11618_v38 }
 0x6e8   :  { %8466 = vmatpush1.bf16.msra.mxu0 %v10850_v25  ;;  %8491 = vmatpush3.bf16.msra.mxu1 %v10852_v24 }
 0x6e9   :  { %8468 = vmatprep.subr.bf16.mxu0 %v10856_v21  ;;  %8492 = vmatprep.subr.bf16.mxu1 %v11618_v38 }
 0x6ec   :  { %8470 = vmatpush1.bf16.msra.mxu0 %v10860_v2  ;;  %8494 = vmatpush3.bf16.msra.mxu1 %v10862_v45 }
 0x6ed   :  { %8496 = vmatprep.subr.bf16.mxu0 %v10584_v0  ;;  %8527 = vmatprep.subr.bf16.mxu1 %v11618_v38  ;;  %v11736_v0 = vld [vmem:[#allocation24_spill] sm:$0xff] }
 0x6ef   :  { %3695 = vmatmul.mubr.f32.vlgmr.msra.gmra.mrb[24].mxu0 %v10780_v60  ;;  %7186 = vmatmul.mubr.f32.vlgmr.msra.gmra.mrb[36].mxu1 %v10780_v60 }
 0x6f0   :  { %8498 = vmatpush1.bf16.msra.mxu0 %v10588_v12  ;;  %8529 = vmatpush3.bf16.msra.mxu1 %v10590_v37  ;;  %v11737_v12 = vld [vmem:[#allocation25_spill] sm:$0xff]  ;;  %v11738_v37 = vld [vmem:[#allocation26_spill] sm:$0xff] }
 0x6f1   :  { %8500 = vmatprep.subr.bf16.mxu0 %v10594_v31  ;;  %8530 = vmatprep.subr.bf16.mxu1 %v11618_v38  ;;  %v11739_v31 = vld [vmem:[#allocation27_spill] sm:$0xff] }
 0x6f2   :  { %3929 = vmatprep.mubr.f32.mxu0 %v11620_v11  ;;  %7220 = vmatprep.mubr.msk.f32.mxu1 %vm9533_vm0, %v11620_v11 }
 0x6f4   :  { %8502 = vmatpush1.bf16.msra.mxu0 %v10600_v62  ;;  %8532 = vmatpush3.bf16.msra.mxu1 %v10602_v63  ;;  %v11740_v62 = vld [vmem:[#allocation28_spill] sm:$0xff]  ;;  %v11741_v63 = vld [vmem:[#allocation29_spill] sm:$0xff] }
 0x6f5   :  { %8504 = vmatprep.subr.bf16.mxu0 %v10606_v43  ;;  %8533 = vmatprep.subr.bf16.mxu1 %v11618_v38  ;;  %v11742_v43 = vld [vmem:[#allocation30_spill] sm:$0xff] }
 0x6f8   :  { %8506 = vmatpush1.bf16.msra.mxu0 %v10613_v36  ;;  %8535 = vmatpush3.bf16.msra.mxu1 %v10615_v19  ;;  %v11743_v36 = vld [vmem:[#allocation40_spill] sm:$0xff]  ;;  %v11744_v19 = vld [vmem:[#allocation41_spill] sm:$0xff] }
 0x6f9   :  { %8508 = vmatprep.subr.bf16.mxu0 %v10619_v46  ;;  %8536 = vmatprep.subr.bf16.mxu1 %v11618_v38  ;;  %v11745_v46 = vld [vmem:[#allocation31_spill] sm:$0xff] }
 0x6fc   :  { %8510 = vmatpush1.bf16.msra.mxu0 %v10623_v42  ;;  %8538 = vmatpush3.bf16.msra.mxu1 %v10625_v54  ;;  %v11746_v42 = vld [vmem:[#allocation42_spill] sm:$0xff]  ;;  %v11747_v54 = vld [vmem:[#allocation43_spill] sm:$0xff] }
 0x6fd   :  { %8512 = vmatprep.subr.bf16.mxu0 %v10629_v18  ;;  %8539 = vmatprep.subr.bf16.mxu1 %v11618_v38  ;;  %v11748_v18 = vld [vmem:[#allocation44_spill] sm:$0xff] }
 0x700   :  { %8514 = vmatpush1.bf16.msra.mxu0 %v10633_v23  ;;  %8541 = vmatpush3.bf16.msra.mxu1 %v10635_v17  ;;  %v11749_v23 = vld [vmem:[#allocation45_spill] sm:$0xff]  ;;  %v11750_v17 = vld [vmem:[#allocation32_spill] sm:$0xff] }
 0x701   :  { %8516 = vmatprep.subr.bf16.mxu0 %v10639_v33  ;;  %8542 = vmatprep.subr.bf16.mxu1 %v11618_v38 }
 0x704   :  { %8518 = vmatpush1.bf16.msra.mxu0 %v10643_v49  ;;  %8544 = vmatpush3.bf16.msra.mxu1 %v10645_v3  ;;  %v3613_v3 = vld [vmem:[%s11473_s8] sm:$0x7] }
 0x705   :  { %8520 = vmatprep.subr.bf16.mxu0 %v10649_v58  ;;  %8545 = vmatprep.subr.bf16.mxu1 %v11618_v38  ;;  %v3407_v58 = vld [vmem:[%s11471_s6] sm:$0x7]  ;;  %v3626_v27 = vrot.slane %v3613_v3, %v9908_v16 }
 0x706   :  { %v3420_v59 = vrot.slane %v3407_v58, %v9908_v16 }
 0x708   :  { %8522 = vmatpush1.bf16.msra.mxu0 %v10653_v26  ;;  %8547 = vmatpush3.bf16.msra.mxu1 %v10655_v51  ;;  %v11751_v26 = vld [vmem:[#allocation36_spill] sm:$0xff] }
 0x709   :  { %8524 = vmatprep.subr.bf16.mxu0 %v10659_v4  ;;  %8548 = vmatprep.subr.bf16.mxu1 %v11618_v38  ;;  %v3412_v51 = vrot.slane %v3407_v58, %v11751_v26  ;;  %v3618_v4 = vrot.slane %v3613_v3, %v11751_v26  ;;  %v3853_v28 = vrot.slane %v3848_v34, %v11751_v26 }
 0x70c   :  { %8526 = vmatpush1.bf16.msra.mxu0 %v10663_v8  ;;  %8550 = vmatpush3.bf16.msra.mxu1 %v10665_v48  ;;  %v11752_v8 = vld [vmem:[#allocation38_spill] sm:$0xff] }
 0x70d   :  { %8552 = vmatprep.subr.bf16.mxu0 %v10677_v9  ;;  %8583 = vmatprep.subr.bf16.mxu1 %v11618_v38  ;;  %v3416_v48 = vrot.slane %v3407_v58, %v11752_v8  ;;  %v3622_v9 = vrot.slane %v3613_v3, %v11752_v8 }
 0x70f   :  { %3930 = vmatmul.mubr.f32.vlgmr.msra.gmra.mrb[10].mxu0 %v10789_v41  ;;  %7221 = vmatmul.mubr.f32.vlgmr.msra.gmra.mrb[38].mxu1 %v10789_v41 }
 0x710   :  { %8554 = vmatpush1.bf16.msra.mxu0 %v10679_v5  ;;  %8585 = vmatpush3.bf16.msra.mxu1 %v10682_v40  ;;  %v9111_v5 = vadd.f32 %v3618_v4, %v3412_v51 }
 0x711   :  { %8556 = vmatprep.subr.bf16.mxu0 %v10686_v15  ;;  %8586 = vmatprep.subr.bf16.mxu1 %v11618_v38 }
 0x712   :  { %4156 = vmatprep.mubr.f32.mxu0 %v11620_v11  ;;  %7255 = vmatprep.mubr.msk.f32.mxu1 %vm9533_vm0, %v11620_v11 }
 0x714   :  { %8558 = vmatpush1.bf16.msra.mxu0 %v10689_v10  ;;  %8588 = vmatpush3.bf16.msra.mxu1 %v10692_v1  ;;  %v9113_v10 = vadd.f32 %v3622_v9, %v3416_v48 }
 0x715   :  { %8560 = vmatprep.subr.bf16.mxu0 %v10696_v7  ;;  %8589 = vmatprep.subr.bf16.mxu1 %v11618_v38 }
 0x718   :  { %8562 = vmatpush1.bf16.msra.mxu0 %v10699_v55  ;;  %8591 = vmatpush3.bf16.msra.mxu1 %v10702_v56 }
 0x719   :  { %8564 = vmatprep.subr.bf16.mxu0 %v10706_v6  ;;  %8592 = vmatprep.subr.bf16.mxu1 %v11618_v38 }
 0x71c   :  { %8566 = vmatpush1.bf16.msra.mxu0 %v11736_v0  ;;  %8594 = vmatpush3.bf16.msra.mxu1 %v11737_v12 }
 0x71d   :  { %8568 = vmatprep.subr.bf16.mxu0 %v11738_v37  ;;  %8595 = vmatprep.subr.bf16.mxu1 %v11618_v38  ;;  %v3857_v37 = vrot.slane %v3848_v34, %v11752_v8 }
 0x720   :  { %8570 = vmatpush1.bf16.msra.mxu0 %v11739_v31  ;;  %8597 = vmatpush3.bf16.msra.mxu1 %v11740_v62 }
 0x721   :  { %8572 = vmatprep.subr.bf16.mxu0 %v11741_v63  ;;  %8598 = vmatprep.subr.bf16.mxu1 %v11618_v38  ;;  %v9083_v63 = vadd.f32 %v3853_v28, %v11640_v52  ;;  %v11761_v28 = vld [vmem:[#allocation33_spill] sm:$0xff] }
 0x724   :  { %8574 = vmatpush1.bf16.msra.mxu0 %v11742_v43  ;;  %8600 = vmatpush3.bf16.msra.mxu1 %v11743_v36 }
 0x725   :  { %8576 = vmatprep.subr.bf16.mxu0 %v11744_v19  ;;  %8601 = vmatprep.subr.bf16.mxu1 %v11618_v38 }
 0x728   :  { %8578 = vmatpush1.bf16.msra.mxu0 %v11745_v46  ;;  %8603 = vmatpush3.bf16.msra.mxu1 %v11746_v42  ;;  %v9085_v46 = vadd.f32 %v3857_v37, %v11641_v30  ;;  %v4471_v37 = vld [vmem:[#allocation9 + $0x18] sm:$0xff] }
 0x729   :  { %8580 = vmatprep.subr.bf16.mxu0 %v11747_v54  ;;  %8604 = vmatprep.subr.bf16.mxu1 %v11618_v38 }
 0x72c   :  { %8582 = vmatpush1.bf16.msra.mxu0 %v11748_v18  ;;  %8606 = vmatpush3.bf16.msra.mxu1 %v11749_v23 }
 0x72d   :  { %8608 = vmatprep.subr.bf16.mxu0 %v11750_v17  ;;  %8639 = vmatprep.subr.bf16.mxu1 %v11618_v38 }
 0x7a2   :  { %v3561_v33 = vpop.f32.mrb[34].mxu1 }
 0x7a3   :  { %v7152_v49 = vpop.f32.mrb[35].mxu1  ;;  %v3562_v31 = vadd.f32 %v3561_v33, %v3420_v59 }
 0x7c2   :  { %v3696_v40 = vpop.f32.mrb[24].mxu0  ;;  %v3767_v15 = vpop.f32.mrb[36].mxu1 }
 0x7c3   :  { %v9112_v1 = vadd.f32 %v9111_v5, %v3696_v40  ;;  %v3698_v7 = vpop.f32.mrb[25].mxu0  ;;  %v7187_v55 = vpop.f32.mrb[37].mxu1  ;;  %v3768_v0 = vadd.f32 %v3767_v15, %v3626_v27  ;;  %v3861_v15 = vrot.slane %v3848_v34, %v9908_v16  ;;  %v11759_v34 = vld [vmem:[#allocation52_spill] sm:$0xff] }
 0x7c4   :  { %v9114_v6 = vadd.f32 %v9113_v10, %v3698_v7 }
 0x7c5   :  { %v6123_v56 = vmul.f32 -1.442695, %v9112_v1 }
 0x7c6   :  { %v6124_v39 = vmul.f32 -1.442695, %v9114_v6 }
 0x7c7   :  { %9264 = vpow2.f32 %v6123_v56  ;;  %v11754_v56 = vld [vmem:[#allocation34_spill] sm:$0xff] }
 0x7c8   :  { %9266 = vpow2.f32 %v6124_v39 }
 0x7d1   :  { %v9265_v20 = vpop.eup %9264 }
 0x7d2   :  { %v3775_v22 = vadd.f32 1.0, %v9265_v20  ;;  %v9267_v47 = vpop.eup %9266 }
 0x7d3   :  { %v3782_v50 = vadd.f32 1.0, %v9267_v47 }
 0x7d4   :  { %9268 = vrcp.f32 %v3775_v22 }
 0x7d5   :  { %9270 = vrcp.f32 %v3782_v50  ;;  %v11760_v50 = vld [vmem:[#allocation53_spill] sm:$0xff] }
 0x7de   :  { %v9269_v12 = vpop.eup %9268 }
 0x7df   :  { %v3785_v62 = vmul.f32 %v9269_v12, %v3768_v0  ;;  %v9271_v49 = vpop.eup %9270  ;;  %v4469_v0 = vld [vmem:[#allocation9 + $0x8] sm:$0xff]  ;;  %v4472_v12 = vld [vmem:[#allocation9 + $0x20] sm:$0xff] }
 0x7e0   :  { %v3788_v58 = vsub.f32 1.0, %v9271_v49  ;;  %v3790_v4 = vmul.f32 %v9271_v49, %v10780_v60  ;;  %v4485_v49 = vld [vmem:[#allocation9 + $0x88] sm:$0xff]  ;;  %v4738_v60 = vld [vmem:[#allocation10 + $0x158] sm:$0xff] }
 0x7e1   :  { %v3786_v43 = vadd.f32 %v3785_v62, %v3562_v31  ;;  %v4470_v31 = vld [vmem:[#allocation9 + $0x10] sm:$0xff]  ;;  %v4475_v62 = vld [vmem:[#allocation9 + $0x38] sm:$0xff] }
 0x7e2   :  { %v3931_v36 = vpop.f32.mrb[10].mxu0  ;;  %v4002_v19 = vpop.f32.mrb[38].mxu1 }
 0x7e3   :  { %9272 = vtanh.f32 %v3786_v43  ;;  %v9084_v42 = vadd.f32 %v9083_v63, %v3931_v36  ;;  %v3933_v54 = vpop.f32.mrb[11].mxu0  ;;  %v7222_v18 = vpop.f32.mrb[39].mxu1  ;;  %v4003_v1 = vadd.f32 %v4002_v19, %v3861_v15  ;;  %v4477_v43 = vld [vmem:[#allocation9 + $0x48] sm:$0xff]  ;;  %v4476_v36 = vld [vmem:[#allocation9 + $0x40] sm:$0xff]  ;;  %v4479_v19 = vld [vmem:[#allocation9 + $0x58] sm:$0xff] }
 0x7e4   :  { %v9086_v17 = vadd.f32 %v9085_v46, %v3933_v54  ;;  %v4481_v46 = vld [vmem:[#allocation9 + $0x68] sm:$0xff]  ;;  %v4480_v54 = vld [vmem:[#allocation9 + $0x60] sm:$0xff]  ;;  %v4491_v15 = vld [vmem:[#allocation9 + $0xb8] sm:$0xff] }
 0x7e5   :  { %v6125_v23 = vmul.f32 -1.442695, %v9084_v42  ;;  %v4484_v42 = vld [vmem:[#allocation9 + $0x80] sm:$0xff] }
 0x7e6   :  { %v6126_v3 = vmul.f32 -1.442695, %v9086_v17  ;;  %v11026_v18 = vpack.c.bf16 %v4484_v42, %v4481_v46  ;;  %v4482_v17 = vld [vmem:[#allocation9 + $0x70] sm:$0xff]  ;;  %v4513_v42 = vld [vmem:[#allocation9 + $0x168] sm:$0xff] }
 0x7e7   :  { %9274 = vpow2.f32 %v6125_v23  ;;  %v4483_v23 = vld [vmem:[#allocation9 + $0x78] sm:$0xff] }
 0x7e8   :  { %9276 = vpow2.f32 %v6126_v3  ;;  %v4487_v3 = vld [vmem:[#allocation9 + $0x98] sm:$0xff] }
 0x7ed   :  { %v9273_v33 = vpop.eup %9272 }
 0x7ee   :  { %v3789_v51 = vmul.f32 %v9273_v33, %v3788_v58  ;;  %v4490_v58 = vld [vmem:[#allocation9 + $0xb0] sm:$0xff]  ;;  %v11033_v33 = vpack.c.bf16 %v4483_v23, %v4480_v54  ;;  %v4512_v54 = vld [vmem:[#allocation9 + $0x160] sm:$0xff]  ;;  %v4515_v23 = vld [vmem:[#allocation9 + $0x178] sm:$0xff] }
 0x7f0   :  { %v10964_v48 = vadd.f32 %v3790_v4, %v3789_v51  ;;  %v11035_v51 = vpack.c.bf16 %v4485_v49, %v4482_v17  ;;  %v4486_v4 = vld [vmem:[#allocation9 + $0x90] sm:$0xff]  ;;  %v11085_v49 = vpack.c.bf16 %v4515_v23, %v4512_v54 }
 0x7f1   :  { %v9275_v9 = vpop.eup %9274  ;;  %v4717_v54 = vld [vmem:[#allocation10 + $0xb0] sm:$0xff] }
 0x7f2   :  { %11753 = vst [vmem:[#allocation24_spill] sm:$0xff] %v10964_v48  ;;  %v4010_v5 = vadd.f32 1.0, %v9275_v9  ;;  %v9277_v40 = vpop.eup %9276  ;;  %v11039_v9 = vpack.c.bf16 %v4490_v58, %v4487_v3  ;;  %v4696_v3 = vld [vmem:[#allocation10 + $0x8] sm:$0xff]  ;;  %v4699_v58 = vld [vmem:[#allocation10 + $0x20] sm:$0xff] }
 0x7f3   :  { %v4017_v10 = vadd.f32 1.0, %v9277_v40  ;;  %v4488_v40 = vld [vmem:[#allocation9 + $0xa0] sm:$0xff] }
 0x7f4   :  { %9278 = vrcp.f32 %v4010_v5  ;;  %v4489_v5 = vld [vmem:[#allocation9 + $0xa8] sm:$0xff] }
 0x7f5   :  { %9280 = vrcp.f32 %v4017_v10  ;;  %v4493_v10 = vld [vmem:[#allocation9 + $0xc8] sm:$0xff] }
 0x7fe   :  { %v9279_v7 = vpop.eup %9278 }
 0x7ff   :  { %v4020_v55 = vmul.f32 %v9279_v7, %v4003_v1  ;;  %v9281_v39 = vpop.eup %9280  ;;  %v4496_v1 = vld [vmem:[#allocation9 + $0xe0] sm:$0xff]  ;;  %v11043_v7 = vpack.c.bf16 %v4489_v5, %v4486_v4  ;;  %v11097_v4 = vpack.c.bf16 %v4699_v58, %v4696_v3  ;;  %v4713_v3 = vld [vmem:[#allocation10 + $0x90] sm:$0xff]  ;;  %v4716_v58 = vld [vmem:[#allocation10 + $0xa8] sm:$0xff] }
 0x800   :  { %v4023_v20 = vsub.f32 1.0, %v9281_v39  ;;  %v4025_v27 = vmul.f32 %v9281_v39, %v10789_v41  ;;  %v11755_v41 = vld [vmem:[#allocation48_spill] sm:$0xff]  ;;  %v4495_v39 = vld [vmem:[#allocation9 + $0xd8] sm:$0xff]  ;;  %v4695_v5 = vld [vmem:[#allocation10] sm:$0xff] }
 0x801   :  { %v4021_v6 = vadd.f32 %v4020_v55, %v11754_v56  ;;  %v11045_v55 = vpack.c.bf16 %v4491_v15, %v4488_v40  ;;  %v4492_v56 = vld [vmem:[#allocation9 + $0xc0] sm:$0xff]  ;;  %v4698_v40 = vld [vmem:[#allocation10 + $0x18] sm:$0xff]  ;;  %v4697_v15 = vld [vmem:[#allocation10 + $0x10] sm:$0xff] }
 0x803   :  { %9282 = vtanh.f32 %v4021_v6  ;;  %v11049_v6 = vpack.c.bf16 %v4496_v1, %v4493_v10  ;;  %v11099_v10 = vpack.c.bf16 %v4698_v40, %v4695_v5  ;;  %v4700_v1 = vld [vmem:[#allocation10 + $0x28] sm:$0xff]  ;;  %v4715_v5 = vld [vmem:[#allocation10 + $0xa0] sm:$0xff]  ;;  %v11129_v40 = vpack.c.bf16 %v4716_v58, %v4713_v3 }
 0x804   :  { %v4727_v3 = vld [vmem:[#allocation10 + $0x100] sm:$0xff] }
 0x805   :  { %11764 = vst [vmem:[#allocation25_spill] sm:$0xff] %v11129_v40 }
 0x80d   :  { %v9283_v22 = vpop.eup %9282 }
 0x80e   :  { %v4024_v47 = vmul.f32 %v9283_v22, %v4023_v20  ;;  %v4494_v20 = vld [vmem:[#allocation9 + $0xd0] sm:$0xff]  ;;  %v4497_v22 = vld [vmem:[#allocation9 + $0xe8] sm:$0xff] }
 0x810   :  { %v10969_v59 = vadd.f32 %v4025_v27, %v4024_v47  ;;  %v4499_v47 = vld [vmem:[#allocation9 + $0xf8] sm:$0xff]  ;;  %v4502_v27 = vld [vmem:[#allocation9 + $0x110] sm:$0xff] }
 0x812   :  { %4157 = vmatmul.mubr.f32.vlgmr.msra.gmra.mrb[26].mxu0 %v10969_v59  ;;  %7256 = vmatmul.mubr.f32.vlgmr.msra.gmra.mrb[40].mxu1 %v10969_v59 }
 0x813   :  { %8610 = vmatpush1.bf16.msra.mxu0 %v10785_v53  ;;  %8641 = vmatpush3.bf16.msra.mxu1 %v10787_v61  ;;  %v11756_v53 = vld [vmem:[#allocation49_spill] sm:$0xff]  ;;  %v11757_v61 = vld [vmem:[#allocation50_spill] sm:$0xff] }
 0x814   :  { %8612 = vmatprep.subr.bf16.mxu0 %v10791_v44  ;;  %8642 = vmatprep.subr.bf16.mxu1 %v11618_v38  ;;  %v11758_v44 = vld [vmem:[#allocation51_spill] sm:$0xff] }
 0x815   :  { %4362 = vmatprep.mubr.f32.mxu0 %v11620_v11  ;;  %7290 = vmatprep.mubr.msk.f32.mxu1 %vm9533_vm0, %v11620_v11 }
 0x817   :  { %8614 = vmatpush1.bf16.msra.mxu0 %v10797_v14  ;;  %8644 = vmatpush3.bf16.msra.mxu1 %v10799_v13  ;;  %v11762_v14 = vld [vmem:[#allocation54_spill] sm:$0xff]  ;;  %v11763_v13 = vld [vmem:[#allocation35_spill] sm:$0xff] }
 0x818   :  { %8616 = vmatprep.subr.bf16.mxu0 %v11755_v41  ;;  %8645 = vmatprep.subr.bf16.mxu1 %v11618_v38  ;;  %v11053_v41 = vpack.c.bf16 %v4495_v39, %v4492_v56  ;;  %v11102_v56 = vpack.c.bf16 %v4700_v1, %v4697_v15  ;;  %v4702_v39 = vld [vmem:[#allocation10 + $0x38] sm:$0xff] }
 0x819   :  { %v4718_v15 = vld [vmem:[#allocation10 + $0xb8] sm:$0xff] }
 0x81a   :  { %v11132_v1 = vpack.c.bf16 %v4718_v15, %v4715_v5  ;;  %v4730_v5 = vld [vmem:[#allocation10 + $0x118] sm:$0xff]  ;;  %v4732_v15 = vld [vmem:[#allocation10 + $0x128] sm:$0xff] }
 0x81b   :  { %8618 = vmatpush1.bf16.msra.mxu0 %v11756_v53  ;;  %8647 = vmatpush3.bf16.msra.mxu1 %v11757_v61  ;;  %v11055_v53 = vpack.c.bf16 %v4497_v22, %v4494_v20  ;;  %v4498_v61 = vld [vmem:[#allocation9 + $0xf0] sm:$0xff] }
 0x81c   :  { %8620 = vmatprep.subr.bf16.mxu0 %v11758_v44  ;;  %8648 = vmatprep.subr.bf16.mxu1 %v11618_v38  ;;  %v11059_v44 = vpack.c.bf16 %v4502_v27, %v4499_v47  ;;  %v4705_v20 = vld [vmem:[#allocation10 + $0x50] sm:$0xff]  ;;  %v4704_v27 = vld [vmem:[#allocation10 + $0x48] sm:$0xff]  ;;  %11765 = vst [vmem:[#allocation26_spill] sm:$0xff] %v11132_v1 }
 0x81d   :  { %v11106_v22 = vpack.c.bf16 %v4705_v20, %v4702_v39  ;;  %v4701_v47 = vld [vmem:[#allocation10 + $0x30] sm:$0xff]  ;;  %v4720_v39 = vld [vmem:[#allocation10 + $0xc8] sm:$0xff]  ;;  %v4723_v20 = vld [vmem:[#allocation10 + $0xe0] sm:$0xff] }
 0x81f   :  { %8622 = vmatpush1.bf16.msra.mxu0 %v11759_v34  ;;  %8650 = vmatpush3.bf16.msra.mxu1 %v11760_v50  ;;  %v4501_v34 = vld [vmem:[#allocation9 + $0x108] sm:$0xff]  ;;  %v4500_v50 = vld [vmem:[#allocation9 + $0x100] sm:$0xff] }
 0x820   :  { %8624 = vmatprep.subr.bf16.mxu0 %v11761_v28  ;;  %8651 = vmatprep.subr.bf16.mxu1 %v11618_v38  ;;  %v4503_v28 = vld [vmem:[#allocation9 + $0x118] sm:$0xff] }
 0x823   :  { %8626 = vmatpush1.bf16.msra.mxu0 %v10830_v57  ;;  %8653 = vmatpush3.bf16.msra.mxu1 %v10832_v32  ;;  %v4468_v57 = vld [vmem:[#allocation9] sm:$0xff]  ;;  %v11004_v32 = vpack.c.bf16 %v4472_v12, %v4469_v0  ;;  %v11063_v0 = vpack.c.bf16 %v4501_v34, %v4498_v61  ;;  %v11065_v12 = vpack.c.bf16 %v4503_v28, %v4500_v50  ;;  %v4706_v50 = vld [vmem:[#allocation10 + $0x58] sm:$0xff] }
 0x824   :  { %8628 = vmatprep.subr.bf16.mxu0 %v11762_v14  ;;  %8654 = vmatprep.subr.bf16.mxu1 %v11618_v38  ;;  %v11008_v63 = vpack.c.bf16 %v4471_v37, %v4468_v57  ;;  %v4505_v14 = vld [vmem:[#allocation9 + $0x128] sm:$0xff]  ;;  %v4504_v57 = vld [vmem:[#allocation9 + $0x120] sm:$0xff]  ;;  %v11109_v34 = vpack.c.bf16 %v4704_v27, %v4701_v47  ;;  %v11136_v47 = vpack.c.bf16 %v4723_v20, %v4720_v39 }
 0x825   :  { %v4703_v61 = vld [vmem:[#allocation10 + $0x40] sm:$0xff]  ;;  %v11152_v20 = vpack.c.bf16 %v4730_v5, %v4727_v3  ;;  %v4737_v5 = vld [vmem:[#allocation10 + $0x150] sm:$0xff] }
 0x826   :  { %v11112_v28 = vpack.c.bf16 %v4706_v50, %v4703_v61  ;;  %11766 = vst [vmem:[#allocation27_spill] sm:$0xff] %v11136_v47  ;;  %v4719_v27 = vld [vmem:[#allocation10 + $0xc0] sm:$0xff]  ;;  %v4722_v61 = vld [vmem:[#allocation10 + $0xd8] sm:$0xff]  ;;  %v4721_v50 = vld [vmem:[#allocation10 + $0xd0] sm:$0xff] }
 0x827   :  { %8630 = vmatpush1.bf16.msra.mxu0 %v11763_v13  ;;  %8656 = vmatpush3.bf16.msra.mxu1 %v10842_v29  ;;  %v4473_v29 = vld [vmem:[#allocation9 + $0x28] sm:$0xff]  ;;  %v4508_v13 = vld [vmem:[#allocation9 + $0x140] sm:$0xff]  ;;  %11771 = vst [vmem:[#allocation41_spill] sm:$0xff] %v11152_v20 }
 0x828   :  { %8632 = vmatprep.subr.bf16.mxu0 %v10846_v35  ;;  %8657 = vmatprep.subr.bf16.mxu1 %v11618_v38  ;;  %v4478_v35 = vld [vmem:[#allocation9 + $0x50] sm:$0xff]  ;;  %v11069_v37 = vpack.c.bf16 %v4508_v13, %v4505_v14  ;;  %v4708_v14 = vld [vmem:[#allocation10 + $0x68] sm:$0xff]  ;;  %v4711_v13 = vld [vmem:[#allocation10 + $0x80] sm:$0xff] }
 0x829   :  { %v4735_v39 = vld [vmem:[#allocation10 + $0x140] sm:$0xff] }
 0x82b   :  { %8634 = vmatpush1.bf16.msra.mxu0 %v10850_v25  ;;  %8659 = vmatpush3.bf16.msra.mxu1 %v10852_v24  ;;  %v11010_v25 = vpack.c.bf16 %v4473_v29, %v4470_v31  ;;  %v4474_v24 = vld [vmem:[#allocation9 + $0x30] sm:$0xff]  ;;  %v4507_v31 = vld [vmem:[#allocation9 + $0x138] sm:$0xff] }
 0x82c   :  { %8636 = vmatprep.subr.bf16.mxu0 %v10856_v21  ;;  %8660 = vmatprep.subr.bf16.mxu1 %v11618_v38  ;;  %v11014_v21 = vpack.c.bf16 %v4478_v35, %v4475_v62  ;;  %v4506_v29 = vld [vmem:[#allocation9 + $0x130] sm:$0xff]  ;;  %v4509_v62 = vld [vmem:[#allocation9 + $0x148] sm:$0xff]  ;;  %v4511_v35 = vld [vmem:[#allocation9 + $0x158] sm:$0xff] }
 0x82f   :  { %8638 = vmatpush1.bf16.msra.mxu0 %v10860_v2  ;;  %8662 = vmatpush3.bf16.msra.mxu1 %v10862_v45  ;;  %v11020_v2 = vpack.c.bf16 %v4477_v43, %v4474_v24  ;;  %v11022_v45 = vpack.c.bf16 %v4479_v19, %v4476_v36  ;;  %v4514_v24 = vld [vmem:[#allocation9 + $0x170] sm:$0xff]  ;;  %v11073_v43 = vpack.c.bf16 %v4507_v31, %v4504_v57  ;;  %v4707_v31 = vld [vmem:[#allocation10 + $0x60] sm:$0xff] }
 0x830   :  { %8664 = vmatprep.subr.bf16.mxu0 %v11004_v32  ;;  %8695 = vmatprep.subr.bf16.mxu1 %v11618_v38  ;;  %v11075_v36 = vpack.c.bf16 %v4509_v62, %v4506_v29  ;;  %v4510_v19 = vld [vmem:[#allocation9 + $0x150] sm:$0xff]  ;;  %v11079_v46 = vpack.c.bf16 %v4514_v24, %v4511_v35  ;;  %v11116_v57 = vpack.c.bf16 %v4711_v13, %v4708_v14  ;;  %v4710_v29 = vld [vmem:[#allocation10 + $0x78] sm:$0xff]  ;;  %v4712_v24 = vld [vmem:[#allocation10 + $0x88] sm:$0xff] }
 0x831   :  { %v11083_v17 = vpack.c.bf16 %v4513_v42, %v4510_v19  ;;  %v4709_v62 = vld [vmem:[#allocation10 + $0x70] sm:$0xff]  ;;  %v11119_v35 = vpack.c.bf16 %v4710_v29, %v4707_v31  ;;  %v4714_v42 = vld [vmem:[#allocation10 + $0x98] sm:$0xff]  ;;  %v11139_v14 = vpack.c.bf16 %v4722_v61, %v4719_v27  ;;  %v4724_v13 = vld [vmem:[#allocation10 + $0xe8] sm:$0xff]  ;;  %v11154_v27 = vpack.c.bf16 %v4735_v39, %v4732_v15 }
 0x832   :  { %4363 = vmatmul.mubr.f32.vlgmr.msra.gmra.mrb[26].mxu0 %v10964_v48  ;;  %7291 = vmatmul.mubr.f32.vlgmr.msra.gmra.mrb[42].mxu1 %v10964_v48  ;;  %v11122_v19 = vpack.c.bf16 %v4712_v24, %v4709_v62  ;;  %v11126_v23 = vpack.c.bf16 %v4717_v54, %v4714_v42  ;;  %v11142_v31 = vpack.c.bf16 %v4724_v13, %v4721_v50  ;;  %v4726_v29 = vld [vmem:[#allocation10 + $0xf8] sm:$0xff]  ;;  %v4729_v62 = vld [vmem:[#allocation10 + $0x110] sm:$0xff]  ;;  %v4728_v54 = vld [vmem:[#allocation10 + $0x108] sm:$0xff] }
 0x833   :  { %8666 = vmatpush1.bf16.msra.mxu0 %v11008_v63  ;;  %8697 = vmatpush3.bf16.msra.mxu1 %v11010_v25  ;;  %11767 = vst [vmem:[#allocation28_spill] sm:$0xff] %v11139_v14  ;;  %v11146_v24 = vpack.c.bf16 %v4729_v62, %v4726_v29  ;;  %v4725_v42 = vld [vmem:[#allocation10 + $0xf0] sm:$0xff]  ;;  %11772 = vst [vmem:[#allocation31_spill] sm:$0xff] %v11154_v27  ;;  %v4731_v61 = vld [vmem:[#allocation10 + $0x120] sm:$0xff] }
 0x834   :  { %8668 = vmatprep.subr.bf16.mxu0 %v11014_v21  ;;  %8698 = vmatprep.subr.bf16.mxu1 %v11618_v38  ;;  %11768 = vst [vmem:[#allocation29_spill] sm:$0xff] %v11142_v31  ;;  %v11149_v58 = vpack.c.bf16 %v4728_v54, %v4725_v42  ;;  %v4734_v50 = vld [vmem:[#allocation10 + $0x138] sm:$0xff]  ;;  %v4733_v13 = vld [vmem:[#allocation10 + $0x130] sm:$0xff]  ;;  %v4736_v62 = vld [vmem:[#allocation10 + $0x148] sm:$0xff] }
 0x835   :  { %4597 = vmatprep.mubr.f32.mxu0 %v11620_v11  ;;  %7325 = vmatprep.mubr.msk.f32.mxu1 %vm9533_vm0, %v11620_v11  ;;  %11769 = vst [vmem:[#allocation30_spill] sm:$0xff] %v11146_v24  ;;  %v11157_v29 = vpack.c.bf16 %v4734_v50, %v4731_v61  ;;  %v4741_v42 = vld [vmem:[#allocation10 + $0x170] sm:$0xff]  ;;  %v11161_v54 = vpack.c.bf16 %v4736_v62, %v4733_v13  ;;  %v4740_v15 = vld [vmem:[#allocation10 + $0x168] sm:$0xff]  ;;  %v4739_v39 = vld [vmem:[#allocation10 + $0x160] sm:$0xff] }
 0x836   :  { %11770 = vst [vmem:[#allocation40_spill] sm:$0xff] %v11149_v58  ;;  %v11163_v3 = vpack.c.bf16 %v4741_v42, %v4738_v60  ;;  %v4905_v61 = vld [vmem:[#allocation12 + $0x20] sm:$0xff]  ;;  %v11167_v50 = vpack.c.bf16 %v4740_v15, %v4737_v5 }
 0x837   :  { %8670 = vmatpush1.bf16.msra.mxu0 %v11020_v2  ;;  %8700 = vmatpush3.bf16.msra.mxu1 %v11022_v45  ;;  %11773 = vst [vmem:[#allocation42_spill] sm:$0xff] %v11157_v29  ;;  %11774 = vst [vmem:[#allocation43_spill] sm:$0xff] %v11161_v54  ;;  %v4281_v5 = vld [vmem:[%s11473_s8] sm:$0x7] }
 0x838   :  { %8672 = vmatprep.subr.bf16.mxu0 %v11026_v18  ;;  %8701 = vmatprep.subr.bf16.mxu1 %v11618_v38  ;;  %11775 = vst [vmem:[#allocation44_spill] sm:$0xff] %v11163_v3  ;;  %11776 = vst [vmem:[#allocation45_spill] sm:$0xff] %v11167_v50  ;;  %v4286_v15 = vrot.slane %v4281_v5, %v11751_v26 }
 0x83b   :  { %8674 = vmatpush1.bf16.msra.mxu0 %v11033_v33  ;;  %8703 = vmatpush3.bf16.msra.mxu1 %v11035_v51 }
 0x83c   :  { %8676 = vmatprep.subr.bf16.mxu0 %v11039_v9  ;;  %8704 = vmatprep.subr.bf16.mxu1 %v11618_v38 }
 0x83f   :  { %8678 = vmatpush1.bf16.msra.mxu0 %v11043_v7  ;;  %8706 = vmatpush3.bf16.msra.mxu1 %v11045_v55 }
 0x840   :  { %8680 = vmatprep.subr.bf16.mxu0 %v11049_v6  ;;  %8707 = vmatprep.subr.bf16.mxu1 %v11618_v38 }
 0x843   :  { %8682 = vmatpush1.bf16.msra.mxu0 %v11053_v41  ;;  %8709 = vmatpush3.bf16.msra.mxu1 %v11055_v53 }
 0x844   :  { %8684 = vmatprep.subr.bf16.mxu0 %v11059_v44  ;;  %8710 = vmatprep.subr.bf16.mxu1 %v11618_v38 }
 0x847   :  { %8686 = vmatpush1.bf16.msra.mxu0 %v11063_v0  ;;  %8712 = vmatpush3.bf16.msra.mxu1 %v11065_v12 }
 0x848   :  { %8688 = vmatprep.subr.bf16.mxu0 %v11069_v37  ;;  %8713 = vmatprep.subr.bf16.mxu1 %v11618_v38 }
 0x84b   :  { %8690 = vmatpush1.bf16.msra.mxu0 %v11073_v43  ;;  %8715 = vmatpush3.bf16.msra.mxu1 %v11075_v36 }
 0x84c   :  { %8692 = vmatprep.subr.bf16.mxu0 %v11079_v46  ;;  %8716 = vmatprep.subr.bf16.mxu1 %v11618_v38 }
 0x84f   :  { %8694 = vmatpush1.bf16.msra.mxu0 %v11083_v17  ;;  %8718 = vmatpush3.bf16.msra.mxu1 %v11085_v49 }
 0x850   :  { %8751 = vmatprep.subr.bf16.mxu1 %v11618_v38  ;;  %8720 = vmatprep.subr.bf16.mxu0 %v11097_v4 }
 0x852   :  { %4598 = vmatmul.mubr.f32.vlgmr.msra.gmra.mrb[12].mxu0 %v10969_v59  ;;  %7326 = vmatmul.mubr.f32.vlgmr.msra.gmra.mrb[44].mxu1 %v10969_v59 }
 0x853   :  { %4824 = vmatprep.mubr.f32.mxu0 %v11620_v11  ;;  %7360 = vmatprep.mubr.msk.f32.mxu1 %vm9533_vm0, %v11620_v11 }
 0x854   :  { %8722 = vmatpush1.bf16.msra.mxu0 %v11099_v10  ;;  %8753 = vmatpush3.bf16.msra.mxu1 %v11102_v56 }
 0x855   :  { %8754 = vmatprep.subr.bf16.mxu1 %v11618_v38  ;;  %8724 = vmatprep.subr.bf16.mxu0 %v11106_v22 }
 0x858   :  { %8726 = vmatpush1.bf16.msra.mxu0 %v11109_v34  ;;  %8756 = vmatpush3.bf16.msra.mxu1 %v11112_v28 }
 0x859   :  { %8757 = vmatprep.subr.bf16.mxu1 %v11618_v38  ;;  %8728 = vmatprep.subr.bf16.mxu0 %v11116_v57 }
 0x85c   :  { %8730 = vmatpush1.bf16.msra.mxu0 %v11119_v35  ;;  %8759 = vmatpush3.bf16.msra.mxu1 %v11122_v19 }
 0x85d   :  { %8760 = vmatprep.subr.bf16.mxu1 %v11618_v38  ;;  %8732 = vmatprep.subr.bf16.mxu0 %v11126_v23 }
 0x860   :  { %8734 = vmatpush1.bf16.msra.mxu0 %v11129_v40  ;;  %8762 = vmatpush3.bf16.msra.mxu1 %v11132_v1  ;;  %v4516_v40 = vld [vmem:[%s11469_s4] sm:$0x7] }
 0x861   :  { %8763 = vmatprep.subr.bf16.mxu1 %v11618_v38  ;;  %8736 = vmatprep.subr.bf16.mxu0 %v11136_v47 }
 0x864   :  { %8738 = vmatpush1.bf16.msra.mxu0 %v11139_v14  ;;  %8765 = vmatpush3.bf16.msra.mxu1 %v11142_v31 }
 0x865   :  { %8766 = vmatprep.subr.bf16.mxu1 %v11618_v38  ;;  %8740 = vmatprep.subr.bf16.mxu0 %v11146_v24  ;;  %v4742_v24 = vld [vmem:[#allocation10 + $0x178] sm:$0xff] }
 0x866   :  { %v11171_v13 = vpack.c.bf16 %v4742_v24, %v4739_v39  ;;  %v4075_v24 = vld [vmem:[%s11471_s6] sm:$0x7] }
 0x867   :  { %v4084_v39 = vrot.slane %v4075_v24, %v11752_v8 }
 0x868   :  { %8742 = vmatpush1.bf16.msra.mxu0 %v11149_v58  ;;  %8768 = vmatpush3.bf16.msra.mxu1 %v11152_v20  ;;  %v4902_v58 = vld [vmem:[#allocation12 + $0x8] sm:$0xff]  ;;  %11777 = vst [vmem:[#allocation32_spill] sm:$0xff] %v11171_v13 }
 0x869   :  { %8744 = vmatprep.subr.bf16.mxu0 %v11154_v27  ;;  %8769 = vmatprep.subr.bf16.mxu1 %v11618_v38  ;;  %v11173_v60 = vpack.c.bf16 %v4905_v61, %v4902_v58  ;;  %v4080_v58 = vrot.slane %v4075_v24, %v11751_v26  ;;  %v4290_v61 = vrot.slane %v4281_v5, %v11752_v8 }
 0x86b   :  { %11778 = vst [vmem:[#allocation34_spill] sm:$0xff] %v11173_v60 }
 0x86c   :  { %8746 = vmatpush1.bf16.msra.mxu0 %v11157_v29  ;;  %8771 = vmatpush3.bf16.msra.mxu1 %v11161_v54 }
 0x86d   :  { %8748 = vmatprep.subr.bf16.mxu0 %v11163_v3  ;;  %8772 = vmatprep.subr.bf16.mxu1 %v11618_v38 }
 0x870   :  { %8750 = vmatpush1.bf16.msra.mxu0 %v11167_v50  ;;  %8774 = vmatpush3.bf16.msra.mxu1 %v11171_v13 }
 0x871   :  { %8776 = vmatprep.subr.bf16.mxu0 %v11173_v60  ;;  %8807 = vmatprep.subr.bf16.mxu1 %v11618_v38  ;;  %v9115_v60 = vadd.f32 %v4286_v15, %v4080_v58  ;;  %v4294_v58 = vrot.slane %v4281_v5, %v9908_v16  ;;  %v4088_v15 = vrot.slane %v4075_v24, %v9908_v16 }
 0x8e5   :  { %v4229_v62 = vpop.f32.mrb[40].mxu1 }
 0x8e6   :  { %v7257_v42 = vpop.f32.mrb[41].mxu1 }
 0x8e7   :  { %v9117_v42 = vadd.f32 %v4290_v61, %v4084_v39 }
 0x905   :  { %v4364_v13 = vpop.f32.mrb[26].mxu0  ;;  %v4435_v50 = vpop.f32.mrb[42].mxu1 }
 0x906   :  { %v9116_v3 = vadd.f32 %v9115_v60, %v4364_v13  ;;  %v4366_v54 = vpop.f32.mrb[27].mxu0  ;;  %v7292_v29 = vpop.f32.mrb[43].mxu1 }
 0x907   :  { %v9118_v20 = vadd.f32 %v9117_v42, %v4366_v54  ;;  %v4521_v29 = vrot.slane %v4516_v40, %v11751_v26 }
 0x908   :  { %v6127_v27 = vmul.f32 -1.442695, %v9116_v3  ;;  %v4436_v3 = vadd.f32 %v4435_v50, %v4294_v58 }
 0x909   :  { %v6128_v31 = vmul.f32 -1.442695, %v9118_v20  ;;  %v4525_v20 = vrot.slane %v4516_v40, %v11752_v8 }
 0x90a   :  { %9284 = vpow2.f32 %v6127_v27 }
 0x90b   :  { %9286 = vpow2.f32 %v6128_v31  ;;  %v4230_v31 = vadd.f32 %v4229_v62, %v4088_v15  ;;  %v9089_v61 = vadd.f32 %v4525_v20, %v11641_v30 }
 0x914   :  { %v9285_v14 = vpop.eup %9284 }
 0x915   :  { %v4443_v47 = vadd.f32 1.0, %v9285_v14  ;;  %v9287_v1 = vpop.eup %9286 }
 0x916   :  { %v4450_v13 = vadd.f32 1.0, %v9287_v1 }
 0x917   :  { %9288 = vrcp.f32 %v4443_v47  ;;  %v9087_v47 = vadd.f32 %v4521_v29, %v11640_v52 }
 0x918   :  { %9290 = vrcp.f32 %v4450_v13 }
 0x921   :  { %v9289_v54 = vpop.eup %9288 }
 0x922   :  { %v4453_v27 = vmul.f32 %v9289_v54, %v4436_v3  ;;  %v9291_v50 = vpop.eup %9290 }
 0x923   :  { %v4456_v8 = vsub.f32 1.0, %v9291_v50  ;;  %v4458_v13 = vmul.f32 %v9291_v50, %v10964_v48  ;;  %v4906_v50 = vld [vmem:[#allocation12 + $0x28] sm:$0xff]  ;;  %v4932_v48 = vld [vmem:[#allocation12 + $0xf8] sm:$0xff] }
 0x924   :  { %v4454_v14 = vadd.f32 %v4453_v27, %v4230_v31  ;;  %v4529_v31 = vrot.slane %v4516_v40, %v9908_v16 }
 0x925   :  { %v4599_v60 = vpop.f32.mrb[12].mxu0  ;;  %v4670_v39 = vpop.f32.mrb[44].mxu1 }
 0x926   :  { %9292 = vtanh.f32 %v4454_v14  ;;  %v9088_v5 = vadd.f32 %v9087_v47, %v4599_v60  ;;  %v4601_v24 = vpop.f32.mrb[13].mxu0  ;;  %v7327_v1 = vpop.f32.mrb[45].mxu1  ;;  %v4671_v47 = vadd.f32 %v4670_v39, %v4529_v31 }
 0x927   :  { %v9090_v26 = vadd.f32 %v9089_v61, %v4601_v24  ;;  %v4904_v1 = vld [vmem:[#allocation12 + $0x18] sm:$0xff] }
 0x928   :  { %v6129_v42 = vmul.f32 -1.442695, %v9088_v5 }
 0x929   :  { %v6130_v58 = vmul.f32 -1.442695, %v9090_v26  ;;  %v11779_v26 = vld [vmem:[#allocation39_spill] sm:$0xff] }
 0x92a   :  { %9294 = vpow2.f32 %v6129_v42  ;;  %v4903_v42 = vld [vmem:[#allocation12 + $0x10] sm:$0xff] }
 0x92b   :  { %9296 = vpow2.f32 %v6130_v58  ;;  %v11207_v39 = vpack.c.bf16 %v4906_v50, %v4903_v42  ;;  %v4918_v42 = vld [vmem:[#allocation12 + $0x88] sm:$0xff]  ;;  %v4920_v50 = vld [vmem:[#allocation12 + $0x98] sm:$0xff] }
 0x930   :  { %v9293_v62 = vpop.eup %9292 }
 0x931   :  { %v4457_v15 = vmul.f32 %v9293_v62, %v4456_v8  ;;  %v4901_v8 = vld [vmem:[#allocation12] sm:$0xff]  ;;  %v4908_v62 = vld [vmem:[#allocation12 + $0x38] sm:$0xff] }
 0x933   :  { %v11200_v29 = vadd.f32 %v4458_v13, %v4457_v15  ;;  %v4911_v15 = vld [vmem:[#allocation12 + $0x50] sm:$0xff] }
 0x934   :  { %v9295_v3 = vpop.eup %9294  ;;  %v11211_v31 = vpack.c.bf16 %v4911_v15, %v4908_v62 }
 0x935   :  { %v4678_v54 = vadd.f32 1.0, %v9295_v3  ;;  %v9297_v20 = vpop.eup %9296  ;;  %v11205_v3 = vpack.c.bf16 %v4904_v1, %v4901_v8  ;;  %v4915_v1 = vld [vmem:[#allocation12 + $0x70] sm:$0xff] }
 0x936   :  { %v4685_v27 = vadd.f32 1.0, %v9297_v20  ;;  %v11232_v15 = vpack.c.bf16 %v4918_v42, %v4915_v1  ;;  %v4928_v42 = vld [vmem:[#allocation12 + $0xd8] sm:$0xff] }
 0x937   :  { %9298 = vrcp.f32 %v4678_v54  ;;  %v4907_v54 = vld [vmem:[#allocation12 + $0x30] sm:$0xff] }
 0x938   :  { %9300 = vrcp.f32 %v4685_v27  ;;  %v4910_v27 = vld [vmem:[#allocation12 + $0x48] sm:$0xff]  ;;  %11782 = vst [vmem:[#allocation50_spill] sm:$0xff] %v11232_v15 }
 0x941   :  { %v9299_v14 = vpop.eup %9298 }
 0x942   :  { %v4688_v60 = vmul.f32 %v9299_v14, %v4671_v47  ;;  %v9301_v5 = vpop.eup %9300  ;;  %v4909_v47 = vld [vmem:[#allocation12 + $0x40] sm:$0xff]  ;;  %v4912_v14 = vld [vmem:[#allocation12 + $0x58] sm:$0xff] }
 0x943   :  { %v4691_v24 = vsub.f32 1.0, %v9301_v5  ;;  %v4693_v40 = vmul.f32 %v9301_v5, %v10969_v59  ;;  %v11217_v59 = vpack.c.bf16 %v4910_v27, %v4907_v54  ;;  %v4913_v5 = vld [vmem:[#allocation12 + $0x60] sm:$0xff]  ;;  %v4922_v54 = vld [vmem:[#allocation12 + $0xa8] sm:$0xff] }
 0x944   :  { %v4689_v61 = vadd.f32 %v4688_v60, %v11779_v26  ;;  %v4914_v60 = vld [vmem:[#allocation12 + $0x68] sm:$0xff]  ;;  %v4917_v26 = vld [vmem:[#allocation12 + $0x80] sm:$0xff] }
 0x945   :  { %v11223_v8 = vpack.c.bf16 %v4917_v26, %v4914_v60  ;;  %v4921_v27 = vld [vmem:[#allocation12 + $0xa0] sm:$0xff] }
 0x946   :  { %9302 = vtanh.f32 %v4689_v61  ;;  %v11219_v61 = vpack.c.bf16 %v4912_v14, %v4909_v47  ;;  %v4924_v47 = vld [vmem:[#allocation12 + $0xb8] sm:$0xff]  ;;  %v4926_v14 = vld [vmem:[#allocation12 + $0xc8] sm:$0xff]  ;;  %v4929_v60 = vld [vmem:[#allocation12 + $0xe0] sm:$0xff] }
 0x947   :  { %11780 = vst [vmem:[#allocation48_spill] sm:$0xff] %v11223_v8  ;;  %v11246_v1 = vpack.c.bf16 %v4929_v60, %v4926_v14  ;;  %v4934_v14 = vld [vmem:[#allocation12 + $0x108] sm:$0xff]  ;;  %v4933_v60 = vld [vmem:[#allocation12 + $0x100] sm:$0xff] }
 0x949   :  { %11786 = vst [vmem:[#allocation33_spill] sm:$0xff] %v11246_v1 }
 0x950   :  { %v9303_v58 = vpop.eup %9302 }
 0x951   :  { %v4692_v13 = vmul.f32 %v9303_v58, %v4691_v24  ;;  %v4916_v24 = vld [vmem:[#allocation12 + $0x78] sm:$0xff]  ;;  %v4923_v58 = vld [vmem:[#allocation12 + $0xb0] sm:$0xff] }
 0x952   :  { %v11230_v62 = vpack.c.bf16 %v4916_v24, %v4913_v5  ;;  %v11242_v5 = vpack.c.bf16 %v4924_v47, %v4921_v27  ;;  %v4925_v24 = vld [vmem:[#allocation12 + $0xc0] sm:$0xff]  ;;  %v4931_v27 = vld [vmem:[#allocation12 + $0xf0] sm:$0xff] }
 0x953   :  { %v11209_v20 = vadd.f32 %v4693_v40, %v4692_v13  ;;  %v4919_v13 = vld [vmem:[#allocation12 + $0x90] sm:$0xff]  ;;  %v11236_v40 = vpack.c.bf16 %v4923_v58, %v4920_v50  ;;  %v4930_v58 = vld [vmem:[#allocation12 + $0xe8] sm:$0xff] }
 0x954   :  { %11781 = vst [vmem:[#allocation49_spill] sm:$0xff] %v11230_v62  ;;  %v11240_v26 = vpack.c.bf16 %v4922_v54, %v4919_v13  ;;  %11785 = vst [vmem:[#allocation53_spill] sm:$0xff] %v11242_v5  ;;  %v4927_v50 = vld [vmem:[#allocation12 + $0xd0] sm:$0xff]  ;;  %v11250_v13 = vpack.c.bf16 %v4928_v42, %v4925_v24  ;;  %v11260_v24 = vpack.c.bf16 %v4934_v14, %v4931_v27 }
 0x955   :  { %4825 = vmatmul.mubr.f32.vlgmr.msra.gmra.mrb[28].mxu0 %v11209_v20  ;;  %7361 = vmatmul.mubr.f32.vlgmr.msra.gmra.mrb[46].mxu1 %v11209_v20  ;;  %11783 = vst [vmem:[#allocation51_spill] sm:$0xff] %v11236_v40  ;;  %v11252_v54 = vpack.c.bf16 %v4930_v58, %v4927_v50  ;;  %v4937_v50 = vld [vmem:[#allocation12 + $0x120] sm:$0xff]  ;;  %v4939_v58 = vld [vmem:[#allocation12 + $0x130] sm:$0xff] }
 0x956   :  { %8778 = vmatpush1.bf16.msra.mxu0 %v11205_v3  ;;  %8809 = vmatpush3.bf16.msra.mxu1 %v11207_v39  ;;  %11784 = vst [vmem:[#allocation52_spill] sm:$0xff] %v11240_v26  ;;  %11788 = vst [vmem:[#allocation35_spill] sm:$0xff] %v11260_v24  ;;  %v4943_v14 = vld [vmem:[#allocation12 + $0x150] sm:$0xff] }
 0x957   :  { %8780 = vmatprep.subr.bf16.mxu0 %v11211_v31  ;;  %8810 = vmatprep.subr.bf16.mxu1 %v11618_v38 }
 0x958   :  { %5030 = vmatprep.mubr.f32.mxu0 %v11620_v11  ;;  %7395 = vmatprep.mubr.msk.f32.mxu1 %vm9533_vm0, %v11620_v11 }
 0x95a   :  { %8782 = vmatpush1.bf16.msra.mxu0 %v11217_v59  ;;  %8812 = vmatpush3.bf16.msra.mxu1 %v11219_v61 }
 0x95b   :  { %8784 = vmatprep.subr.bf16.mxu0 %v11223_v8  ;;  %8813 = vmatprep.subr.bf16.mxu1 %v11618_v38  ;;  %v4935_v8 = vld [vmem:[#allocation12 + $0x110] sm:$0xff] }
 0x95c   :  { %v11256_v47 = vpack.c.bf16 %v4935_v8, %v4932_v48  ;;  %v4940_v8 = vld [vmem:[#allocation12 + $0x138] sm:$0xff] }
 0x95d   :  { %v11270_v27 = vpack.c.bf16 %v4940_v8, %v4937_v50  ;;  %v5184_v8 = vld [vmem:[%s11469_s4] sm:$0x7] }
 0x95e   :  { %8786 = vmatpush1.bf16.msra.mxu0 %v11230_v62  ;;  %8815 = vmatpush3.bf16.msra.mxu1 %v11232_v15  ;;  %11787 = vst [vmem:[#allocation54_spill] sm:$0xff] %v11256_v47  ;;  %v4938_v15 = vld [vmem:[#allocation12 + $0x128] sm:$0xff]  ;;  %v4941_v62 = vld [vmem:[#allocation12 + $0x140] sm:$0xff] }
 0x95f   :  { %8788 = vmatprep.subr.bf16.mxu0 %v11236_v40  ;;  %8816 = vmatprep.subr.bf16.mxu1 %v11618_v38  ;;  %v4936_v40 = vld [vmem:[#allocation12 + $0x118] sm:$0xff]  ;;  %v11266_v48 = vpack.c.bf16 %v4941_v62, %v4938_v15  ;;  %v4946_v15 = vld [vmem:[#allocation12 + $0x168] sm:$0xff] }
 0x960   :  { %v11262_v42 = vpack.c.bf16 %v4936_v40, %v4933_v60  ;;  %v4945_v60 = vld [vmem:[#allocation12 + $0x160] sm:$0xff] }
 0x962   :  { %8790 = vmatpush1.bf16.msra.mxu0 %v11240_v26  ;;  %8818 = vmatpush3.bf16.msra.mxu1 %v11242_v5  ;;  %v4944_v5 = vld [vmem:[#allocation12 + $0x158] sm:$0xff]  ;;  %v4947_v26 = vld [vmem:[#allocation12 + $0x170] sm:$0xff] }
 0x963   :  { %8792 = vmatprep.subr.bf16.mxu0 %v11246_v1  ;;  %8819 = vmatprep.subr.bf16.mxu1 %v11618_v38  ;;  %v4942_v1 = vld [vmem:[#allocation12 + $0x148] sm:$0xff]  ;;  %v11276_v62 = vpack.c.bf16 %v4947_v26, %v4944_v5 }
 0x964   :  { %v11272_v40 = vpack.c.bf16 %v4942_v1, %v4939_v58 }
 0x966   :  { %8794 = vmatpush1.bf16.msra.mxu0 %v11250_v13  ;;  %8821 = vmatpush3.bf16.msra.mxu1 %v11252_v54 }
 0x967   :  { %8796 = vmatprep.subr.bf16.mxu0 %v11256_v47  ;;  %8822 = vmatprep.subr.bf16.mxu1 %v11618_v38  ;;  %v4948_v47 = vld [vmem:[#allocation12 + $0x178] sm:$0xff] }
 0x968   :  { %v11282_v50 = vpack.c.bf16 %v4948_v47, %v4945_v60 }
 0x96a   :  { %8798 = vmatpush1.bf16.msra.mxu0 %v11260_v24  ;;  %8824 = vmatpush3.bf16.msra.mxu1 %v11262_v42  ;;  %v11280_v24 = vpack.c.bf16 %v4946_v15, %v4943_v14 }
 0x96b   :  { %8800 = vmatprep.subr.bf16.mxu0 %v11266_v48  ;;  %8825 = vmatprep.subr.bf16.mxu1 %v11618_v38 }
 0x96e   :  { %8802 = vmatpush1.bf16.msra.mxu0 %v11270_v27  ;;  %8827 = vmatpush3.bf16.msra.mxu1 %v11272_v40 }
 0x96f   :  { %8804 = vmatprep.subr.bf16.mxu0 %v11276_v62  ;;  %8828 = vmatprep.subr.bf16.mxu1 %v11618_v38 }
 0x972   :  { %8806 = vmatpush1.bf16.msra.mxu0 %v11280_v24  ;;  %8830 = vmatpush3.bf16.msra.mxu1 %v11282_v50 }
 0x973   :  { %8832 = vmatprep.subr.bf16.mxu0 %v11004_v32  ;;  %8863 = vmatprep.subr.bf16.mxu1 %v11618_v38  ;;  %v11789_v32 = vld [vmem:[#allocation25_spill] sm:$0xff] }
 0x975   :  { %5031 = vmatmul.mubr.f32.vlgmr.msra.gmra.mrb[28].mxu0 %v11200_v29  ;;  %7396 = vmatmul.mubr.f32.vlgmr.msra.gmra.mrb[48].mxu1 %v11200_v29 }
 0x976   :  { %8834 = vmatpush1.bf16.msra.mxu0 %v11008_v63  ;;  %8865 = vmatpush3.bf16.msra.mxu1 %v11010_v25  ;;  %v11790_v63 = vld [vmem:[#allocation26_spill] sm:$0xff]  ;;  %v11791_v25 = vld [vmem:[#allocation27_spill] sm:$0xff] }
 0x977   :  { %8836 = vmatprep.subr.bf16.mxu0 %v11014_v21  ;;  %8866 = vmatprep.subr.bf16.mxu1 %v11618_v38  ;;  %v11792_v21 = vld [vmem:[#allocation28_spill] sm:$0xff] }
 0x978   :  { %5265 = vmatprep.mubr.f32.mxu0 %v11620_v11  ;;  %7430 = vmatprep.mubr.msk.f32.mxu1 %vm9533_vm0, %v11620_v11 }
 0x97a   :  { %8838 = vmatpush1.bf16.msra.mxu0 %v11020_v2  ;;  %8868 = vmatpush3.bf16.msra.mxu1 %v11022_v45  ;;  %v11793_v2 = vld [vmem:[#allocation29_spill] sm:$0xff]  ;;  %v11794_v45 = vld [vmem:[#allocation30_spill] sm:$0xff] }
 0x97b   :  { %8840 = vmatprep.subr.bf16.mxu0 %v11026_v18  ;;  %8869 = vmatprep.subr.bf16.mxu1 %v11618_v38  ;;  %v11795_v18 = vld [vmem:[#allocation40_spill] sm:$0xff] }
 0x97e   :  { %8842 = vmatpush1.bf16.msra.mxu0 %v11033_v33  ;;  %8871 = vmatpush3.bf16.msra.mxu1 %v11035_v51  ;;  %v11796_v33 = vld [vmem:[#allocation41_spill] sm:$0xff]  ;;  %v11797_v51 = vld [vmem:[#allocation31_spill] sm:$0xff] }
 0x97f   :  { %8844 = vmatprep.subr.bf16.mxu0 %v11039_v9  ;;  %8872 = vmatprep.subr.bf16.mxu1 %v11618_v38  ;;  %v11798_v9 = vld [vmem:[#allocation42_spill] sm:$0xff] }
 0x982   :  { %8846 = vmatpush1.bf16.msra.mxu0 %v11043_v7  ;;  %8874 = vmatpush3.bf16.msra.mxu1 %v11045_v55  ;;  %v11799_v7 = vld [vmem:[#allocation43_spill] sm:$0xff]  ;;  %v11800_v55 = vld [vmem:[#allocation44_spill] sm:$0xff] }
 0x983   :  { %8848 = vmatprep.subr.bf16.mxu0 %v11049_v6  ;;  %8875 = vmatprep.subr.bf16.mxu1 %v11618_v38  ;;  %v11801_v6 = vld [vmem:[#allocation45_spill] sm:$0xff] }
 0x986   :  { %8850 = vmatpush1.bf16.msra.mxu0 %v11053_v41  ;;  %8877 = vmatpush3.bf16.msra.mxu1 %v11055_v53  ;;  %v11802_v41 = vld [vmem:[#allocation32_spill] sm:$0xff]  ;;  %v11803_v53 = vld [vmem:[#allocation34_spill] sm:$0xff] }
 0x987   :  { %8852 = vmatprep.subr.bf16.mxu0 %v11059_v44  ;;  %8878 = vmatprep.subr.bf16.mxu1 %v11618_v38 }
 0x98a   :  { %8854 = vmatpush1.bf16.msra.mxu0 %v11063_v0  ;;  %8880 = vmatpush3.bf16.msra.mxu1 %v11065_v12  ;;  %v4949_v12 = vld [vmem:[%s11473_s8] sm:$0x7] }
 0x98b   :  { %8856 = vmatprep.subr.bf16.mxu0 %v11069_v37  ;;  %8881 = vmatprep.subr.bf16.mxu1 %v11618_v38  ;;  %v4743_v37 = vld [vmem:[%s11471_s6] sm:$0x7]  ;;  %v4962_v58 = vrot.slane %v4949_v12, %v9908_v16 }
 0x98c   :  { %v4756_v14 = vrot.slane %v4743_v37, %v9908_v16 }
 0x98e   :  { %8858 = vmatpush1.bf16.msra.mxu0 %v11073_v43  ;;  %8883 = vmatpush3.bf16.msra.mxu1 %v11075_v36  ;;  %v11804_v43 = vld [vmem:[#allocation36_spill] sm:$0xff] }
 0x98f   :  { %8860 = vmatprep.subr.bf16.mxu0 %v11079_v46  ;;  %8884 = vmatprep.subr.bf16.mxu1 %v11618_v38  ;;  %v4748_v36 = vrot.slane %v4743_v37, %v11804_v43  ;;  %v4954_v46 = vrot.slane %v4949_v12, %v11804_v43  ;;  %v5189_v60 = vrot.slane %v5184_v8, %v11804_v43 }
 0x992   :  { %8862 = vmatpush1.bf16.msra.mxu0 %v11083_v17  ;;  %8886 = vmatpush3.bf16.msra.mxu1 %v11085_v49  ;;  %v11805_v17 = vld [vmem:[#allocation38_spill] sm:$0xff] }
 0x993   :  { %8888 = vmatprep.subr.bf16.mxu0 %v11097_v4  ;;  %8919 = vmatprep.subr.bf16.mxu1 %v11618_v38  ;;  %v4752_v49 = vrot.slane %v4743_v37, %v11805_v17  ;;  %v4958_v4 = vrot.slane %v4949_v12, %v11805_v17 }
 0x995   :  { %5266 = vmatmul.mubr.f32.vlgmr.msra.gmra.mrb[14].mxu0 %v11209_v20  ;;  %7431 = vmatmul.mubr.f32.vlgmr.msra.gmra.mrb[50].mxu1 %v11209_v20 }
 0x996   :  { %8890 = vmatpush1.bf16.msra.mxu0 %v11099_v10  ;;  %8921 = vmatpush3.bf16.msra.mxu1 %v11102_v56  ;;  %v9119_v10 = vadd.f32 %v4954_v46, %v4748_v36 }
 0x997   :  { %8892 = vmatprep.subr.bf16.mxu0 %v11106_v22  ;;  %8922 = vmatprep.subr.bf16.mxu1 %v11618_v38 }
 0x998   :  { %5492 = vmatprep.mubr.f32.mxu0 %v11620_v11  ;;  %7465 = vmatprep.mubr.msk.f32.mxu1 %vm9533_vm0, %v11620_v11 }
 0x99a   :  { %8894 = vmatpush1.bf16.msra.mxu0 %v11109_v34  ;;  %8924 = vmatpush3.bf16.msra.mxu1 %v11112_v28  ;;  %v9121_v34 = vadd.f32 %v4958_v4, %v4752_v49 }
 0x99b   :  { %8896 = vmatprep.subr.bf16.mxu0 %v11116_v57  ;;  %8925 = vmatprep.subr.bf16.mxu1 %v11618_v38 }
 0x99e   :  { %8898 = vmatpush1.bf16.msra.mxu0 %v11119_v35  ;;  %8927 = vmatpush3.bf16.msra.mxu1 %v11122_v19 }
 0x99f   :  { %8900 = vmatprep.subr.bf16.mxu0 %v11126_v23  ;;  %8928 = vmatprep.subr.bf16.mxu1 %v11618_v38 }
 0x9a2   :  { %8902 = vmatpush1.bf16.msra.mxu0 %v11789_v32  ;;  %8930 = vmatpush3.bf16.msra.mxu1 %v11790_v63 }
 0x9a3   :  { %8904 = vmatprep.subr.bf16.mxu0 %v11791_v25  ;;  %8931 = vmatprep.subr.bf16.mxu1 %v11618_v38  ;;  %v5193_v25 = vrot.slane %v5184_v8, %v11805_v17 }
 0x9a6   :  { %8906 = vmatpush1.bf16.msra.mxu0 %v11792_v21  ;;  %8933 = vmatpush3.bf16.msra.mxu1 %v11793_v2 }
 0x9a7   :  { %8908 = vmatprep.subr.bf16.mxu0 %v11794_v45  ;;  %8934 = vmatprep.subr.bf16.mxu1 %v11618_v38  ;;  %v9091_v45 = vadd.f32 %v5189_v60, %v11640_v52  ;;  %v5809_v60 = vld [vmem:[#allocation13 + $0x18] sm:$0xff] }
 0x9aa   :  { %8910 = vmatpush1.bf16.msra.mxu0 %v11795_v18  ;;  %8936 = vmatpush3.bf16.msra.mxu1 %v11796_v33 }
 0x9ab   :  { %8912 = vmatprep.subr.bf16.mxu0 %v11797_v51  ;;  %8937 = vmatprep.subr.bf16.mxu1 %v11618_v38 }
 0x9ae   :  { %8914 = vmatpush1.bf16.msra.mxu0 %v11798_v9  ;;  %8939 = vmatpush3.bf16.msra.mxu1 %v11799_v7  ;;  %v9093_v9 = vadd.f32 %v5193_v25, %v11641_v30 }
 0x9af   :  { %8916 = vmatprep.subr.bf16.mxu0 %v11800_v55  ;;  %8940 = vmatprep.subr.bf16.mxu1 %v11618_v38 }
 0x9b2   :  { %8918 = vmatpush1.bf16.msra.mxu0 %v11801_v6  ;;  %8942 = vmatpush3.bf16.msra.mxu1 %v11802_v41 }
 0x9b3   :  { %8944 = vmatprep.subr.bf16.mxu0 %v11803_v53  ;;  %8975 = vmatprep.subr.bf16.mxu1 %v11618_v38 }
 0xa28   :  { %v4897_v44 = vpop.f32.mrb[46].mxu1 }
 0xa29   :  { %v7362_v0 = vpop.f32.mrb[47].mxu1  ;;  %v4898_v21 = vadd.f32 %v4897_v44, %v4756_v14  ;;  %v5806_v14 = vld [vmem:[#allocation13] sm:$0xff] }
 0xa48   :  { %v5032_v56 = vpop.f32.mrb[28].mxu0  ;;  %v5103_v22 = vpop.f32.mrb[48].mxu1 }
 0xa49   :  { %v9120_v28 = vadd.f32 %v9119_v10, %v5032_v56  ;;  %v5034_v57 = vpop.f32.mrb[29].mxu0  ;;  %v7397_v35 = vpop.f32.mrb[49].mxu1  ;;  %v5104_v32 = vadd.f32 %v5103_v22, %v4962_v58  ;;  %v5197_v10 = vrot.slane %v5184_v8, %v9908_v16  ;;  %v11811_v8 = vld [vmem:[#allocation52_spill] sm:$0xff]  ;;  %v11812_v58 = vld [vmem:[#allocation53_spill] sm:$0xff] }
 0xa4a   :  { %v9122_v23 = vadd.f32 %v9121_v34, %v5034_v57  ;;  %v11806_v57 = vld [vmem:[#allocation37_spill] sm:$0xff] }
 0xa4b   :  { %v6131_v19 = vmul.f32 -1.442695, %v9120_v28 }
 0xa4c   :  { %v6132_v26 = vmul.f32 -1.442695, %v9122_v23 }
 0xa4d   :  { %9304 = vpow2.f32 %v6131_v19 }
 0xa4e   :  { %9306 = vpow2.f32 %v6132_v26 }
 0xa57   :  { %v9305_v5 = vpop.eup %9304 }
 0xa58   :  { %v5111_v1 = vadd.f32 1.0, %v9305_v5  ;;  %v9307_v47 = vpop.eup %9306 }
 0xa59   :  { %v5118_v15 = vadd.f32 1.0, %v9307_v47 }
 0xa5a   :  { %9308 = vrcp.f32 %v5111_v1 }
 0xa5b   :  { %9310 = vrcp.f32 %v5118_v15  ;;  %v5807_v15 = vld [vmem:[#allocation13 + $0x8] sm:$0xff] }
 0xa64   :  { %v9309_v63 = vpop.eup %9308 }
 0xa65   :  { %v5121_v2 = vmul.f32 %v9309_v63, %v5104_v32  ;;  %v9311_v0 = vpop.eup %9310  ;;  %v5811_v32 = vld [vmem:[#allocation13 + $0x28] sm:$0xff]  ;;  %v5814_v63 = vld [vmem:[#allocation13 + $0x40] sm:$0xff] }
 0xa66   :  { %v5124_v37 = vsub.f32 1.0, %v9311_v0  ;;  %v5126_v52 = vmul.f32 %v9311_v0, %v11200_v29  ;;  %v11820_v0 = vld [vmem:[#allocation24_spill] sm:$0xff] }
 0xa67   :  { %v5122_v18 = vadd.f32 %v5121_v2, %v4898_v21  ;;  %v5816_v21 = vld [vmem:[#allocation13 + $0x50] sm:$0xff]  ;;  %v5817_v2 = vld [vmem:[#allocation13 + $0x58] sm:$0xff] }
 0xa68   :  { %v5267_v33 = vpop.f32.mrb[14].mxu0  ;;  %v5338_v51 = vpop.f32.mrb[50].mxu1 }
 0xa69   :  { %9312 = vtanh.f32 %v5122_v18  ;;  %v9092_v7 = vadd.f32 %v9091_v45, %v5267_v33  ;;  %v5269_v55 = vpop.f32.mrb[15].mxu0  ;;  %v7432_v6 = vpop.f32.mrb[51].mxu1  ;;  %v5339_v22 = vadd.f32 %v5338_v51, %v5197_v10  ;;  %v9019_v45 = vpack.c.bf16 %v5817_v2, %v5816_v21  ;;  %v5818_v18 = vld [vmem:[#allocation13 + $0x60] sm:$0xff]  ;;  %v5819_v33 = vld [vmem:[#allocation13 + $0x68] sm:$0xff] }
 0xa6a   :  { %v9094_v53 = vadd.f32 %v9093_v9, %v5269_v55  ;;  %v9023_v51 = vpack.c.bf16 %v5819_v33, %v5818_v18  ;;  %v5820_v9 = vld [vmem:[#allocation13 + $0x70] sm:$0xff]  ;;  %v11817_v6 = vld [vmem:[#allocation46_spill] sm:$0xff] }
 0xa6b   :  { %v6133_v41 = vmul.f32 -1.442695, %v9092_v7  ;;  %v5821_v7 = vld [vmem:[#allocation13 + $0x78] sm:$0xff]  ;;  %v6137_v18 = vld [vmem:[%s11475_s10] ss:$0 sm:$0xff] }
 0xa6c   :  { %v6134_v12 = vmul.f32 -1.442695, %v9094_v53  ;;  %v9027_v55 = vpack.c.bf16 %v5821_v7, %v5820_v9  ;;  %v11819_v53 = vld [vmem:[#allocation47_spill] sm:$0xff] }
 0xa6d   :  { %9314 = vpow2.f32 %v6133_v41  ;;  %v11818_v41 = vld [vmem:[#allocation23_spill] sm:$0xff] }
 0xa6e   :  { %9316 = vpow2.f32 %v6134_v12  ;;  %v5942_v12 = vld [vmem:[#allocation15] sm:$0xff] }
 0xa73   :  { %v9313_v44 = vpop.eup %9312 }
 0xa74   :  { %v5125_v36 = vmul.f32 %v9313_v44, %v5124_v37  ;;  %v5943_v37 = vld [vmem:[#allocation15 + $0x8] sm:$0xff] }
 0xa75   :  { %v9031_v44 = vpack.c.bf16 %v5943_v37, %v5942_v12 }
 0xa76   :  { %v11384_v46 = vadd.f32 %v5126_v52, %v5125_v36  ;;  %v5944_v36 = vld [vmem:[#allocation15 + $0x10] sm:$0xff]  ;;  %v5945_v52 = vld [vmem:[#allocation15 + $0x18] sm:$0xff] }
 0xa77   :  { %v9315_v49 = vpop.eup %9314 }
 0xa78   :  { %v5346_v4 = vadd.f32 1.0, %v9315_v49  ;;  %v9317_v30 = vpop.eup %9316  ;;  %v9035_v49 = vpack.c.bf16 %v5945_v52, %v5944_v36 }
 0xa79   :  { %v5353_v56 = vadd.f32 1.0, %v9317_v30  ;;  %v5947_v30 = vld [vmem:[#allocation15 + $0x28] sm:$0xff] }
 0xa7a   :  { %9318 = vrcp.f32 %v5346_v4  ;;  %v5946_v4 = vld [vmem:[#allocation15 + $0x20] sm:$0xff] }
 0xa7b   :  { %9320 = vrcp.f32 %v5353_v56  ;;  %v9039_v10 = vpack.c.bf16 %v5947_v30, %v5946_v4  ;;  %v5948_v56 = vld [vmem:[#allocation15 + $0x30] sm:$0xff] }
 0xa84   :  { %v9319_v34 = vpop.eup %9318 }
 0xa85   :  { %v5356_v28 = vmul.f32 %v9319_v34, %v5339_v22  ;;  %v9321_v19 = vpop.eup %9320  ;;  %v5949_v22 = vld [vmem:[#allocation15 + $0x38] sm:$0xff]  ;;  %v5950_v34 = vld [vmem:[#allocation15 + $0x40] sm:$0xff] }
 0xa86   :  { %v5359_v23 = vsub.f32 1.0, %v9321_v19  ;;  %v5361_v1 = vmul.f32 %v9321_v19, %v11209_v20  ;;  %v11807_v20 = vld [vmem:[#allocation48_spill] sm:$0xff]  ;;  %v5953_v19 = vld [vmem:[#allocation15 + $0x58] sm:$0xff] }
 0xa87   :  { %v5357_v35 = vadd.f32 %v5356_v28, %v11806_v57  ;;  %v5951_v28 = vld [vmem:[#allocation15 + $0x48] sm:$0xff] }
 0xa88   :  { %v9047_v57 = vpack.c.bf16 %v5951_v28, %v5950_v34 }
 0xa89   :  { %9322 = vtanh.f32 %v5357_v35  ;;  %v5952_v35 = vld [vmem:[#allocation15 + $0x50] sm:$0xff] }
 0xa93   :  { %v9323_v26 = vpop.eup %9322 }
 0xa94   :  { %v5360_v5 = vmul.f32 %v9323_v26, %v5359_v23  ;;  %v9051_v23 = vpack.c.bf16 %v5953_v19, %v5952_v35  ;;  %v5954_v26 = vld [vmem:[#allocation15 + $0x60] sm:$0xff] }
 0xa95   :  { %v6138_v35 = vld [vmem:[%s11477_s12] ss:$0 sm:$0xff]  ;;  %s9534_s12 = smov [#allocation16]  }
 0xa96   :  { %v5362_v47 = vadd.f32 %v5361_v1, %v5360_v5  ;;  %v5955_v5 = vld [vmem:[#allocation15 + $0x68] sm:$0xff]  ;;  %s6083_s29 = sshll.u32 %s9534_s12, 4  ;;  %s6084_s29 = int_to_ptr.vmem [resolvable:$true] %s6083_s29 }
 0xa97   :  { %v9055_v1 = vpack.c.bf16 %v5955_v5, %v5954_v26  ;;  %s9488_s5 = scalar_lea.vmem %s6084_s29, 1024  ;;  %p9493_p1 = scmp.lt.s32.totalorder %s6084_s29, %s6084_s29 }
 0xa98   :  { %5493 = vmatmul.mubr.f32.vlgmr.msra.gmra.mrb[30].mxu0 %v5362_v47  ;;  %7466 = vmatmul.mubr.f32.vlgmr.msra.gmra.mrb[52].mxu1 %v5362_v47  ;;  %v5956_v47 = vld [vmem:[#allocation15 + $0x70] sm:$0xff]  ;;  %p9489_p0 = scmp.ne.s32.totalorder %s6084_s29, %s9488_s5  ;;  %p9494_p2 = scmp.lt.s32.totalorder %s9488_s5, %s9488_s5 }
 0xa99   :  { %8946 = vmatpush1.bf16.msra.mxu0 %v11205_v3  ;;  %8977 = vmatpush3.bf16.msra.mxu1 %v11207_v39  ;;  %v11808_v3 = vld [vmem:[#allocation49_spill] sm:$0xff]  ;;  %v11809_v39 = vld [vmem:[#allocation50_spill] sm:$0xff] }
 0xa9a   :  { %8948 = vmatprep.subr.bf16.mxu0 %v11211_v31  ;;  %8978 = vmatprep.subr.bf16.mxu1 %v11618_v38  ;;  %v11810_v31 = vld [vmem:[#allocation51_spill] sm:$0xff]  ;;  %p9495_p3 = por %p9494_p2, %p9493_p1 }
 0xa9b   :  { %5698 = vmatprep.mubr.f32.mxu0 %v11620_v11  ;;  %7500 = vmatprep.mubr.msk.f32.mxu1 %vm9533_vm0, %v11620_v11  ;;  %v11813_v11 = vld [vmem:[#allocation33_spill] sm:$0xff] }
 0xa9c   :  { %p9496_p4 = pnand %p9495_p3, %p9489_p0 }
 0xa9d   :  { %8950 = vmatpush1.bf16.msra.mxu0 %v11217_v59  ;;  %8980 = vmatpush3.bf16.msra.mxu1 %v11219_v61  ;;  %v11814_v59 = vld [vmem:[#allocation54_spill] sm:$0xff]  ;;  %v11815_v61 = vld [vmem:[#allocation35_spill] sm:$0xff] }
 0xa9e   :  { %8952 = vmatprep.subr.bf16.mxu0 %v11807_v20  ;;  %8981 = vmatprep.subr.bf16.mxu1 %v11618_v38  ;;  %v5957_v20 = vld [vmem:[#allocation15 + $0x78] sm:$0xff] }
 0xaa1   :  { %8954 = vmatpush1.bf16.msra.mxu0 %v11808_v3  ;;  %8983 = vmatpush3.bf16.msra.mxu1 %v11809_v39  ;;  %v9059_v3 = vpack.c.bf16 %v5957_v20, %v5956_v47 }
 0xaa2   :  { %8956 = vmatprep.subr.bf16.mxu0 %v11810_v31  ;;  %8984 = vmatprep.subr.bf16.mxu1 %v11618_v38 }
 0xaa5   :  { %8958 = vmatpush1.bf16.msra.mxu0 %v11811_v8  ;;  %8986 = vmatpush3.bf16.msra.mxu1 %v11812_v58  ;;  %v5617_v8 = vld [vmem:[%s11473_s8] sm:$0x7] }
 0xaa6   :  { %8960 = vmatprep.subr.bf16.mxu0 %v11813_v11  ;;  %8987 = vmatprep.subr.bf16.mxu1 %v11618_v38  ;;  %v5411_v58 = vld [vmem:[%s11471_s6] sm:$0x7] }
 0xaa7   :  { %v5416_v11 = vrot.slane %v5411_v58, %v11804_v43 }
 0xaa9   :  { %8962 = vmatpush1.bf16.msra.mxu0 %v11250_v13  ;;  %8989 = vmatpush3.bf16.msra.mxu1 %v11252_v54  ;;  %v8999_v13 = vpack.c.bf16 %v5807_v15, %v5806_v14  ;;  %v5808_v54 = vld [vmem:[#allocation13 + $0x10] sm:$0xff]  ;;  %v5626_v14 = vrot.slane %v5617_v8, %v11805_v17 }
 0xaaa   :  { %8964 = vmatprep.subr.bf16.mxu0 %v11814_v59  ;;  %8990 = vmatprep.subr.bf16.mxu1 %v11618_v38  ;;  %v5622_v59 = vrot.slane %v5617_v8, %v11804_v43 }
 0xaac   :  { %v9123_v15 = vadd.f32 %v5622_v59, %v5416_v11 }
 0xaad   :  { %8966 = vmatpush1.bf16.msra.mxu0 %v11815_v61  ;;  %8992 = vmatpush3.bf16.msra.mxu1 %v11262_v42  ;;  %v9003_v42 = vpack.c.bf16 %v5809_v60, %v5808_v54  ;;  %v5420_v61 = vrot.slane %v5411_v58, %v11805_v17  ;;  %v5424_v17 = vrot.slane %v5411_v58, %v9908_v16 }
 0xaae   :  { %8968 = vmatprep.subr.bf16.mxu0 %v11266_v48  ;;  %8993 = vmatprep.subr.bf16.mxu1 %v11618_v38  ;;  %v5810_v48 = vld [vmem:[#allocation13 + $0x20] sm:$0xff] }
 0xaaf   :  { %v9125_v60 = vadd.f32 %v5626_v14, %v5420_v61 }
 0xab1   :  { %8970 = vmatpush1.bf16.msra.mxu0 %v11270_v27  ;;  %8995 = vmatpush3.bf16.msra.mxu1 %v11272_v40  ;;  %v11816_v27 = vld [vmem:[#allocation22_spill] sm:$0xff]  ;;  %v5812_v40 = vld [vmem:[#allocation13 + $0x30] sm:$0xff] }
 0xab2   :  { %8972 = vmatprep.subr.bf16.mxu0 %v11276_v62  ;;  %8996 = vmatprep.subr.bf16.mxu1 %v11618_v38  ;;  %v9007_v38 = vpack.c.bf16 %v5811_v32, %v5810_v48  ;;  %v5813_v62 = vld [vmem:[#allocation13 + $0x38] sm:$0xff] }
 0xab5   :  { %8974 = vmatpush1.bf16.msra.mxu0 %v11280_v24  ;;  %8998 = vmatpush3.bf16.msra.mxu1 %v11282_v50  ;;  %v9011_v24 = vpack.c.bf16 %v5813_v62, %v5812_v40  ;;  %v5815_v50 = vld [vmem:[#allocation13 + $0x48] sm:$0xff] }
 0xab6   :  { %9000 = vmatprep.subr.bf16.mxu0 %v8999_v13  ;;  %v9015_v25 = vpack.c.bf16 %v5815_v50, %v5814_v63  ;;  %9032 = vmatprep.subr.bf16.mxu1 %v9031_v44  ;;  %v5630_v63 = vrot.slane %v5617_v8, %v9908_v16 }
 0xab8   :  { %5699 = vmatmul.mubr.f32.vlgmr.msra.gmra.mrb[30].mxu0 %v11384_v46  ;;  %7501 = vmatmul.mubr.f32.vlgmr.msra.gmra.mrb[54].mxu1 %v11384_v46 }
 0xab9   :  { %9002 = vmatpush3.bf16.msra.mxu0 %v8999_v13  ;;  %7535 = vmatprep.mubr.f32.mxu0 %v11816_v27 }
 0xaba   :  { %9004 = vmatprep.subr.bf16.mxu0 %v9003_v42  ;;  %9034 = vmatpush3.bf16.msra.mxu1 %v9031_v44 }
 0xabb   :  { %9036 = vmatprep.subr.bf16.mxu1 %v9035_v49 }
 0xabd   :  { %9006 = vmatpush3.bf16.msra.mxu0 %v9003_v42 }
 0xabe   :  { %9008 = vmatprep.subr.bf16.mxu0 %v9007_v38  ;;  %9038 = vmatpush3.bf16.msra.mxu1 %v9035_v49 }
 0xabf   :  { %9040 = vmatprep.subr.bf16.mxu1 %v9039_v10 }
 0xac1   :  { %9010 = vmatpush3.bf16.msra.mxu0 %v9007_v38 }
 0xac2   :  { %9012 = vmatprep.subr.bf16.mxu0 %v9011_v24  ;;  %9042 = vmatpush3.bf16.msra.mxu1 %v9039_v10 }
 0xac5   :  { %9014 = vmatpush3.bf16.msra.mxu0 %v9011_v24 }
 0xac6   :  { %9016 = vmatprep.subr.bf16.mxu0 %v9015_v25 }
 0xac9   :  { %9018 = vmatpush3.bf16.msra.mxu0 %v9015_v25 }
 0xaca   :  { %9020 = vmatprep.subr.bf16.mxu0 %v9019_v45 }
 0xacd   :  { %9022 = vmatpush3.bf16.msra.mxu0 %v9019_v45 }
 0xace   :  { %9024 = vmatprep.subr.bf16.mxu0 %v9023_v51 }
 0xad1   :  { %9026 = vmatpush3.bf16.msra.mxu0 %v9023_v51 }
 0xad2   :  { %9028 = vmatprep.subr.bf16.mxu0 %v9027_v55 }
 0xad5   :  { %9030 = vmatpush3.bf16.msra.mxu0 %v9027_v55 }
 0xad8   :  { %7536 = vmatmul.mubr.f32.vlgmr.msra.gmra.mrb[32].mxu0 %v11817_v6 }
 0xad9   :  { %7538 = vmatprep.mubr.f32.mxu0 %v11818_v41 }
 0xadc   :  { %7539 = vmatmul.mubr.f32.gmra.mrb[34].mxu0 %v11819_v53 }
 0xadd   :  { %7541 = vmatprep.mubr.f32.mxu0 %v11820_v0 }
 0xae0   :  { %7542 = vmatmul.mubr.f32.gmra.mrb[36].mxu0 %v11200_v29  ;;  %v9043_v29 = vpack.c.bf16 %v5949_v22, %v5948_v56 }
 0xae1   :  { %7544 = vmatprep.mubr.f32.mxu0 %v11384_v46 }
 0xae2   :  { %9044 = vmatprep.subr.bf16.mxu1 %v9043_v29 }
 0xae3   :  { %9046 = vmatpush3.bf16.msra.mxu1 %v9043_v29 }
 0xae4   :  { %9048 = vmatprep.subr.bf16.mxu1 %v9047_v57 }
 0xae7   :  { %9050 = vmatpush3.bf16.msra.mxu1 %v9047_v57 }
 0xae8   :  { %9052 = vmatprep.subr.bf16.mxu1 %v9051_v23 }
 0xaeb   :  { %9054 = vmatpush3.bf16.msra.mxu1 %v9051_v23 }
 0xaec   :  { %9056 = vmatprep.subr.bf16.mxu1 %v9055_v1 }
 0xaef   :  { %9058 = vmatpush3.bf16.msra.mxu1 %v9055_v1 }
 0xaf0   :  { %9060 = vmatprep.subr.bf16.mxu1 %v9059_v3 }
 0xaf3   :  { %9062 = vmatpush3.bf16.msra.mxu1 %v9059_v3 }
 0xb6b   :  { %v5565_v39 = vpop.f32.mrb[52].mxu1 }
 0xb6c   :  { %v7467_v31 = vpop.f32.mrb[53].mxu1  ;;  %v5566_v2 = vadd.f32 %v5565_v39, %v5424_v17 }
 0xb8b   :  { %v5700_v13 = vpop.f32.mrb[30].mxu0  ;;  %v5771_v54 = vpop.f32.mrb[54].mxu1 }
 0xb8c   :  { %v9124_v42 = vadd.f32 %v9123_v15, %v5700_v13  ;;  %v5702_v48 = vpop.f32.mrb[31].mxu0  ;;  %v7502_v32 = vpop.f32.mrb[55].mxu1  ;;  %v5772_v25 = vadd.f32 %v5771_v54, %v5630_v63 }
 0xb8d   :  { %v9126_v38 = vadd.f32 %v9125_v60, %v5702_v48 }
 0xb8e   :  { %v6135_v27 = vmul.f32 -1.442695, %v9124_v42 }
 0xb8f   :  { %v6136_v40 = vmul.f32 -1.442695, %v9126_v38 }
 0xb90   :  { %9324 = vpow2.f32 %v6135_v27 }
 0xb91   :  { %9326 = vpow2.f32 %v6136_v40 }
 0xb9a   :  { %v9325_v62 = vpop.eup %9324 }
 0xb9b   :  { %v5779_v24 = vadd.f32 1.0, %v9325_v62  ;;  %v9327_v43 = vpop.eup %9326 }
 0xb9c   :  { %v5786_v50 = vadd.f32 1.0, %v9327_v43 }
 0xb9d   :  { %9328 = vrcp.f32 %v5779_v24 }
 0xb9e   :  { %9330 = vrcp.f32 %v5786_v50 }
 0xba7   :  { %v9329_v21 = vpop.eup %9328 }
 0xba8   :  { %v5789_v45 = vmul.f32 %v9329_v21, %v5772_v25  ;;  %v9331_v37 = vpop.eup %9330 }
 0xba9   :  { %v5792_v10 = vsub.f32 1.0, %v9331_v37  ;;  %v5794_v34 = vmul.f32 %v9331_v37, %v11384_v46 }
 0xbaa   :  { %v5790_v33 = vadd.f32 %v5789_v45, %v5566_v2 }
 0xbab   :  { %v7537_v51 = vpop.f32.mrb[32].mxu0 }
 0xbac   :  { %9332 = vtanh.f32 %v5790_v33  ;;  %v5901_v9 = vadd.f32 %v7537_v51, %v6137_v18  ;;  %v5895_v7 = vpop.f32.mrb[33].mxu0 }
 0xbad   :  { %v5896_v55 = vadd.f32 %v6137_v18, %v5895_v7 }
 0xbae   :  { %v5935_v53 = vmax.f32 %v5901_v9, 0.0 }
 0xbaf   :  { %v5934_v6 = vmax.f32 %v5896_v55, 0.0  ;;  %v7540_v41 = vpop.f32.mrb[34].mxu0 }
 0xbb0   :  { %v5911_v16 = vadd.f32 %v7540_v41, %v6137_v18  ;;  %v5905_v0 = vpop.f32.mrb[35].mxu0 }
 0xbb1   :  { %v5906_v12 = vadd.f32 %v6137_v18, %v5905_v0  ;;  %7579 = vmatprep.mubr.f32.mxu1 %v5934_v6 }
 0xbb2   :  { %7580 = vmatmul.mubr.f32.vlgmr.msra.gmra.mrb[56].mxu1 %v5935_v53  ;;  %v5937_v52 = vmax.f32 %v5911_v16, 0.0 }
 0xbb3   :  { %v5936_v44 = vmax.f32 %v5906_v12, 0.0  ;;  %v7543_v36 = vpop.f32.mrb[36].mxu0 }
 0xbb4   :  { %v5921_v49 = vadd.f32 %v7543_v36, %v6137_v18  ;;  %v5915_v4 = vpop.f32.mrb[37].mxu0 }
 0xbb5   :  { %v5916_v30 = vadd.f32 %v6137_v18, %v5915_v4  ;;  %7582 = vmatprep.mubr.f32.mxu1 %v5936_v44 }
 0xbb6   :  { %v9333_v56 = vpop.eup %9332  ;;  %7583 = vmatmul.mubr.f32.gmra.mrb[58].mxu1 %v5937_v52  ;;  %v5939_v28 = vmax.f32 %v5921_v49, 0.0 }
 0xbb7   :  { %v5938_v22 = vmax.f32 %v5916_v30, 0.0  ;;  %v5793_v29 = vmul.f32 %v9333_v56, %v5792_v10 }
 0xbb9   :  { %7585 = vmatprep.mubr.f32.mxu1 %v5938_v22  ;;  %v5795_v57 = vadd.f32 %v5794_v34, %v5793_v29 }
 0xbba   :  { %7586 = vmatmul.mubr.f32.gmra.mrb[60].mxu1 %v5939_v28 }
 0xbbb   :  { %7545 = vmatmul.mubr.f32.gmra.mrb[38].mxu0 %v5795_v57 }
 0xc85   :  { %v7581_v19 = vpop.f32.mrb[56].mxu1 }
 0xc86   :  { %v6037_v23 = vadd.f32 %v7581_v19, %v6138_v35  ;;  %v6031_v26 = vpop.f32.mrb[57].mxu1 }
 0xc87   :  { %v6032_v5 = vadd.f32 %v6138_v35, %v6031_v26 }
 0xc88   :  { %6071 = vst [vmem:[#allocation16 + $0x8] sm:$0xff] %v6037_v23 }
 0xc89   :  { %6070 = vst [vmem:[#allocation16] sm:$0xff] %v6032_v5  ;;  %v7584_v1 = vpop.f32.mrb[58].mxu1 }
 0xc8a   :  { %v6047_v47 = vadd.f32 %v7584_v1, %v6138_v35  ;;  %v6041_v20 = vpop.f32.mrb[59].mxu1 }
 0xc8b   :  { %v6042_v3 = vadd.f32 %v6138_v35, %v6041_v20 }
 0xc8c   :  { %6073 = vst [vmem:[#allocation16 + $0x18] sm:$0xff] %v6047_v47 }
 0xc8d   :  { %6072 = vst [vmem:[#allocation16 + $0x10] sm:$0xff] %v6042_v3  ;;  %v7587_v46 = vpop.f32.mrb[60].mxu1 }
 0xc8e   :  { %v6057_v39 = vadd.f32 %v7587_v46, %v6138_v35  ;;  %v7546_v31 = vpop.f32.mrb[38].mxu0  ;;  %v6051_v8 = vpop.f32.mrb[61].mxu1 }
 0xc8f   :  { %v5931_v58 = vadd.f32 %v7546_v31, %v6137_v18  ;;  %v6052_v11 = vadd.f32 %v6138_v35, %v6051_v8  ;;  %v5925_v59 = vpop.f32.mrb[39].mxu0 }
 0xc90   :  { %6075 = vst [vmem:[#allocation16 + $0x28] sm:$0xff] %v6057_v39  ;;  %v5926_v61 = vadd.f32 %v6137_v18, %v5925_v59 }
 0xc91   :  { %6074 = vst [vmem:[#allocation16 + $0x20] sm:$0xff] %v6052_v11  ;;  %v5941_v15 = vmax.f32 %v5931_v58, 0.0 }
 0xc92   :  { %v5940_v14 = vmax.f32 %v5926_v61, 0.0 }
 0xc94   :  { %7588 = vmatprep.mubr.f32.mxu1 %v5940_v14 }
 0xc95   :  { %7589 = vmatmul.mubr.f32.gmra.mrb[62].mxu1 %v5941_v15 }
 0xd68   :  { %v7590_v13 = vpop.f32.mrb[62].mxu1 }
 0xd69   :  { %v6067_v54 = vadd.f32 %v7590_v13, %v6138_v35  ;;  %v6061_v60 = vpop.f32.mrb[63].mxu1 }
 0xd6a   :  { %v6062_v42 = vadd.f32 %v6138_v35, %v6061_v60 }
 0xd6b   :  { %6077 = vst [vmem:[#allocation16 + $0x38] sm:$0xff] %v6067_v54 }
 0xd6c   :  { %6076 = vst [vmem:[#allocation16 + $0x30] sm:$0xff] %v6062_v42 }
 0xd6d   :  { %9499 = shalt.err (!%p9496_p4)
}
 0xd6e   :  { %s9500_s16 = scalar_lea.hbm %s11478_s13, 1024 }
 0xd6f   :  { %p9501_p5 = scmp.ne.s32.totalorder %s11478_s13, %s9500_s16  ;;  %p9504_p6 = scmp.lt.u32.totalorder %s9500_s16, %s11478_s13 }
 0xd71   :  { %p9506_p7 = pnand %p9504_p6, %p9501_p5 }
 0xd73   :  { %9509 = shalt.err (!%p9506_p7)
}
 0xd74   :  { %6089 = dma.vmem_to_hbm [thread:$0]  %s6084_s29, 1024, %s11478_s13, [#allocation6], %s9526_s23, %s9526_s23, %s9527_s14  }
 0xd75   :  { %9518 = dma.done.wait [#allocation6], 1024  }
 0xd76   :  { %9519 = vsyncadd [#allocation6], 4294966272 }
 0xd77   :  { %6093 = vsyncpa [#allocation5], 1 }
 0xd78   :  { %6094 = vsyncpa [#allocation8], 1 }
 0xd79   :  { %6095 = vsyncpa [#allocation11], 1 }
 0xd7a   :  { %6096 = vsyncpa [#allocation14], 1 }
 0xd7b   :  { %6097 = vsyncpa [#allocation6], 1 }

</bundles_post_ra>
